<compile_context>
chip_gen: v6e
topology: v6e:2x2x1
jax: 0.10.0
libtpu: 0.0.40
codegen_flags: <defaults>
</compile_context>

<pallas_src>
import functools

import jax
import jax.numpy as jnp
from jax import lax
from jax.experimental import pallas as pl
from jax.experimental.pallas import tpu as pltpu


def _round_up(x, m):
    return ((x + m - 1) // m) * m


def _pick_batch_block(n, per_image_vmem_bytes, vmem_budget_bytes=8 << 20):
    """Largest divisor of n that keeps >= 2 grid steps (v7x megacore) and stays
    within a conservative per-step VMEM budget."""
    best = 1
    for d in range(1, n + 1):
        if n % d:
            continue
        if n // d < 2 and n > 1:          # keep >= 2 parallel steps when possible
            continue
        if d * per_image_vmem_bytes > vmem_budget_bytes:
            continue
        best = max(best, d)
    return best


def resblock_kernel(xp_ref, xres_ref, w1_ref, b1_ref, w2_ref, b2_ref,
                    o_ref, rpad_ref, *, Nb, H, W, K1, Cp):
    M = Nb * H * W

    # ---- conv1: r = conv1(relu(x)) as ONE im2col MXU matmul ----------------
    # relu(patches(x)) == patches(relu(x)): elementwise, and the zero spatial
    # halo / zero channel padding stay zero under relu.
    p1 = jnp.maximum(xp_ref[...], 0.0).reshape(M, K1).astype(w1_ref.dtype)
    r = jnp.dot(p1, w1_ref[...], preferred_element_type=jnp.float32)
    r = r + b1_ref[...]                                        # (M, Cp) f32

    # ---- stage zero-padded relu(r) so conv2 sees a zero halo ---------------
    # Full zero-fill every step is ~(H+2)*(W+2)*Cp/1024 vector stores (cheap)
    # and is safe under megacore grid partitioning.
    rpad_ref[...] = jnp.zeros_like(rpad_ref)
    rpad_ref[:, 1:H + 1, 1:W + 1, :] = (
        jnp.maximum(r, 0.0).reshape(Nb, H, W, Cp))
    rpad = rpad_ref[...]

    # ---- conv2: 9 shifted, lane-dense (M, Cp) @ (Cp, Cp) MXU matmuls -------
    # TODO(synk): packing conv2's 9 taps into a single K-chunk (in-kernel
    # im2col) would cut MXU pushes ~9x but requires an unaligned minor-dim
    # concatenate of in-kernel activations; kept as dense K=Cp accumulation
    # for robust lowering.
    acc = jnp.zeros((M, Cp), jnp.float32)
    for kh in range(3):
        for kw in range(3):
            patch = rpad[:, kh:kh + H, kw:kw + W, :].reshape(M, Cp)
            acc = acc + jnp.dot(patch.astype(w2_ref.dtype), w2_ref[kh, kw],
                                preferred_element_type=jnp.float32)
    r2 = acc + b2_ref[...]

    # ---- identity shortcut, lane-dense store -------------------------------
    o_ref[...] = (xres_ref[...].reshape(M, Cp) + r2).reshape(Nb, H, W, Cp)


def resblock_forward(x_nchw, w1, b1, w2, b2, *, mxu_dtype=jnp.float32):
    """ResBlock forward (identity-shortcut config).

    x_nchw: (N, Cin, H, W) f32; w*: (Cout, Cin, 3, 3) OIHW; b*: (Cout,).
    Set mxu_dtype=jnp.bfloat16 on v6e/v7x for ~2x MXU throughput (the f32
    bias/relu/residual epilogue is kept either way).
    """
    N, Cin, H, W = x_nchw.shape
    Cout = w1.shape[0]
    if Cout != Cin or w2.shape[0] != Cout:
        # TODO(synk): downsample branch (indim != outdim or stride != 1) needs a
        # third conv + strided output indexing; not exercised in this config.
        raise NotImplementedError(
            "only the identity-shortcut ResBlock (indim == outdim, stride == 1)")

    Cp = _round_up(Cout, 128)          # lane-dense channel padding
    K1 = _round_up(9 * Cin, 128)       # conv1 im2col contraction depth

    # ---- wrapper-side layout plumbing (plain XLA) --------------------------
    x_nhwc = jnp.transpose(x_nchw, (0, 2, 3, 1)).astype(jnp.float32)
    xpad = jnp.pad(x_nhwc, ((0, 0), (1, 1), (1, 1), (0, 0)))
    # im2col patches for conv1: channel order (kh, kw, cin), padded to K1.
    patches = jnp.concatenate(
        [xpad[:, kh:kh + H, kw:kw + W, :] for kh in range(3) for kw in range(3)],
        axis=-1)
    patches = jnp.pad(patches,
                      ((0, 0),) * 3 + ((0, K1 - 9 * Cin),)).astype(mxu_dtype)
    x_res = jnp.pad(x_nhwc, ((0, 0),) * 3 + ((0, Cp - Cin),))   # shortcut input

    w1_flat = jnp.transpose(w1, (2, 3, 1, 0)).reshape(9 * Cin, Cout)
    w1_flat = jnp.pad(w1_flat,
                      ((0, K1 - 9 * Cin), (0, Cp - Cout))).astype(mxu_dtype)
    w2_hwio = jnp.transpose(w2, (2, 3, 1, 0))                   # (3,3,Cin,Cout)
    w2_p = jnp.pad(w2_hwio,
                   ((0, 0), (0, 0), (0, Cp - Cout), (0, Cp - Cout))).astype(mxu_dtype)
    b1_p = jnp.pad(b1, (0, Cp - Cout)).reshape(1, Cp).astype(jnp.float32)
    b2_p = jnp.pad(b2, (0, Cp - Cout)).reshape(1, Cp).astype(jnp.float32)

    # ---- batch blocking ----------------------------------------------------
    bytes_per_img = 4 * (2 * H * W * K1 + 4 * H * W * Cp + (H + 2) * (W + 2) * Cp)
    Nb = _pick_batch_block(N, bytes_per_img)
    grid = (N // Nb,)

    kernel = functools.partial(resblock_kernel, Nb=Nb, H=H, W=W, K1=K1, Cp=Cp)
    out = pl.pallas_call(
        kernel,
        out_shape=jax.ShapeDtypeStruct((N, H, W, Cp), jnp.float32),
        grid_spec=pltpu.PrefetchScalarGridSpec(
            num_scalar_prefetch=0,
            grid=grid,                                    # Nb images per step
            in_specs=[
                pl.BlockSpec((Nb, H, W, K1), lambda n: (n, 0, 0, 0)),  # patches
                pl.BlockSpec((Nb, H, W, Cp), lambda n: (n, 0, 0, 0)),  # shortcut x
                pl.BlockSpec((K1, Cp), lambda n: (0, 0)),              # w1 (im2col)
                pl.BlockSpec((1, Cp), lambda n: (0, 0)),               # b1
                pl.BlockSpec((3, 3, Cp, Cp), lambda n: (0, 0, 0, 0)),  # w2
                pl.BlockSpec((1, Cp), lambda n: (0, 0)),               # b2
            ],
            out_specs=pl.BlockSpec((Nb, H, W, Cp), lambda n: (n, 0, 0, 0)),
            scratch_shapes=[pltpu.VMEM((Nb, H + 2, W + 2, Cp), jnp.float32)],
        ),
        compiler_params=pltpu.CompilerParams(
            dimension_semantics=("parallel",)),
    )(patches, x_res, w1_flat, b1_p, w2_p, b2_p)

    # strip channel padding, back to NCHW
    return jnp.transpose(out[..., :Cout], (0, 3, 1, 2))


if __name__ == "__main__":
    # indim == outdim == 4, stride == 1  ->  ResBlock with identity shortcut
    N, C, H, W = 2, 4, 16, 16
    key = jax.random.PRNGKey(0)
    kx, k1, k2, kb1, kb2 = jax.random.split(key, 5)
    x = jax.random.normal(kx, (N, C, H, W), jnp.float32)
    w1 = jax.random.normal(k1, (C, C, 3, 3), jnp.float32) * 0.1   # conv1 (OIHW)
    b1 = jax.random.normal(kb1, (C,), jnp.float32) * 0.1
    w2 = jax.random.normal(k2, (C, C, 3, 3), jnp.float32) * 0.1   # conv2
    b2 = jax.random.normal(kb2, (C,), jnp.float32) * 0.1

    out = jax.jit(resblock_forward)(x, w1, b1, w2, b2)
    out = jax.block_until_ready(out)

    # plain-XLA reference for numerical validation
    def ref(x, w1, b1, w2, b2):
        def conv(z, w, b):
            y = lax.conv_general_dilated(
                z, w, window_strides=(1, 1), padding=((1, 1), (1, 1)),
                dimension_numbers=("NCHW", "OIHW", "NCHW"))
            return y + b[None, :, None, None]
        r = conv(jax.nn.relu(x), w1, b1)
        r = conv(jax.nn.relu(r), w2, b2)
        return x + r

    expected = ref(x, w1, b1, w2, b2)
    assert out.shape == expected.shape and out.dtype == expected.dtype
    assert jnp.allclose(out, expected, atol=1e-3, rtol=1e-3), \
        float(jnp.max(jnp.abs(out - expected)))
    print("KERNEL_OK")
</pallas_src>

<mosaic_0001>
module attributes {stable_mosaic.version = 11 : i64} {
  func.func @resblock_kernel(%arg0: i32, %arg1: memref<1x16x16x128xf32, #tpu.memory_space<vmem>>, %arg2: memref<1x16x16x128xf32, #tpu.memory_space<vmem>>, %arg3: memref<128x128xf32, #tpu.memory_space<vmem>>, %arg4: memref<1x128xf32, #tpu.memory_space<vmem>>, %arg5: memref<3x3x128x128xf32, #tpu.memory_space<vmem>>, %arg6: memref<1x128xf32, #tpu.memory_space<vmem>>, %arg7: memref<1x16x16x128xf32, #tpu.memory_space<vmem>>, %arg8: memref<1x18x18x128xf32, #tpu.memory_space<vmem>>) attributes {dimension_semantics = [#tpu.dimension_semantics<parallel>], iteration_bounds = array<i64: 2>, scalar_prefetch = 0 : i64, scratch_operands = 1 : i64, tpu.core_type = #tpu.core_type<tc>, window_params = [{transform_indices = @transform_0, window_bounds = array<i64: 1, 16, 16, 128>}, {transform_indices = @transform_1, window_bounds = array<i64: 1, 16, 16, 128>}, {pipeline_mode = #tpu.pipeline_mode<synchronous>, transform_indices = @transform_2, window_bounds = array<i64: 128, 128>}, {pipeline_mode = #tpu.pipeline_mode<synchronous>, transform_indices = @transform_3, window_bounds = array<i64: 1, 128>}, {pipeline_mode = #tpu.pipeline_mode<synchronous>, transform_indices = @transform_4, window_bounds = array<i64: 3, 3, 128, 128>}, {pipeline_mode = #tpu.pipeline_mode<synchronous>, transform_indices = @transform_5, window_bounds = array<i64: 1, 128>}, {transform_indices = @transform_6, window_bounds = array<i64: 1, 16, 16, 128>}]} {
    %c0 = arith.constant 0 : index
    %c0_0 = arith.constant 0 : index
    %c0_1 = arith.constant 0 : index
    %c0_2 = arith.constant 0 : index
    %0 = vector.load %arg1[%c0, %c0_0, %c0_1, %c0_2] : memref<1x16x16x128xf32, #tpu.memory_space<vmem>>, vector<1x16x16x128xf32>
    %cst = arith.constant 0.000000e+00 : f32
    %1 = vector.broadcast %cst : f32 to vector<1x16x16x128xf32>
    %2 = arith.maximumf %0, %1 : vector<1x16x16x128xf32>
    %3 = vector.shape_cast %2 : vector<1x16x16x128xf32> to vector<256x128xf32>
    %c0_3 = arith.constant 0 : index
    %c0_4 = arith.constant 0 : index
    %4 = vector.load %arg3[%c0_3, %c0_4] : memref<128x128xf32, #tpu.memory_space<vmem>>, vector<128x128xf32>
    %cst_5 = arith.constant dense<0.000000e+00> : vector<256x128xf32>
    %5 = tpu.matmul %3, %4, %cst_5 {dimension_numbers = #tpu.dot_dimension_numbers<[1], [0], [0], [1], [0, 0, 1, 1], [], []>} : vector<256x128xf32>, vector<128x128xf32>, vector<256x128xf32> -> vector<256x128xf32>
    %c0_6 = arith.constant 0 : index
    %c0_7 = arith.constant 0 : index
    %6 = vector.load %arg4[%c0_6, %c0_7] : memref<1x128xf32, #tpu.memory_space<vmem>>, vector<1x128xf32>
    %7 = vector.broadcast %6 : vector<1x128xf32> to vector<256x128xf32>
    %8 = arith.addf %5, %7 : vector<256x128xf32>
    %cst_8 = arith.constant 0.000000e+00 : f32
    %9 = vector.broadcast %cst_8 : f32 to vector<1x18x18x128xf32>
    %c0_9 = arith.constant 0 : index
    %c0_10 = arith.constant 0 : index
    %c0_11 = arith.constant 0 : index
    %c0_12 = arith.constant 0 : index
    %10 = vector.load %arg8[%c0_9, %c0_10, %c0_11, %c0_12] : memref<1x18x18x128xf32, #tpu.memory_space<vmem>>, vector<1x18x18x128xf32>
    tpu.vector_store %arg8[%c0_9, %c0_10, %c0_11, %c0_12], %9 {strides = array<i32>} : memref<1x18x18x128xf32, #tpu.memory_space<vmem>>, vector<1x18x18x128xf32>,
    %cst_13 = arith.constant 0.000000e+00 : f32
    %11 = vector.broadcast %cst_13 : f32 to vector<256x128xf32>
    %12 = arith.maximumf %8, %11 : vector<256x128xf32>
    %13 = vector.shape_cast %12 : vector<256x128xf32> to vector<1x16x16x128xf32>
    %c0_14 = arith.constant 0 : index
    %c1 = arith.constant 1 : index
    %c1_15 = arith.constant 1 : index
    %c0_16 = arith.constant 0 : index
    %14 = vector.load %arg8[%c0_14, %c1, %c1_15, %c0_16] : memref<1x18x18x128xf32, #tpu.memory_space<vmem>>, vector<1x16x16x128xf32>
    tpu.vector_store %arg8[%c0_14, %c1, %c1_15, %c0_16], %13 {strides = array<i32>} : memref<1x18x18x128xf32, #tpu.memory_space<vmem>>, vector<1x16x16x128xf32>,
    %c0_17 = arith.constant 0 : index
    %c0_18 = arith.constant 0 : index
    %c0_19 = arith.constant 0 : index
    %c0_20 = arith.constant 0 : index
    %15 = vector.load %arg8[%c0_17, %c0_18, %c0_19, %c0_20] : memref<1x18x18x128xf32, #tpu.memory_space<vmem>>, vector<1x18x18x128xf32>
    %cst_21 = arith.constant 0.000000e+00 : f32
    %16 = vector.broadcast %cst_21 : f32 to vector<256x128xf32>
    %17 = vector.extract_strided_slice %15 {offsets = [0, 0, 0, 0], sizes = [1, 16, 16, 128], strides = [1, 1, 1, 1]} : vector<1x18x18x128xf32> to vector<1x16x16x128xf32>
    %18 = vector.shape_cast %17 : vector<1x16x16x128xf32> to vector<256x128xf32>
    %c0_22 = arith.constant 0 : index
    %c0_23 = arith.constant 0 : index
    %c0_24 = arith.constant 0 : index
    %c0_25 = arith.constant 0 : index
    %19 = vector.load %arg5[%c0_22, %c0_23, %c0_24, %c0_25] : memref<3x3x128x128xf32, #tpu.memory_space<vmem>>, vector<1x1x128x128xf32>
    %20 = vector.shape_cast %19 : vector<1x1x128x128xf32> to vector<128x128xf32>
    %cst_26 = arith.constant dense<0.000000e+00> : vector<256x128xf32>
    %21 = tpu.matmul %18, %20, %cst_26 {dimension_numbers = #tpu.dot_dimension_numbers<[1], [0], [0], [1], [0, 0, 1, 1], [], []>} : vector<256x128xf32>, vector<128x128xf32>, vector<256x128xf32> -> vector<256x128xf32>
    %22 = arith.addf %16, %21 : vector<256x128xf32>
    %23 = vector.extract_strided_slice %15 {offsets = [0, 0, 1, 0], sizes = [1, 16, 16, 128], strides = [1, 1, 1, 1]} : vector<1x18x18x128xf32> to vector<1x16x16x128xf32>
    %24 = vector.shape_cast %23 : vector<1x16x16x128xf32> to vector<256x128xf32>
    %c0_27 = arith.constant 0 : index
    %c1_28 = arith.constant 1 : index
    %c0_29 = arith.constant 0 : index
    %c0_30 = arith.constant 0 : index
    %25 = vector.load %arg5[%c0_27, %c1_28, %c0_29, %c0_30] : memref<3x3x128x128xf32, #tpu.memory_space<vmem>>, vector<1x1x128x128xf32>
    %26 = vector.shape_cast %25 : vector<1x1x128x128xf32> to vector<128x128xf32>
    %cst_31 = arith.constant dense<0.000000e+00> : vector<256x128xf32>
    %27 = tpu.matmul %24, %26, %cst_31 {dimension_numbers = #tpu.dot_dimension_numbers<[1], [0], [0], [1], [0, 0, 1, 1], [], []>} : vector<256x128xf32>, vector<128x128xf32>, vector<256x128xf32> -> vector<256x128xf32>
    %28 = arith.addf %22, %27 : vector<256x128xf32>
    %29 = vector.extract_strided_slice %15 {offsets = [0, 0, 2, 0], sizes = [1, 16, 16, 128], strides = [1, 1, 1, 1]} : vector<1x18x18x128xf32> to vector<1x16x16x128xf32>
    %30 = vector.shape_cast %29 : vector<1x16x16x128xf32> to vector<256x128xf32>
    %c0_32 = arith.constant 0 : index
    %c2 = arith.constant 2 : index
    %c0_33 = arith.constant 0 : index
    %c0_34 = arith.constant 0 : index
    %31 = vector.load %arg5[%c0_32, %c2, %c0_33, %c0_34] : memref<3x3x128x128xf32, #tpu.memory_space<vmem>>, vector<1x1x128x128xf32>
    %32 = vector.shape_cast %31 : vector<1x1x128x128xf32> to vector<128x128xf32>
    %cst_35 = arith.constant dense<0.000000e+00> : vector<256x128xf32>
    %33 = tpu.matmul %30, %32, %cst_35 {dimension_numbers = #tpu.dot_dimension_numbers<[1], [0], [0], [1], [0, 0, 1, 1], [], []>} : vector<256x128xf32>, vector<128x128xf32>, vector<256x128xf32> -> vector<256x128xf32>
    %34 = arith.addf %28, %33 : vector<256x128xf32>
    %35 = vector.extract_strided_slice %15 {offsets = [0, 1, 0, 0], sizes = [1, 16, 16, 128], strides = [1, 1, 1, 1]} : vector<1x18x18x128xf32> to vector<1x16x16x128xf32>
    %36 = vector.shape_cast %35 : vector<1x16x16x128xf32> to vector<256x128xf32>
    %c1_36 = arith.constant 1 : index
    %c0_37 = arith.constant 0 : index
    %c0_38 = arith.constant 0 : index
    %c0_39 = arith.constant 0 : index
    %37 = vector.load %arg5[%c1_36, %c0_37, %c0_38, %c0_39] : memref<3x3x128x128xf32, #tpu.memory_space<vmem>>, vector<1x1x128x128xf32>
    %38 = vector.shape_cast %37 : vector<1x1x128x128xf32> to vector<128x128xf32>
    %cst_40 = arith.constant dense<0.000000e+00> : vector<256x128xf32>
    %39 = tpu.matmul %36, %38, %cst_40 {dimension_numbers = #tpu.dot_dimension_numbers<[1], [0], [0], [1], [0, 0, 1, 1], [], []>} : vector<256x128xf32>, vector<128x128xf32>, vector<256x128xf32> -> vector<256x128xf32>
    %40 = arith.addf %34, %39 : vector<256x128xf32>
    %41 = vector.extract_strided_slice %15 {offsets = [0, 1, 1, 0], sizes = [1, 16, 16, 128], strides = [1, 1, 1, 1]} : vector<1x18x18x128xf32> to vector<1x16x16x128xf32>
    %42 = vector.shape_cast %41 : vector<1x16x16x128xf32> to vector<256x128xf32>
    %c1_41 = arith.constant 1 : index
    %c1_42 = arith.constant 1 : index
    %c0_43 = arith.constant 0 : index
    %c0_44 = arith.constant 0 : index
    %43 = vector.load %arg5[%c1_41, %c1_42, %c0_43, %c0_44] : memref<3x3x128x128xf32, #tpu.memory_space<vmem>>, vector<1x1x128x128xf32>
    %44 = vector.shape_cast %43 : vector<1x1x128x128xf32> to vector<128x128xf32>
    %cst_45 = arith.constant dense<0.000000e+00> : vector<256x128xf32>
    %45 = tpu.matmul %42, %44, %cst_45 {dimension_numbers = #tpu.dot_dimension_numbers<[1], [0], [0], [1], [0, 0, 1, 1], [], []>} : vector<256x128xf32>, vector<128x128xf32>, vector<256x128xf32> -> vector<256x128xf32>
    %46 = arith.addf %40, %45 : vector<256x128xf32>
    %47 = vector.extract_strided_slice %15 {offsets = [0, 1, 2, 0], sizes = [1, 16, 16, 128], strides = [1, 1, 1, 1]} : vector<1x18x18x128xf32> to vector<1x16x16x128xf32>
    %48 = vector.shape_cast %47 : vector<1x16x16x128xf32> to vector<256x128xf32>
    %c1_46 = arith.constant 1 : index
    %c2_47 = arith.constant 2 : index
    %c0_48 = arith.constant 0 : index
    %c0_49 = arith.constant 0 : index
    %49 = vector.load %arg5[%c1_46, %c2_47, %c0_48, %c0_49] : memref<3x3x128x128xf32, #tpu.memory_space<vmem>>, vector<1x1x128x128xf32>
    %50 = vector.shape_cast %49 : vector<1x1x128x128xf32> to vector<128x128xf32>
    %cst_50 = arith.constant dense<0.000000e+00> : vector<256x128xf32>
    %51 = tpu.matmul %48, %50, %cst_50 {dimension_numbers = #tpu.dot_dimension_numbers<[1], [0], [0], [1], [0, 0, 1, 1], [], []>} : vector<256x128xf32>, vector<128x128xf32>, vector<256x128xf32> -> vector<256x128xf32>
    %52 = arith.addf %46, %51 : vector<256x128xf32>
    %53 = vector.extract_strided_slice %15 {offsets = [0, 2, 0, 0], sizes = [1, 16, 16, 128], strides = [1, 1, 1, 1]} : vector<1x18x18x128xf32> to vector<1x16x16x128xf32>
    %54 = vector.shape_cast %53 : vector<1x16x16x128xf32> to vector<256x128xf32>
    %c2_51 = arith.constant 2 : index
    %c0_52 = arith.constant 0 : index
    %c0_53 = arith.constant 0 : index
    %c0_54 = arith.constant 0 : index
    %55 = vector.load %arg5[%c2_51, %c0_52, %c0_53, %c0_54] : memref<3x3x128x128xf32, #tpu.memory_space<vmem>>, vector<1x1x128x128xf32>
    %56 = vector.shape_cast %55 : vector<1x1x128x128xf32> to vector<128x128xf32>
    %cst_55 = arith.constant dense<0.000000e+00> : vector<256x128xf32>
    %57 = tpu.matmul %54, %56, %cst_55 {dimension_numbers = #tpu.dot_dimension_numbers<[1], [0], [0], [1], [0, 0, 1, 1], [], []>} : vector<256x128xf32>, vector<128x128xf32>, vector<256x128xf32> -> vector<256x128xf32>
    %58 = arith.addf %52, %57 : vector<256x128xf32>
    %59 = vector.extract_strided_slice %15 {offsets = [0, 2, 1, 0], sizes = [1, 16, 16, 128], strides = [1, 1, 1, 1]} : vector<1x18x18x128xf32> to vector<1x16x16x128xf32>
    %60 = vector.shape_cast %59 : vector<1x16x16x128xf32> to vector<256x128xf32>
    %c2_56 = arith.constant 2 : index
    %c1_57 = arith.constant 1 : index
    %c0_58 = arith.constant 0 : index
    %c0_59 = arith.constant 0 : index
    %61 = vector.load %arg5[%c2_56, %c1_57, %c0_58, %c0_59] : memref<3x3x128x128xf32, #tpu.memory_space<vmem>>, vector<1x1x128x128xf32>
    %62 = vector.shape_cast %61 : vector<1x1x128x128xf32> to vector<128x128xf32>
    %cst_60 = arith.constant dense<0.000000e+00> : vector<256x128xf32>
    %63 = tpu.matmul %60, %62, %cst_60 {dimension_numbers = #tpu.dot_dimension_numbers<[1], [0], [0], [1], [0, 0, 1, 1], [], []>} : vector<256x128xf32>, vector<128x128xf32>, vector<256x128xf32> -> vector<256x128xf32>
    %64 = arith.addf %58, %63 : vector<256x128xf32>
    %65 = vector.extract_strided_slice %15 {offsets = [0, 2, 2, 0], sizes = [1, 16, 16, 128], strides = [1, 1, 1, 1]} : vector<1x18x18x128xf32> to vector<1x16x16x128xf32>
    %66 = vector.shape_cast %65 : vector<1x16x16x128xf32> to vector<256x128xf32>
    %c2_61 = arith.constant 2 : index
    %c2_62 = arith.constant 2 : index
    %c0_63 = arith.constant 0 : index
    %c0_64 = arith.constant 0 : index
    %67 = vector.load %arg5[%c2_61, %c2_62, %c0_63, %c0_64] : memref<3x3x128x128xf32, #tpu.memory_space<vmem>>, vector<1x1x128x128xf32>
    %68 = vector.shape_cast %67 : vector<1x1x128x128xf32> to vector<128x128xf32>
    %cst_65 = arith.constant dense<0.000000e+00> : vector<256x128xf32>
    %69 = tpu.matmul %66, %68, %cst_65 {dimension_numbers = #tpu.dot_dimension_numbers<[1], [0], [0], [1], [0, 0, 1, 1], [], []>} : vector<256x128xf32>, vector<128x128xf32>, vector<256x128xf32> -> vector<256x128xf32>
    %70 = arith.addf %64, %69 : vector<256x128xf32>
    %c0_66 = arith.constant 0 : index
    %c0_67 = arith.constant 0 : index
    %71 = vector.load %arg6[%c0_66, %c0_67] : memref<1x128xf32, #tpu.memory_space<vmem>>, vector<1x128xf32>
    %72 = vector.broadcast %71 : vector<1x128xf32> to vector<256x128xf32>
    %73 = arith.addf %70, %72 : vector<256x128xf32>
    %c0_68 = arith.constant 0 : index
    %c0_69 = arith.constant 0 : index
    %c0_70 = arith.constant 0 : index
    %c0_71 = arith.constant 0 : index
    %74 = vector.load %arg2[%c0_68, %c0_69, %c0_70, %c0_71] : memref<1x16x16x128xf32, #tpu.memory_space<vmem>>, vector<1x16x16x128xf32>
    %75 = vector.shape_cast %74 : vector<1x16x16x128xf32> to vector<256x128xf32>
    %76 = arith.addf %75, %73 : vector<256x128xf32>
    %77 = vector.shape_cast %76 : vector<256x128xf32> to vector<1x16x16x128xf32>
    %c0_72 = arith.constant 0 : index
    %c0_73 = arith.constant 0 : index
    %c0_74 = arith.constant 0 : index
    %c0_75 = arith.constant 0 : index
    %78 = vector.load %arg7[%c0_72, %c0_73, %c0_74, %c0_75] : memref<1x16x16x128xf32, #tpu.memory_space<vmem>>, vector<1x16x16x128xf32>
    tpu.vector_store %arg7[%c0_72, %c0_73, %c0_74, %c0_75], %77 {strides = array<i32>} : memref<1x16x16x128xf32, #tpu.memory_space<vmem>>, vector<1x16x16x128xf32>,
    return
  }
  func.func @transform_0(%arg0: i32) -> (i32, i32, i32, i32) {
    %c0_i32 = arith.constant 0 : i32
    %c0_i32_0 = arith.constant 0 : i32
    %c0_i32_1 = arith.constant 0 : i32
    %c0_i32_2 = arith.constant 0 : i32
    return %arg0, %c0_i32, %c0_i32_0, %c0_i32_1 : i32, i32, i32, i32
  }
  func.func @transform_1(%arg0: i32) -> (i32, i32, i32, i32) {
    %c0_i32 = arith.constant 0 : i32
    %c0_i32_0 = arith.constant 0 : i32
    %c0_i32_1 = arith.constant 0 : i32
    %c0_i32_2 = arith.constant 0 : i32
    return %arg0, %c0_i32, %c0_i32_0, %c0_i32_1 : i32, i32, i32, i32
  }
  func.func @transform_2(%arg0: i32) -> (i32, i32) {
    %c0_i32 = arith.constant 0 : i32
    %c0_i32_0 = arith.constant 0 : i32
    %c0_i32_1 = arith.constant 0 : i32
    return %c0_i32, %c0_i32_0 : i32, i32
  }
  func.func @transform_3(%arg0: i32) -> (i32, i32) {
    %c0_i32 = arith.constant 0 : i32
    %c0_i32_0 = arith.constant 0 : i32
    %c0_i32_1 = arith.constant 0 : i32
    return %c0_i32, %c0_i32_0 : i32, i32
  }
  func.func @transform_4(%arg0: i32) -> (i32, i32, i32, i32) {
    %c0_i32 = arith.constant 0 : i32
    %c0_i32_0 = arith.constant 0 : i32
    %c0_i32_1 = arith.constant 0 : i32
    %c0_i32_2 = arith.constant 0 : i32
    %c0_i32_3 = arith.constant 0 : i32
    return %c0_i32, %c0_i32_0, %c0_i32_1, %c0_i32_2 : i32, i32, i32, i32
  }
  func.func @transform_5(%arg0: i32) -> (i32, i32) {
    %c0_i32 = arith.constant 0 : i32
    %c0_i32_0 = arith.constant 0 : i32
    %c0_i32_1 = arith.constant 0 : i32
    return %c0_i32, %c0_i32_0 : i32, i32
  }
  func.func @transform_6(%arg0: i32) -> (i32, i32, i32, i32) {
    %c0_i32 = arith.constant 0 : i32
    %c0_i32_0 = arith.constant 0 : i32
    %c0_i32_1 = arith.constant 0 : i32
    %c0_i32_2 = arith.constant 0 : i32
    return %arg0, %c0_i32, %c0_i32_0, %c0_i32_1 : i32, i32, i32, i32
  }
}

</mosaic_0001>

<bundles_post_ra>
// kernel: resblock_forward.1
= control target key start
LH: loop header
LB: loop body
LE: loop exit
PB: predicated region body
PF: predicated region fallthrough
CT: control target
= control target key end

     0   :  { %s5176_s21 = smov 0   ;;  %s7103_s0 = inlined_call_operand.vmem [shape: f32[2,16,16,128], index: 0, kind: input, shape index: {}]   ;;  %s7104_s1 = inlined_call_operand.vmem [shape: f32[2,16,16,128], index: 1, kind: input, shape index: {}]   ;;  %s7105_s2 = inlined_call_operand.vmem [shape: f32[128,128], index: 2, kind: input, shape index: {}]   ;;  %s7106_s3 = inlined_call_operand.vmem [shape: f32[1,128], index: 3, kind: input, shape index: {}]   ;;  %s7107_s4 = inlined_call_operand.vmem [shape: f32[3,3,128,128], index: 4, kind: input, shape index: {}]   ;;  %s7108_s5 = inlined_call_operand.vmem [shape: f32[1,128], index: 5, kind: input, shape index: {}]   ;;  %s7109_s6 = inlined_call_operand.vmem [shape: f32[2,16,16,128], index: 6, kind: output, shape index: {}]  }
   0x1 LB: > { %s3668_s22 = sadd.s32 4294967295, %s5138_s21   ;;  %p3672_p0 = scmp.ge.s32.totalorder %s5138_s21, 1  ;;  %s5138_s21 = sphi %s5176_s21, %s16_s21  }
   0x2   : > { %p222_p1 = scmp.lt.s32.totalorder %s5138_s21, 3 }
   0x4   : > { %p223_p2 = pnand %p3672_p0, %p222_p1 }
   0x6   : > { %226 = sbr.rel (%p223_p2) target bundleno = 769 (0x301), region = 44 }
   0xb   : > { %v351_v0 = vld [vmem:[%s7105_s2 + $0x78] sm:$0xff]  ;;  %v350_v1 = vld [vmem:[%s7105_s2 + $0x70] sm:$0xff]  ;;  %p257_p3 = scmp.lt.s32.totalorder %s3668_s22, 1  ;;  %v349_v2 = vld [vmem:[%s7105_s2 + $0x68] sm:$0xff]  ;;  %vm821_vm0 = vcmask 1046528   ;;  %vm1401_vm1 = vcmask 1045504  }
   0xc   : > { %4294 = vmatprep.subr.mxu0 %v351_v0  ;;  %v348_v3 = vld [vmem:[%s7105_s2 + $0x60] sm:$0xff]  ;;  %v3695_v4 = vld [vmem:[%s7107_s4 + $0xf8] sm:$0xff]  ;;  %v346_v8 = vld [vmem:[%s7105_s2 + $0x50] sm:$0xff] }
   0xd   : > { %4295 = vmatpush3.msra.mxu0 %v351_v0  ;;  %s7350_s22 = smov (!%p257_p3, %s3668_s22), 1  ;;  %v347_v5 = vld [vmem:[%s7105_s2 + $0x58] sm:$0xff]  ;;  %4374 = vmatprep.subr.mxu1 %v3695_v4  ;;  %v345_v9 = vld [vmem:[%s7105_s2 + $0x48] sm:$0xff]  ;;  %v344_v10 = vld [vmem:[%s7105_s2 + $0x40] sm:$0xff] }
   0xe   : > { %4296 = vmatprep.subr.mxu0 %v350_v1  ;;  %s5196_s7 = sshll.u32 %s7350_s22, 8  ;;  %4375 = vmatpush3.msra.mxu1 %v3695_v4  ;;  %v343_v11 = vld [vmem:[%s7105_s2 + $0x38] sm:$0xff]  ;;  %v342_v12 = vld [vmem:[%s7105_s2 + $0x30] sm:$0xff]  ;;  %v3693_v14 = vld [vmem:[%s7107_s4 + $0xe8] sm:$0xff] }
   0xf   : > { %4297 = vmatpush3.msra.mxu0 %v350_v1  ;;  %s5202_s10 = scalar_lea.vmem %s7103_s0, %s5196_s7  ;;  %v3694_v13 = vld [vmem:[%s7107_s4 + $0xf0] sm:$0xff]  ;;  %v341_v15 = vld [vmem:[%s7105_s2 + $0x28] sm:$0xff]  ;;  %v3692_v16 = vld [vmem:[%s7107_s4 + $0xe0] sm:$0xff]  ;;  %s6867_s22 = scalar_lea.vmem %s7104_s1, %s5196_s7 }
  0x10   : > { %4298 = vmatprep.subr.mxu0 %v349_v2  ;;  %v272_v6 = vld [vmem:[%s5202_s10] sm:$0xff]  ;;  %4376 = vmatprep.subr.mxu1 %v3694_v13  ;;  %v3691_v18 = vld [vmem:[%s7107_s4 + $0xd8] sm:$0xff]  ;;  %v3690_v20 = vld [vmem:[%s7107_s4 + $0xd0] sm:$0xff]  ;;  %s6892_s27 = scalar_lea.vmem %s7109_s6, %s5196_s7 }
  0x11   : > { %4299 = vmatpush3.msra.mxu0 %v349_v2  ;;  %v304_v7 = vmax.f32 %v272_v6, 0.0  ;;  %4377 = vmatpush3.msra.mxu1 %v3694_v13  ;;  %v340_v17 = vld [vmem:[%s7105_s2 + $0x20] sm:$0xff]  ;;  %v339_v19 = vld [vmem:[%s7105_s2 + $0x18] sm:$0xff]  ;;  %v338_v21 = vld [vmem:[%s7105_s2 + $0x10] sm:$0xff] }
  0x12   : > { %4300 = vmatprep.subr.mxu0 %v348_v3  ;;  %4378 = vmatprep.subr.mxu1 %v3693_v14  ;;  %v3689_v22 = vld [vmem:[%s7107_s4 + $0xc8] sm:$0xff]  ;;  %v274_v25 = vld [vmem:[%s5202_s10 + $0x10] sm:$0xff]  ;;  %v3688_v26 = vld [vmem:[%s7107_s4 + $0xc0] sm:$0xff] }
  0x13   : > { %4301 = vmatpush3.msra.mxu0 %v348_v3  ;;  %4326 = vmatprep.mubr.f32.mxu0 %v304_v7  ;;  %v337_v23 = vld [vmem:[%s7105_s2 + $0x8] sm:$0xff]  ;;  %v336_v27 = vld [vmem:[%s7105_s2] sm:$0xff]  ;;  %v3687_v29 = vld [vmem:[%s7107_s4 + $0xb8] sm:$0xff]  ;;  %v306_v30 = vmax.f32 %v274_v25, 0.0 }
  0x14   : > { %4302 = vmatprep.subr.mxu0 %v347_v5  ;;  %4379 = vmatpush3.msra.mxu1 %v3693_v14  ;;  %v273_v24 = vld [vmem:[%s5202_s10 + $0x8] sm:$0xff]  ;;  %v275_v31 = vld [vmem:[%s5202_s10 + $0x18] sm:$0xff]  ;;  %v276_v33 = vld [vmem:[%s5202_s10 + $0x20] sm:$0xff] }
  0x15   : > { %4303 = vmatpush3.msra.mxu0 %v347_v5  ;;  %4380 = vmatprep.subr.mxu1 %v3692_v16  ;;  %v305_v28 = vmax.f32 %v273_v24, 0.0  ;;  %v772_v32 = vld [vmem:[%s7107_s4 + $0x78] sm:$0xff]  ;;  %v771_v34 = vld [vmem:[%s7107_s4 + $0x70] sm:$0xff]  ;;  %v307_v35 = vmax.f32 %v275_v31, 0.0  ;;  %v308_v37 = vmax.f32 %v276_v33, 0.0  ;;  %v277_v38 = vld [vmem:[%s5202_s10 + $0x28] sm:$0xff] }
  0x16   : > { %4304 = vmatprep.subr.mxu0 %v346_v8  ;;  %4381 = vmatpush3.msra.mxu1 %v3692_v16  ;;  %v3686_v36 = vld [vmem:[%s7107_s4 + $0xb0] sm:$0xff]  ;;  %v770_v39 = vld [vmem:[%s7107_s4 + $0x68] sm:$0xff]  ;;  %v769_v41 = vld [vmem:[%s7107_s4 + $0x60] sm:$0xff]  ;;  %v309_v42 = vmax.f32 %v277_v38, 0.0 }
  0x17   : > { %4305 = vmatpush3.msra.mxu0 %v346_v8  ;;  %4382 = vmatprep.subr.mxu1 %v3691_v18  ;;  %v278_v40 = vld [vmem:[%s5202_s10 + $0x30] sm:$0xff]  ;;  %v279_v44 = vld [vmem:[%s5202_s10 + $0x38] sm:$0xff]  ;;  %v280_v46 = vld [vmem:[%s5202_s10 + $0x40] sm:$0xff] }
  0x18   : > { %4306 = vmatprep.subr.mxu0 %v345_v9  ;;  %4383 = vmatpush3.msra.mxu1 %v3691_v18  ;;  %v310_v43 = vmax.f32 %v278_v40, 0.0  ;;  %v768_v45 = vld [vmem:[%s7107_s4 + $0x58] sm:$0xff]  ;;  %v767_v47 = vld [vmem:[%s7107_s4 + $0x50] sm:$0xff]  ;;  %v311_v48 = vmax.f32 %v279_v44, 0.0  ;;  %v312_v49 = vmax.f32 %v280_v46, 0.0  ;;  %v281_v50 = vld [vmem:[%s5202_s10 + $0x48] sm:$0xff] }
  0x19   : > { %4307 = vmatpush3.msra.mxu0 %v345_v9  ;;  %4384 = vmatprep.subr.mxu1 %v3690_v20  ;;  %v766_v51 = vld [vmem:[%s7107_s4 + $0x48] sm:$0xff]  ;;  %v282_v52 = vld [vmem:[%s5202_s10 + $0x50] sm:$0xff]  ;;  %v765_v53 = vld [vmem:[%s7107_s4 + $0x40] sm:$0xff]  ;;  %v313_v54 = vmax.f32 %v281_v50, 0.0 }
  0x1a   : > { %4308 = vmatprep.subr.mxu0 %v344_v10  ;;  %4385 = vmatpush3.msra.mxu1 %v3690_v20  ;;  %v314_v55 = vmax.f32 %v282_v52, 0.0  ;;  %v283_v56 = vld [vmem:[%s5202_s10 + $0x58] sm:$0xff]  ;;  %v284_v58 = vld [vmem:[%s5202_s10 + $0x60] sm:$0xff]  ;;  %v763_v59 = vld [vmem:[%s7107_s4 + $0x30] sm:$0xff] }
  0x1b   : > { %4309 = vmatpush3.msra.mxu0 %v344_v10  ;;  %4386 = vmatprep.subr.mxu1 %v3689_v22  ;;  %v764_v57 = vld [vmem:[%s7107_s4 + $0x38] sm:$0xff]  ;;  %v315_v60 = vmax.f32 %v283_v56, 0.0  ;;  %v316_v61 = vmax.f32 %v284_v58, 0.0  ;;  %v285_v62 = vld [vmem:[%s5202_s10 + $0x68] sm:$0xff]  ;;  %v286_v63 = vld [vmem:[%s5202_s10 + $0x70] sm:$0xff] }
  0x1c   : > { %4310 = vmatprep.subr.mxu0 %v343_v11  ;;  %4387 = vmatpush3.msra.mxu1 %v3689_v22  ;;  %v317_v0 = vmax.f32 %v285_v62, 0.0  ;;  %v318_v1 = vmax.f32 %v286_v63, 0.0  ;;  %v287_v2 = vld [vmem:[%s5202_s10 + $0x78] sm:$0xff]  ;;  %v288_v3 = vld [vmem:[%s5202_s10 + $0x80] sm:$0xff]  ;;  %v289_v6 = vld [vmem:[%s5202_s10 + $0x88] sm:$0xff] }
  0x1d   : > { %4311 = vmatpush3.msra.mxu0 %v343_v11  ;;  %4388 = vmatprep.subr.mxu1 %v3688_v26  ;;  %v319_v4 = vmax.f32 %v287_v2, 0.0  ;;  %v320_v5 = vmax.f32 %v288_v3, 0.0  ;;  %v290_v7 = vld [vmem:[%s5202_s10 + $0x90] sm:$0xff]  ;;  %v321_v8 = vmax.f32 %v289_v6, 0.0  ;;  %v291_v10 = vld [vmem:[%s5202_s10 + $0x98] sm:$0xff]  ;;  %v292_v11 = vld [vmem:[%s5202_s10 + $0xa0] sm:$0xff] }
  0x1e   : > { %4312 = vmatprep.subr.mxu0 %v342_v12  ;;  %4389 = vmatpush3.msra.mxu1 %v3688_v26  ;;  %v322_v9 = vmax.f32 %v290_v7, 0.0  ;;  %v324_v13 = vmax.f32 %v292_v11, 0.0  ;;  %v293_v14 = vld [vmem:[%s5202_s10 + $0xa8] sm:$0xff]  ;;  %v295_v18 = vld [vmem:[%s5202_s10 + $0xb8] sm:$0xff]  ;;  %v302_v31 = vld [vmem:[%s5202_s10 + $0xf0] sm:$0xff] }
  0x1f   : > { %4313 = vmatpush3.msra.mxu0 %v342_v12  ;;  %4390 = vmatprep.subr.mxu1 %v3687_v29  ;;  %v323_v12 = vmax.f32 %v291_v10, 0.0  ;;  %v325_v16 = vmax.f32 %v293_v14, 0.0  ;;  %v327_v20 = vmax.f32 %v295_v18, 0.0  ;;  %v297_v22 = vld [vmem:[%s5202_s10 + $0xc8] sm:$0xff]  ;;  %v299_v26 = vld [vmem:[%s5202_s10 + $0xd8] sm:$0xff]  ;;  %v334_v33 = vmax.f32 %v302_v31, 0.0 }
  0x20   : > { %4314 = vmatprep.subr.mxu0 %v341_v15  ;;  %4391 = vmatpush3.msra.mxu1 %v3687_v29  ;;  %v329_v24 = vmax.f32 %v297_v22, 0.0  ;;  %v761_v38 = vld [vmem:[%s7107_s4 + $0x20] sm:$0xff]  ;;  %v3682_v44 = vld [vmem:[%s7107_s4 + $0x90] sm:$0xff]  ;;  %v3681_v46 = vld [vmem:[%s7107_s4 + $0x88] sm:$0xff] }
  0x21   : > { %4315 = vmatpush3.msra.mxu0 %v341_v15  ;;  %4392 = vmatprep.subr.mxu1 %v3686_v36  ;;  %v294_v15 = vld [vmem:[%s5202_s10 + $0xb0] sm:$0xff]  ;;  %v3684_v40 = vld [vmem:[%s7107_s4 + $0xa0] sm:$0xff]  ;;  %v3725_v63 = vld [vmem:[%s7107_s4 + $0x1e8] sm:$0xff] }
  0x22   : > { %4316 = vmatprep.subr.mxu0 %v340_v17  ;;  %4393 = vmatpush3.msra.mxu1 %v3686_v36  ;;  %v762_v36 = vld [vmem:[%s7107_s4 + $0x28] sm:$0xff]  ;;  %v3680_v50 = vld [vmem:[%s7107_s4 + $0x80] sm:$0xff]  ;;  %v3706_v58 = vld [vmem:[%s7107_s4 + $0x150] sm:$0xff] }
  0x23   : > { %4317 = vmatpush3.msra.mxu0 %v340_v17  ;;  %v326_v17 = vmax.f32 %v294_v15, 0.0  ;;  %v3708_v56 = vld [vmem:[%s7107_s4 + $0x160] sm:$0xff]  ;;  %v3723_v2 = vld [vmem:[%s7107_s4 + $0x1d8] sm:$0xff]  ;;  %v3722_v3 = vld [vmem:[%s7107_s4 + $0x1d0] sm:$0xff] }
  0x24   : > { %4318 = vmatprep.subr.mxu0 %v339_v19  ;;  %v3704_v62 = vld [vmem:[%s7107_s4 + $0x140] sm:$0xff]  ;;  %v3701_v7 = vld [vmem:[%s7107_s4 + $0x128] sm:$0xff]  ;;  %v3699_v11 = vld [vmem:[%s7107_s4 + $0x118] sm:$0xff] }
  0x25   : > { %4319 = vmatpush3.msra.mxu0 %v339_v19  ;;  %v296_v19 = vld [vmem:[%s5202_s10 + $0xc0] sm:$0xff]  ;;  %v3715_v15 = vld [vmem:[%s7107_s4 + $0x198] sm:$0xff]  ;;  %v3713_v18 = vld [vmem:[%s7107_s4 + $0x188] sm:$0xff] }
  0x26   : > { %4320 = vmatprep.subr.mxu0 %v338_v21  ;;  %v3720_v6 = vld [vmem:[%s7107_s4 + $0x1c0] sm:$0xff]  ;;  %v5531_v22 = vld [vmem:[%s7107_s4 + $0x2f8] sm:$0xff] }
  0x27   : > { %4321 = vmatpush3.msra.mxu0 %v338_v21  ;;  %v328_v21 = vmax.f32 %v296_v19, 0.0  ;;  %v3700_v10 = vld [vmem:[%s7107_s4 + $0x120] sm:$0xff] }
  0x28   : > { %4322 = vmatprep.subr.mxu0 %v337_v23  ;;  %v3716_v14 = vld [vmem:[%s7107_s4 + $0x1a0] sm:$0xff] }
  0x29   : > { %4323 = vmatpush3.msra.mxu0 %v337_v23  ;;  %v298_v23 = vld [vmem:[%s5202_s10 + $0xd0] sm:$0xff]  ;;  %v3696_v19 = vld [vmem:[%s7107_s4 + $0x100] sm:$0xff] }
  0x2a   : > { %4324 = vmatprep.subr.mxu0 %v336_v27  ;;  %v330_v25 = vmax.f32 %v298_v23, 0.0  ;;  %v5537_v23 = vld [vmem:[%s7106_s3] ss:$0 sm:$0xff] }
  0x2b   : > { %4325 = vmatpush3.msra.mxu0 %v336_v27  ;;  %v300_v27 = vld [vmem:[%s5202_s10 + $0xe0] sm:$0xff] }
  0x2c   : > { %4327 = vmatmul.mubr.f32.vlgmr.msra.gmra.mxu0 %v305_v28  ;;  %4454 = vmatprep.subr.mxu0 %v772_v32  ;;  %v331_v28 = vmax.f32 %v299_v26, 0.0  ;;  %v332_v29 = vmax.f32 %v300_v27, 0.0 }
  0x2d   : > { %4329 = vmatprep.mubr.f32.mxu0 %v306_v30  ;;  %4455 = vmatpush3.msra.mxu0 %v772_v32  ;;  %v301_v30 = vld [vmem:[%s5202_s10 + $0xe8] sm:$0xff] }
  0x2e   : > { %4456 = vmatprep.subr.mxu0 %v771_v34  ;;  %v333_v32 = vmax.f32 %v301_v30, 0.0 }
  0x2f   : > { %4457 = vmatpush3.msra.mxu0 %v771_v34  ;;  %v303_v34 = vld [vmem:[%s5202_s10 + $0xf8] sm:$0xff] }
  0x30   : > { %4330 = vmatmul.mubr.f32.gmra.mxu0 %v307_v35  ;;  %4458 = vmatprep.subr.mxu0 %v770_v39  ;;  %v335_v35 = vmax.f32 %v303_v34, 0.0 }
  0x31   : > { %4332 = vmatprep.mubr.f32.mxu0 %v308_v37  ;;  %4459 = vmatpush3.msra.mxu0 %v770_v39  ;;  %v3685_v37 = vld [vmem:[%s7107_s4 + $0xa8] sm:$0xff]  ;;  %v7110_v39 = vmov 0.0  }
  0x32   : > { %4460 = vmatprep.subr.mxu0 %v769_v41  ;;  %4394 = vmatprep.subr.mxu1 %v3685_v37  ;;  %588 = vst [vmem:[#allocation2 + $0x20] sm:$0xff] %v7110_v39  ;;  %589 = vst [vmem:[#allocation2 + $0x28] sm:$0x3] %v7110_v39 }
  0x33   : > { %4461 = vmatpush3.msra.mxu0 %v769_v41  ;;  %584 = vst [vmem:[#allocation2] sm:$0xff] %v7110_v39  ;;  %586 = vst [vmem:[#allocation2 + $0x10] sm:$0x3] %v7110_v39  ;;  %4395 = vmatpush3.msra.mxu1 %v3685_v37  ;;  %v760_v41 = vld [vmem:[%s7107_s4 + $0x18] sm:$0xff] }
  0x34   : > { %4333 = vmatmul.mubr.f32.gmra.mxu0 %v309_v42  ;;  %4462 = vmatprep.subr.mxu0 %v768_v45  ;;  %587 = vst [vmem:[#allocation2 + $0x18] sm:$0xff] %v7110_v39  ;;  %590 = vst [vmem:[#allocation2 + $0x30] sm:$0xff] %v7110_v39  ;;  %v3683_v42 = vld [vmem:[%s7107_s4 + $0x98] sm:$0xff] }
  0x35   : > { %4335 = vmatprep.mubr.f32.mxu0 %v310_v43  ;;  %4463 = vmatpush3.msra.mxu0 %v768_v45  ;;  %591 = vst [vmem:[#allocation2 + $0x38] sm:$0xff] %v7110_v39  ;;  %592 = vst [vmem:[#allocation2 + $0x40] sm:$0x3] %v7110_v39  ;;  %v759_v43 = vld [vmem:[%s7107_s4 + $0x10] sm:$0xff]  ;;  %v758_v45 = vld [vmem:[%s7107_s4 + $0x8] sm:$0xff] }
  0x36   : > { %4464 = vmatprep.subr.mxu0 %v767_v47  ;;  %593 = vst [vmem:[#allocation2 + $0x48] sm:$0xff] %v7110_v39  ;;  %594 = vst [vmem:[#allocation2 + $0x50] sm:$0xff] %v7110_v39  ;;  %4396 = vmatprep.subr.mxu1 %v3684_v40 }
  0x37   : > { %4465 = vmatpush3.msra.mxu0 %v767_v47  ;;  %595 = vst [vmem:[#allocation2 + $0x58] sm:$0x3] %v7110_v39  ;;  %596 = vst [vmem:[#allocation2 + $0x60] sm:$0xff] %v7110_v39  ;;  %4397 = vmatpush3.msra.mxu1 %v3684_v40  ;;  %v757_v47 = vld [vmem:[%s7107_s4] sm:$0xff] }
  0x38   : > { %4336 = vmatmul.mubr.f32.gmra.mxu0 %v311_v48  ;;  %4466 = vmatprep.subr.mxu0 %v766_v51  ;;  %597 = vst [vmem:[#allocation2 + $0x68] sm:$0xff] %v7110_v39  ;;  %598 = vst [vmem:[#allocation2 + $0x70] sm:$0x3] %v7110_v39  ;;  %v822_v48 = vrot.slane %v7110_v39, 1 }
  0x39   : > { %4338 = vmatprep.mubr.f32.mxu0 %v312_v49  ;;  %4467 = vmatpush3.msra.mxu0 %v766_v51  ;;  %599 = vst [vmem:[#allocation2 + $0x78] sm:$0xff] %v7110_v39  ;;  %600 = vst [vmem:[#allocation2 + $0x80] sm:$0xff] %v7110_v39 }
  0x3a   : > { %4468 = vmatprep.subr.mxu0 %v765_v53  ;;  %601 = vst [vmem:[#allocation2 + $0x88] sm:$0x3] %v7110_v39  ;;  %602 = vst [vmem:[#allocation2 + $0x90] sm:$0xff] %v7110_v39  ;;  %4398 = vmatprep.subr.mxu1 %v3683_v42  ;;  %v5417_v49 = vld [vmem:[#allocation2 + $0x10] sm:$0x3] }
  0x3b   : > { %4469 = vmatpush3.msra.mxu0 %v765_v53  ;;  %603 = vst [vmem:[#allocation2 + $0x98] sm:$0xff] %v7110_v39  ;;  %604 = vst [vmem:[#allocation2 + $0xa0] sm:$0x3] %v7110_v39  ;;  %4399 = vmatpush3.msra.mxu1 %v3683_v42  ;;  %v825_v51 = vrot.slane %v5417_v49, 1  ;;  %v3711_v53 = vld [vmem:[%s7107_s4 + $0x178] sm:$0xff] }
  0x3c   : > { %4339 = vmatmul.mubr.f32.gmra.mxu0 %v313_v54  ;;  %4470 = vmatprep.subr.mxu0 %v764_v57  ;;  %605 = vst [vmem:[#allocation2 + $0xa8] sm:$0xff] %v7110_v39  ;;  %606 = vst [vmem:[#allocation2 + $0xb0] sm:$0xff] %v7110_v39  ;;  %v3710_v54 = vld [vmem:[%s7107_s4 + $0x170] sm:$0xff] }
  0x3d   : > { %4341 = vmatprep.mubr.f32.mxu0 %v314_v55  ;;  %4471 = vmatpush3.msra.mxu0 %v764_v57  ;;  %607 = vst [vmem:[#allocation2 + $0xb8] sm:$0x3] %v7110_v39  ;;  %608 = vst [vmem:[#allocation2 + $0xc0] sm:$0xff] %v7110_v39  ;;  %v826_v52 = vsel %vm821_vm0, %v822_v48, %v825_v51  ;;  %v3709_v55 = vld [vmem:[%s7107_s4 + $0x168] sm:$0xff]  ;;  %v3707_v57 = vld [vmem:[%s7107_s4 + $0x158] sm:$0xff] }
  0x3e   : > { %4472 = vmatprep.subr.mxu0 %v763_v59  ;;  %609 = vst [vmem:[#allocation2 + $0xc8] sm:$0xff] %v7110_v39  ;;  %610 = vst [vmem:[#allocation2 + $0xd0] sm:$0x3] %v7110_v39  ;;  %4400 = vmatprep.subr.mxu1 %v3682_v44 }
  0x3f   : > { %4473 = vmatpush3.msra.mxu0 %v763_v59  ;;  %611 = vst [vmem:[#allocation2 + $0xd8] sm:$0xff] %v7110_v39  ;;  %612 = vst [vmem:[#allocation2 + $0xe0] sm:$0xff] %v7110_v39  ;;  %4401 = vmatpush3.msra.mxu1 %v3682_v44  ;;  %v3705_v59 = vld [vmem:[%s7107_s4 + $0x148] sm:$0xff] }
  0x40   : > { %4342 = vmatmul.mubr.f32.gmra.mxu0 %v315_v60  ;;  %4474 = vmatprep.subr.mxu0 %v762_v36  ;;  %613 = vst [vmem:[#allocation2 + $0xe8] sm:$0x3] %v7110_v39  ;;  %614 = vst [vmem:[#allocation2 + $0xf0] sm:$0xff] %v7110_v39  ;;  %v3727_v60 = vld [vmem:[%s7107_s4 + $0x1f8] sm:$0xff] }
  0x41   : > { %4344 = vmatprep.mubr.f32.mxu0 %v316_v61  ;;  %4475 = vmatpush3.msra.mxu0 %v762_v36  ;;  %615 = vst [vmem:[#allocation2 + $0xf8] sm:$0xff] %v7110_v39  ;;  %616 = vst [vmem:[#allocation2 + $0x100] sm:$0x3] %v7110_v39  ;;  %v3726_v61 = vld [vmem:[%s7107_s4 + $0x1f0] sm:$0xff] }
  0x42   : > { %617 = vst [vmem:[#allocation2 + $0x108] sm:$0xff] %v7110_v39  ;;  %618 = vst [vmem:[#allocation2 + $0x110] sm:$0xff] %v7110_v39  ;;  %4476 = vmatprep.subr.mxu0 %v761_v38  ;;  %4402 = vmatprep.subr.mxu1 %v3681_v46 }
  0x43   : > { %619 = vst [vmem:[#allocation2 + $0x118] sm:$0x3] %v7110_v39  ;;  %620 = vst [vmem:[#allocation2 + $0x120] sm:$0xff] %v7110_v39  ;;  %4477 = vmatpush3.msra.mxu0 %v761_v38  ;;  %4403 = vmatpush3.msra.mxu1 %v3681_v46 }
  0x44   : > { %4345 = vmatmul.mubr.f32.gmra.mxu0 %v317_v0  ;;  %621 = vst [vmem:[#allocation2 + $0x128] sm:$0xff] %v7110_v39  ;;  %622 = vst [vmem:[#allocation2 + $0x130] sm:$0x3] %v7110_v39  ;;  %4478 = vmatprep.subr.mxu0 %v760_v41  ;;  %v3724_v0 = vld [vmem:[%s7107_s4 + $0x1e0] sm:$0xff] }
  0x45   : > { %4347 = vmatprep.mubr.f32.mxu0 %v318_v1  ;;  %623 = vst [vmem:[#allocation2 + $0x138] sm:$0xff] %v7110_v39  ;;  %624 = vst [vmem:[#allocation2 + $0x140] sm:$0xff] %v7110_v39  ;;  %4479 = vmatpush3.msra.mxu0 %v760_v41  ;;  %v3703_v1 = vld [vmem:[%s7107_s4 + $0x138] sm:$0xff] }
  0x46   : > { %625 = vst [vmem:[#allocation2 + $0x148] sm:$0x3] %v7110_v39  ;;  %626 = vst [vmem:[#allocation2 + $0x150] sm:$0xff] %v7110_v39  ;;  %4480 = vmatprep.subr.mxu0 %v759_v43  ;;  %4404 = vmatprep.subr.mxu1 %v3680_v50 }
  0x47   : > { %627 = vst [vmem:[#allocation2 + $0x158] sm:$0xff] %v7110_v39  ;;  %628 = vst [vmem:[#allocation2 + $0x160] sm:$0x3] %v7110_v39  ;;  %4481 = vmatpush3.msra.mxu0 %v759_v43  ;;  %4405 = vmatpush3.msra.mxu1 %v3680_v50 }
  0x48   : > { %4348 = vmatmul.mubr.f32.gmra.mxu0 %v319_v4  ;;  %629 = vst [vmem:[#allocation2 + $0x168] sm:$0xff] %v7110_v39  ;;  %630 = vst [vmem:[#allocation2 + $0x170] sm:$0xff] %v7110_v39  ;;  %4482 = vmatprep.subr.mxu0 %v758_v45  ;;  %v3702_v4 = vld [vmem:[%s7107_s4 + $0x130] sm:$0xff] }
  0x49   : > { %4350 = vmatprep.mubr.f32.mxu0 %v320_v5  ;;  %631 = vst [vmem:[#allocation2 + $0x178] sm:$0x3] %v7110_v39  ;;  %632 = vst [vmem:[#allocation2 + $0x180] sm:$0xff] %v7110_v39  ;;  %4483 = vmatpush3.msra.mxu0 %v758_v45  ;;  %v3721_v5 = vld [vmem:[%s7107_s4 + $0x1c8] sm:$0xff] }
  0x4a   : > { %633 = vst [vmem:[#allocation2 + $0x188] sm:$0xff] %v7110_v39  ;;  %634 = vst [vmem:[#allocation2 + $0x190] sm:$0x3] %v7110_v39  ;;  %4484 = vmatprep.subr.mxu0 %v757_v47  ;;  %4406 = vmatprep.mubr.f32.mxu1 %v822_v48 }
  0x4b   : > { %637 = vst [vmem:[#allocation2 + $0x1a8] sm:$0x3] %v7110_v39  ;;  %4485 = vmatpush3.msra.mxu0 %v757_v47  ;;  %4407 = vmatmul.mubr.f32.vlgmr.msra.gmra.mxu1 %v826_v52 }
  0x4c   : > { %4351 = vmatmul.mubr.f32.gmra.mxu0 %v321_v8  ;;  %4534 = vmatprep.subr.mxu1 %v3711_v53  ;;  %v3719_v8 = vld [vmem:[%s7107_s4 + $0x1b8] sm:$0xff] }
  0x4d   : > { %4353 = vmatprep.mubr.f32.mxu0 %v322_v9  ;;  %4535 = vmatpush3.msra.mxu1 %v3711_v53  ;;  %v3718_v9 = vld [vmem:[%s7107_s4 + $0x1b0] sm:$0xff] }
  0x4e   : > { %4536 = vmatprep.subr.mxu1 %v3710_v54  ;;  %4614 = vmatprep.subr.mxu0 %v3727_v60 }
  0x4f   : > { %4537 = vmatpush3.msra.mxu1 %v3710_v54 }
  0x50   : > { %4354 = vmatmul.mubr.f32.gmra.mxu0 %v323_v12  ;;  %4538 = vmatprep.subr.mxu1 %v3709_v55  ;;  %v3717_v12 = vld [vmem:[%s7107_s4 + $0x1a8] sm:$0xff] }
  0x51   : > { %4356 = vmatprep.mubr.f32.mxu0 %v324_v13  ;;  %4539 = vmatpush3.msra.mxu1 %v3709_v55  ;;  %v3698_v13 = vld [vmem:[%s7107_s4 + $0x110] sm:$0xff] }
  0x52   : > { %4540 = vmatprep.subr.mxu1 %v3708_v56 }
  0x53   : > { %4541 = vmatpush3.msra.mxu1 %v3708_v56 }
  0x54   : > { %4357 = vmatmul.mubr.f32.gmra.mxu0 %v325_v16  ;;  %4542 = vmatprep.subr.mxu1 %v3707_v57  ;;  %v3697_v16 = vld [vmem:[%s7107_s4 + $0x108] sm:$0xff] }
  0x55   : > { %4359 = vmatprep.mubr.f32.mxu0 %v326_v17  ;;  %4543 = vmatpush3.msra.mxu1 %v3707_v57  ;;  %v3714_v17 = vld [vmem:[%s7107_s4 + $0x190] sm:$0xff] }
  0x56   : > { %4544 = vmatprep.subr.mxu1 %v3706_v58 }
  0x57   : > { %4545 = vmatpush3.msra.mxu1 %v3706_v58 }
  0x58   : > { %4360 = vmatmul.mubr.f32.gmra.mxu0 %v327_v20  ;;  %4546 = vmatprep.subr.mxu1 %v3705_v59  ;;  %v3712_v20 = vld [vmem:[%s7107_s4 + $0x180] sm:$0xff] }
  0x59   : > { %4362 = vmatprep.mubr.f32.mxu0 %v328_v21  ;;  %4547 = vmatpush3.msra.mxu1 %v3705_v59  ;;  %v5525_v21 = vld [vmem:[%s7107_s4 + $0x278] sm:$0xff] }
  0x5a   : > { %4548 = vmatprep.subr.mxu1 %v3704_v62 }
  0x5b   : > { %4549 = vmatpush3.msra.mxu1 %v3704_v62 }
  0x5c   : > { %4363 = vmatmul.mubr.f32.gmra.mxu0 %v329_v24  ;;  %4550 = vmatprep.subr.mxu1 %v3703_v1 }
  0x5d   : > { %4365 = vmatprep.mubr.f32.mxu0 %v330_v25  ;;  %4551 = vmatpush3.msra.mxu1 %v3703_v1 }
  0x5e   : > { %4552 = vmatprep.subr.mxu1 %v3702_v4 }
  0x5f   : > { %4553 = vmatpush3.msra.mxu1 %v3702_v4 }
  0x60   : > { %4366 = vmatmul.mubr.f32.gmra.mxu0 %v331_v28  ;;  %4554 = vmatprep.subr.mxu1 %v3701_v7 }
  0x61   : > { %4368 = vmatprep.mubr.f32.mxu0 %v332_v29  ;;  %4555 = vmatpush3.msra.mxu1 %v3701_v7 }
  0x62   : > { %4556 = vmatprep.subr.mxu1 %v3700_v10 }
  0x63   : > { %4557 = vmatpush3.msra.mxu1 %v3700_v10 }
  0x64   : > { %4369 = vmatmul.mubr.f32.gmra.mxu0 %v333_v32  ;;  %4558 = vmatprep.subr.mxu1 %v3699_v11 }
  0x65   : > { %4371 = vmatprep.mubr.f32.mxu0 %v334_v33  ;;  %4559 = vmatpush3.msra.mxu1 %v3699_v11 }
  0x66   : > { %4560 = vmatprep.subr.mxu1 %v3698_v13 }
  0x67   : > { %4561 = vmatpush3.msra.mxu1 %v3698_v13 }
  0x68   : > { %4372 = vmatmul.mubr.f32.gmra.mxu0 %v335_v35  ;;  %4562 = vmatprep.subr.mxu1 %v3697_v16 }
  0x69   : > { %4486 = vmatprep.mubr.f32.mxu0 %v7110_v39  ;;  %4563 = vmatpush3.msra.mxu1 %v3697_v16 }
  0x6a   : > { %4564 = vmatprep.subr.mxu1 %v3696_v19 }
  0x6b   : > { %4565 = vmatpush3.msra.mxu1 %v3696_v19 }
  0x6c   : > { %4487 = vmatmul.mubr.f32.vlgmr.msra.gmra.mxu0 %v7110_v39  ;;  %4694 = vmatprep.subr.mxu1 %v5525_v21 }
  0x6d   : > { %4615 = vmatpush3.msra.mxu0 %v3727_v60 }
  0x6e   : > { %4616 = vmatprep.subr.mxu0 %v3726_v61 }
  0x6f   : > { %4617 = vmatpush3.msra.mxu0 %v3726_v61 }
  0x70   : > { %4618 = vmatprep.subr.mxu0 %v3725_v63 }
  0x71   : > { %4619 = vmatpush3.msra.mxu0 %v3725_v63 }
  0x72   : > { %4620 = vmatprep.subr.mxu0 %v3724_v0 }
  0x73   : > { %4621 = vmatpush3.msra.mxu0 %v3724_v0 }
  0x74   : > { %4622 = vmatprep.subr.mxu0 %v3723_v2 }
  0x75   : > { %4623 = vmatpush3.msra.mxu0 %v3723_v2 }
  0x76   : > { %4624 = vmatprep.subr.mxu0 %v3722_v3 }
  0x77   : > { %4625 = vmatpush3.msra.mxu0 %v3722_v3 }
  0x78   : > { %4626 = vmatprep.subr.mxu0 %v3721_v5 }
  0x79   : > { %4627 = vmatpush3.msra.mxu0 %v3721_v5 }
  0x7a   : > { %4628 = vmatprep.subr.mxu0 %v3720_v6 }
  0x7b   : > { %4629 = vmatpush3.msra.mxu0 %v3720_v6 }
  0x7c   : > { %4630 = vmatprep.subr.mxu0 %v3719_v8 }
  0x7d   : > { %4631 = vmatpush3.msra.mxu0 %v3719_v8 }
  0x7e   : > { %4632 = vmatprep.subr.mxu0 %v3718_v9 }
  0x7f   : > { %4633 = vmatpush3.msra.mxu0 %v3718_v9 }
  0x80   : > { %4634 = vmatprep.subr.mxu0 %v3717_v12 }
  0x81   : > { %4635 = vmatpush3.msra.mxu0 %v3717_v12 }
  0x82   : > { %4636 = vmatprep.subr.mxu0 %v3716_v14 }
  0x83   : > { %4637 = vmatpush3.msra.mxu0 %v3716_v14 }
  0x84   : > { %4638 = vmatprep.subr.mxu0 %v3715_v15 }
  0x85   : > { %4639 = vmatpush3.msra.mxu0 %v3715_v15 }
  0x86   : > { %4640 = vmatprep.subr.mxu0 %v3714_v17 }
  0x87   : > { %4641 = vmatpush3.msra.mxu0 %v3714_v17 }
  0x88   : > { %4642 = vmatprep.subr.mxu0 %v3713_v18 }
  0x89   : > { %4643 = vmatpush3.msra.mxu0 %v3713_v18 }
  0x8a   : > { %4644 = vmatprep.subr.mxu0 %v3712_v20 }
  0x8b   : > { %4645 = vmatpush3.msra.mxu0 %v3712_v20 }
  0x8c   : > { %4774 = vmatprep.subr.mxu0 %v5531_v22 }
  0xec   : > { %v4328_v24 = vpop.f32.mrf.mxu0 }
  0xed   : > { %v431_v25 = vadd.f32 %v4328_v24, %v5537_v23 }
  0xee   : > { %v425_v26 = vpop.f32.mrf.mxu0 }
  0xef   : > { %v639_v27 = vmax.f32 %v431_v25, 0.0  ;;  %v426_v28 = vadd.f32 %v5537_v23, %v425_v26 }
  0xf0   : > { %v4331_v29 = vpop.f32.mrf.mxu0 }
  0xf1   : > { %672 = vst [vmem:[#allocation2 + $0x21] sm:$0xff] %v639_v27  ;;  %v638_v30 = vmax.f32 %v426_v28, 0.0  ;;  %v441_v31 = vadd.f32 %v4331_v29, %v5537_v23 }
  0xf2   : > { %v435_v32 = vpop.f32.mrf.mxu0 }
  0xf3   : > { %671 = vst [vmem:[#allocation2 + $0x19] sm:$0xff] %v638_v30  ;;  %v641_v33 = vmax.f32 %v441_v31, 0.0  ;;  %v436_v34 = vadd.f32 %v5537_v23, %v435_v32 }
  0xf4   : > { %v4334_v35 = vpop.f32.mrf.mxu0 }
  0xf5   : > { %674 = vst [vmem:[#allocation2 + $0x39] sm:$0xff] %v641_v33  ;;  %v640_v36 = vmax.f32 %v436_v34, 0.0  ;;  %v451_v37 = vadd.f32 %v4334_v35, %v5537_v23 }
  0xf6   : > { %v445_v38 = vpop.f32.mrf.mxu0 }
  0xf7   : > { %673 = vst [vmem:[#allocation2 + $0x31] sm:$0xff] %v640_v36  ;;  %v643_v40 = vmax.f32 %v451_v37, 0.0  ;;  %v446_v41 = vadd.f32 %v5537_v23, %v445_v38 }
  0xf8   : > { %v4337_v42 = vpop.f32.mrf.mxu0  ;;  %v5545_v43 = vld [vmem:[#allocation2 + $0x28] sm:$0x3] }
  0xf9   : > { %676 = vst [vmem:[#allocation2 + $0x51] sm:$0xff] %v643_v40  ;;  %v642_v44 = vmax.f32 %v446_v41, 0.0  ;;  %v461_v45 = vadd.f32 %v4337_v42, %v5537_v23  ;;  %v830_v50 = vrot.slane %v5545_v43, 1 }
  0xfa   : > { %v455_v46 = vpop.f32.mrf.mxu0  ;;  %v5548_v47 = vld [vmem:[#allocation2 + $0x18] sm:$0xff]  ;;  %v5550_v48 = vld [vmem:[#allocation2 + $0x20] sm:$0xff] }
  0xfb   : > { %675 = vst [vmem:[#allocation2 + $0x49] sm:$0xff] %v642_v44  ;;  %v645_v51 = vmax.f32 %v461_v45, 0.0  ;;  %v456_v52 = vadd.f32 %v5537_v23, %v455_v46  ;;  %4489 = vmatprep.mubr.f32.mxu0 %v5548_v47  ;;  %v827_v53 = vrot.slane %v5548_v47, 1  ;;  %v828_v54 = vrot.slane %v5550_v48, 1 }
  0xfc   : > { %v4340_v55 = vpop.f32.mrf.mxu0  ;;  %4490 = vmatmul.mubr.f32.gmra.mxu0 %v5550_v48  ;;  %v5558_v56 = vld [vmem:[#allocation2 + $0x40] sm:$0x3] }
  0xfd   : > { %678 = vst [vmem:[#allocation2 + $0x69] sm:$0xff] %v645_v51  ;;  %v644_v57 = vmax.f32 %v456_v52, 0.0  ;;  %v471_v58 = vadd.f32 %v4340_v55, %v5537_v23  ;;  %v5562_v59 = vsel %vm821_vm0, %v827_v53, %v828_v54  ;;  %v5565_v60 = vsel %vm821_vm0, %v828_v54, %v830_v50 }
  0xfe   : > { %v465_v61 = vpop.f32.mrf.mxu0  ;;  %4409 = vmatprep.mubr.f32.mxu1 %v5562_v59  ;;  %v5568_v62 = vld [vmem:[#allocation2 + $0x30] sm:$0xff]  ;;  %v5570_v63 = vld [vmem:[#allocation2 + $0x38] sm:$0xff]  ;;  %v835_v0 = vrot.slane %v5558_v56, 1 }
  0xff   : > { %677 = vst [vmem:[#allocation2 + $0x61] sm:$0xff] %v644_v57  ;;  %v647_v1 = vmax.f32 %v471_v58, 0.0  ;;  %v466_v2 = vadd.f32 %v5537_v23, %v465_v61  ;;  %4410 = vmatmul.mubr.f32.gmra.mxu1 %v5565_v60  ;;  %4492 = vmatprep.mubr.f32.mxu0 %v5568_v62  ;;  %v832_v3 = vrot.slane %v5568_v62, 1  ;;  %v833_v4 = vrot.slane %v5570_v63, 1 }
 0x100   : > { %v4343_v5 = vpop.f32.mrf.mxu0  ;;  %4493 = vmatmul.mubr.f32.gmra.mxu0 %v5570_v63  ;;  %v5579_v6 = vld [vmem:[#allocation2 + $0x58] sm:$0x3] }
 0x101   : > { %680 = vst [vmem:[#allocation2 + $0x81] sm:$0xff] %v647_v1  ;;  %v646_v7 = vmax.f32 %v466_v2, 0.0  ;;  %v481_v8 = vadd.f32 %v4343_v5, %v5537_v23  ;;  %v5583_v9 = vsel %vm821_vm0, %v832_v3, %v833_v4  ;;  %v5586_v10 = vsel %vm821_vm0, %v833_v4, %v835_v0 }
 0x102   : > { %v475_v11 = vpop.f32.mrf.mxu0  ;;  %4412 = vmatprep.mubr.f32.mxu1 %v5583_v9  ;;  %v5589_v12 = vld [vmem:[#allocation2 + $0x48] sm:$0xff]  ;;  %v5591_v13 = vld [vmem:[#allocation2 + $0x50] sm:$0xff]  ;;  %v840_v14 = vrot.slane %v5579_v6, 1 }
 0x103   : > { %679 = vst [vmem:[#allocation2 + $0x79] sm:$0xff] %v646_v7  ;;  %v649_v15 = vmax.f32 %v481_v8, 0.0  ;;  %v476_v16 = vadd.f32 %v5537_v23, %v475_v11  ;;  %4413 = vmatmul.mubr.f32.gmra.mxu1 %v5586_v10  ;;  %4495 = vmatprep.mubr.f32.mxu0 %v5589_v12  ;;  %v837_v17 = vrot.slane %v5589_v12, 1  ;;  %v838_v18 = vrot.slane %v5591_v13, 1 }
 0x104   : > { %v4346_v19 = vpop.f32.mrf.mxu0  ;;  %4496 = vmatmul.mubr.f32.gmra.mxu0 %v5591_v13  ;;  %v5600_v20 = vld [vmem:[#allocation2 + $0x70] sm:$0x3] }
 0x105   : > { %682 = vst [vmem:[#allocation2 + $0x99] sm:$0xff] %v649_v15  ;;  %v648_v24 = vmax.f32 %v476_v16, 0.0  ;;  %v491_v25 = vadd.f32 %v4346_v19, %v5537_v23  ;;  %v5604_v26 = vsel %vm821_vm0, %v837_v17, %v838_v18  ;;  %v5607_v27 = vsel %vm821_vm0, %v838_v18, %v840_v14 }
 0x106   : > { %v485_v28 = vpop.f32.mrf.mxu0  ;;  %4415 = vmatprep.mubr.f32.mxu1 %v5604_v26  ;;  %v5610_v29 = vld [vmem:[#allocation2 + $0x60] sm:$0xff]  ;;  %v5612_v30 = vld [vmem:[#allocation2 + $0x68] sm:$0xff]  ;;  %v845_v31 = vrot.slane %v5600_v20, 1 }
 0x107   : > { %681 = vst [vmem:[#allocation2 + $0x91] sm:$0xff] %v648_v24  ;;  %v651_v32 = vmax.f32 %v491_v25, 0.0  ;;  %v486_v33 = vadd.f32 %v5537_v23, %v485_v28  ;;  %4416 = vmatmul.mubr.f32.gmra.mxu1 %v5607_v27  ;;  %4498 = vmatprep.mubr.f32.mxu0 %v5610_v29  ;;  %v842_v34 = vrot.slane %v5610_v29, 1  ;;  %v843_v35 = vrot.slane %v5612_v30, 1 }
 0x108   : > { %v4349_v36 = vpop.f32.mrf.mxu0  ;;  %4499 = vmatmul.mubr.f32.gmra.mxu0 %v5612_v30  ;;  %v5621_v37 = vld [vmem:[#allocation2 + $0x88] sm:$0x3] }
 0x109   : > { %684 = vst [vmem:[#allocation2 + $0xb1] sm:$0xff] %v651_v32  ;;  %v650_v38 = vmax.f32 %v486_v33, 0.0  ;;  %v501_v40 = vadd.f32 %v4349_v36, %v5537_v23  ;;  %v5625_v41 = vsel %vm821_vm0, %v842_v34, %v843_v35  ;;  %v5628_v42 = vsel %vm821_vm0, %v843_v35, %v845_v31 }
 0x10a   : > { %7168 = vst [vmem:[#allocation3_spill] sm:$0xff] %v5628_v42  ;;  %v495_v44 = vpop.f32.mrf.mxu0  ;;  %4418 = vmatprep.mubr.f32.mxu1 %v5625_v41  ;;  %v5631_v45 = vld [vmem:[#allocation2 + $0x78] sm:$0xff]  ;;  %v5633_v46 = vld [vmem:[#allocation2 + $0x80] sm:$0xff]  ;;  %v850_v50 = vrot.slane %v5621_v37, 1 }
 0x10b   : > { %683 = vst [vmem:[#allocation2 + $0xa9] sm:$0xff] %v650_v38  ;;  %v653_v51 = vmax.f32 %v501_v40, 0.0  ;;  %v496_v52 = vadd.f32 %v5537_v23, %v495_v44  ;;  %4419 = vmatmul.mubr.f32.gmra.mxu1 %v5628_v42  ;;  %4501 = vmatprep.mubr.f32.mxu0 %v5631_v45  ;;  %v847_v53 = vrot.slane %v5631_v45, 1  ;;  %v848_v54 = vrot.slane %v5633_v46, 1 }
 0x10c   : > { %v4352_v55 = vpop.f32.mrf.mxu0  ;;  %4502 = vmatmul.mubr.f32.gmra.mxu0 %v5633_v46  ;;  %v5642_v57 = vld [vmem:[#allocation2 + $0xa0] sm:$0x3]  ;;  %v1405_v42 = vrot.slane %v5417_v49, 2  ;;  %v3758_v49 = vld [vmem:[%s7107_s4 + $0x2f0] sm:$0xff] }
 0x10d   : > { %686 = vst [vmem:[#allocation2 + $0xc9] sm:$0xff] %v653_v51  ;;  %v652_v58 = vmax.f32 %v496_v52, 0.0  ;;  %v511_v61 = vadd.f32 %v4352_v55, %v5537_v23  ;;  %v5646_v0 = vsel %vm821_vm0, %v847_v53, %v848_v54  ;;  %v5649_v1 = vsel %vm821_vm0, %v848_v54, %v850_v50 }
 0x10e   : > { %7169 = vst [vmem:[#allocation4_spill] sm:$0xff] %v5646_v0  ;;  %7170 = vst [vmem:[#allocation5_spill] sm:$0xff] %v5649_v1  ;;  %v505_v2 = vpop.f32.mrf.mxu0  ;;  %4421 = vmatprep.mubr.f32.mxu1 %v5646_v0  ;;  %v5652_v3 = vld [vmem:[#allocation2 + $0x90] sm:$0xff]  ;;  %v5654_v4 = vld [vmem:[#allocation2 + $0x98] sm:$0xff]  ;;  %v855_v5 = vrot.slane %v5642_v57, 1 }
 0x10f   : > { %685 = vst [vmem:[#allocation2 + $0xc1] sm:$0xff] %v652_v58  ;;  %v655_v7 = vmax.f32 %v511_v61, 0.0  ;;  %v506_v8 = vadd.f32 %v5537_v23, %v505_v2  ;;  %4422 = vmatmul.mubr.f32.gmra.mxu1 %v5649_v1  ;;  %4504 = vmatprep.mubr.f32.mxu0 %v5652_v3  ;;  %v852_v11 = vrot.slane %v5652_v3, 1  ;;  %v853_v14 = vrot.slane %v5654_v4, 1 }
 0x110   : > { %v4355_v15 = vpop.f32.mrf.mxu0  ;;  %4505 = vmatmul.mubr.f32.gmra.mxu0 %v5654_v4  ;;  %v5663_v16 = vld [vmem:[#allocation2 + $0xb8] sm:$0x3] }
 0x111   : > { %688 = vst [vmem:[#allocation2 + $0xe1] sm:$0xff] %v655_v7  ;;  %v654_v17 = vmax.f32 %v506_v8, 0.0  ;;  %v521_v18 = vadd.f32 %v4355_v15, %v5537_v23  ;;  %v5667_v19 = vsel %vm821_vm0, %v852_v11, %v853_v14  ;;  %v5670_v24 = vsel %vm821_vm0, %v853_v14, %v855_v5 }
 0x112   : > { %7171 = vst [vmem:[#allocation6_spill] sm:$0xff] %v5667_v19  ;;  %7172 = vst [vmem:[#allocation7_spill] sm:$0xff] %v5670_v24  ;;  %v515_v25 = vpop.f32.mrf.mxu0  ;;  %4424 = vmatprep.mubr.f32.mxu1 %v5667_v19  ;;  %v5673_v28 = vld [vmem:[#allocation2 + $0xa8] sm:$0xff]  ;;  %v5675_v31 = vld [vmem:[#allocation2 + $0xb0] sm:$0xff]  ;;  %v860_v32 = vrot.slane %v5663_v16, 1 }
 0x113   : > { %687 = vst [vmem:[#allocation2 + $0xd9] sm:$0xff] %v654_v17  ;;  %v657_v33 = vmax.f32 %v521_v18, 0.0  ;;  %v516_v34 = vadd.f32 %v5537_v23, %v515_v25  ;;  %4425 = vmatmul.mubr.f32.gmra.mxu1 %v5670_v24  ;;  %4507 = vmatprep.mubr.f32.mxu0 %v5673_v28  ;;  %v857_v35 = vrot.slane %v5673_v28, 1  ;;  %v858_v36 = vrot.slane %v5675_v31, 1 }
 0x114   : > { %v4358_v38 = vpop.f32.mrf.mxu0  ;;  %4508 = vmatmul.mubr.f32.gmra.mxu0 %v5675_v31  ;;  %v5684_v40 = vld [vmem:[#allocation2 + $0xd0] sm:$0x3] }
 0x115   : > { %690 = vst [vmem:[#allocation2 + $0xf9] sm:$0xff] %v657_v33  ;;  %v656_v44 = vmax.f32 %v516_v34, 0.0  ;;  %v531_v50 = vadd.f32 %v4358_v38, %v5537_v23  ;;  %v5688_v51 = vsel %vm821_vm0, %v857_v35, %v858_v36  ;;  %v5691_v52 = vsel %vm821_vm0, %v858_v36, %v860_v32 }
 0x116   : > { %7173 = vst [vmem:[#allocation8_spill] sm:$0xff] %v5688_v51  ;;  %7174 = vst [vmem:[#allocation9_spill] sm:$0xff] %v5691_v52  ;;  %v525_v53 = vpop.f32.mrf.mxu0  ;;  %4427 = vmatprep.mubr.f32.mxu1 %v5688_v51  ;;  %v5694_v54 = vld [vmem:[#allocation2 + $0xc0] sm:$0xff]  ;;  %v5696_v55 = vld [vmem:[#allocation2 + $0xc8] sm:$0xff]  ;;  %v865_v58 = vrot.slane %v5684_v40, 1 }
 0x117   : > { %689 = vst [vmem:[#allocation2 + $0xf1] sm:$0xff] %v656_v44  ;;  %v659_v61 = vmax.f32 %v531_v50, 0.0  ;;  %v526_v2 = vadd.f32 %v5537_v23, %v525_v53  ;;  %4428 = vmatmul.mubr.f32.gmra.mxu1 %v5691_v52  ;;  %4510 = vmatprep.mubr.f32.mxu0 %v5694_v54  ;;  %v862_v5 = vrot.slane %v5694_v54, 1  ;;  %v863_v7 = vrot.slane %v5696_v55, 1 }
 0x118   : > { %v4361_v8 = vpop.f32.mrf.mxu0  ;;  %4511 = vmatmul.mubr.f32.gmra.mxu0 %v5696_v55  ;;  %v5705_v11 = vld [vmem:[#allocation2 + $0xe8] sm:$0x3] }
 0x119   : > { %692 = vst [vmem:[#allocation2 + $0x111] sm:$0xff] %v659_v61  ;;  %v658_v14 = vmax.f32 %v526_v2, 0.0  ;;  %v541_v15 = vadd.f32 %v4361_v8, %v5537_v23  ;;  %v5709_v17 = vsel %vm821_vm0, %v862_v5, %v863_v7  ;;  %v5712_v18 = vsel %vm821_vm0, %v863_v7, %v865_v58 }
 0x11a   : > { %7175 = vst [vmem:[#allocation10_spill] sm:$0xff] %v5709_v17  ;;  %7176 = vst [vmem:[#allocation11_spill] sm:$0xff] %v5712_v18  ;;  %v535_v25 = vpop.f32.mrf.mxu0  ;;  %4430 = vmatprep.mubr.f32.mxu1 %v5709_v17  ;;  %v5715_v32 = vld [vmem:[#allocation2 + $0xd8] sm:$0xff]  ;;  %v5717_v33 = vld [vmem:[#allocation2 + $0xe0] sm:$0xff]  ;;  %v870_v34 = vrot.slane %v5705_v11, 1 }
 0x11b   : > { %691 = vst [vmem:[#allocation2 + $0x109] sm:$0xff] %v658_v14  ;;  %v661_v35 = vmax.f32 %v541_v15, 0.0  ;;  %v536_v36 = vadd.f32 %v5537_v23, %v535_v25  ;;  %4431 = vmatmul.mubr.f32.gmra.mxu1 %v5712_v18  ;;  %4513 = vmatprep.mubr.f32.mxu0 %v5715_v32  ;;  %v867_v38 = vrot.slane %v5715_v32, 1  ;;  %v868_v44 = vrot.slane %v5717_v33, 1 }
 0x11c   : > { %v4364_v50 = vpop.f32.mrf.mxu0  ;;  %4514 = vmatmul.mubr.f32.gmra.mxu0 %v5717_v33  ;;  %v5726_v53 = vld [vmem:[#allocation2 + $0x100] sm:$0x3] }
 0x11d   : > { %694 = vst [vmem:[#allocation2 + $0x129] sm:$0xff] %v661_v35  ;;  %v660_v58 = vmax.f32 %v536_v36, 0.0  ;;  %v551_v61 = vadd.f32 %v4364_v50, %v5537_v23  ;;  %v5730_v2 = vsel %vm821_vm0, %v867_v38, %v868_v44  ;;  %v5733_v5 = vsel %vm821_vm0, %v868_v44, %v870_v34 }
 0x11e   : > { %7177 = vst [vmem:[#allocation12_spill] sm:$0xff] %v5730_v2  ;;  %7178 = vst [vmem:[#allocation13_spill] sm:$0xff] %v5733_v5  ;;  %v545_v7 = vpop.f32.mrf.mxu0  ;;  %4433 = vmatprep.mubr.f32.mxu1 %v5730_v2  ;;  %v5736_v8 = vld [vmem:[#allocation2 + $0xf0] sm:$0xff]  ;;  %v5738_v14 = vld [vmem:[#allocation2 + $0xf8] sm:$0xff]  ;;  %v875_v15 = vrot.slane %v5726_v53, 1 }
 0x11f   : > { %693 = vst [vmem:[#allocation2 + $0x121] sm:$0xff] %v660_v58  ;;  %v663_v25 = vmax.f32 %v551_v61, 0.0  ;;  %v546_v35 = vadd.f32 %v5537_v23, %v545_v7  ;;  %4434 = vmatmul.mubr.f32.gmra.mxu1 %v5733_v5  ;;  %4516 = vmatprep.mubr.f32.mxu0 %v5736_v8  ;;  %v872_v34 = vrot.slane %v5736_v8, 1  ;;  %v873_v36 = vrot.slane %v5738_v14, 1 }
 0x120   : > { %v4367_v38 = vpop.f32.mrf.mxu0  ;;  %4517 = vmatmul.mubr.f32.gmra.mxu0 %v5738_v14  ;;  %v5747_v44 = vld [vmem:[#allocation2 + $0x118] sm:$0x3] }
 0x121   : > { %696 = vst [vmem:[#allocation2 + $0x141] sm:$0xff] %v663_v25  ;;  %v662_v50 = vmax.f32 %v546_v35, 0.0  ;;  %v561_v58 = vadd.f32 %v4367_v38, %v5537_v23  ;;  %v5751_v61 = vsel %vm821_vm0, %v872_v34, %v873_v36  ;;  %v5754_v7 = vsel %vm821_vm0, %v873_v36, %v875_v15 }
 0x122   : > { %7179 = vst [vmem:[#allocation14_spill] sm:$0xff] %v5751_v61  ;;  %7180 = vst [vmem:[#allocation15_spill] sm:$0xff] %v5754_v7  ;;  %v555_v39 = vpop.f32.mrf.mxu0  ;;  %4436 = vmatprep.mubr.f32.mxu1 %v5751_v61  ;;  %v5757_v5 = vld [vmem:[#allocation2 + $0x108] sm:$0xff]  ;;  %v5759_v2 = vld [vmem:[#allocation2 + $0x110] sm:$0xff]  ;;  %v880_v18 = vrot.slane %v5747_v44, 1 }
 0x123   : > { %695 = vst [vmem:[#allocation2 + $0x139] sm:$0xff] %v662_v50  ;;  %v665_v25 = vmax.f32 %v561_v58, 0.0  ;;  %v556_v35 = vadd.f32 %v5537_v23, %v555_v39  ;;  %4437 = vmatmul.mubr.f32.gmra.mxu1 %v5754_v7  ;;  %4519 = vmatprep.mubr.f32.mxu0 %v5757_v5  ;;  %v877_v15 = vrot.slane %v5757_v5, 1  ;;  %v878_v34 = vrot.slane %v5759_v2, 1 }
 0x124   : > { %v4370_v36 = vpop.f32.mrf.mxu0  ;;  %4520 = vmatmul.mubr.f32.gmra.mxu0 %v5759_v2  ;;  %v5768_v38 = vld [vmem:[#allocation2 + $0x130] sm:$0x3] }
 0x125   : > { %698 = vst [vmem:[#allocation2 + $0x159] sm:$0xff] %v665_v25  ;;  %v664_v61 = vmax.f32 %v556_v35, 0.0  ;;  %v571_v50 = vadd.f32 %v4370_v36, %v5537_v23  ;;  %v5772_v58 = vsel %vm821_vm0, %v877_v15, %v878_v34  ;;  %v5775_v39 = vsel %vm821_vm0, %v878_v34, %v880_v18 }
 0x126   : > { %7181 = vst [vmem:[#allocation16_spill] sm:$0xff] %v5772_v58  ;;  %7182 = vst [vmem:[#allocation17_spill] sm:$0xff] %v5775_v39  ;;  %v565_v7 = vpop.f32.mrf.mxu0  ;;  %4439 = vmatprep.mubr.f32.mxu1 %v5772_v58  ;;  %v5778_v17 = vld [vmem:[#allocation2 + $0x120] sm:$0xff]  ;;  %v5780_v52 = vld [vmem:[#allocation2 + $0x128] sm:$0xff]  ;;  %v885_v51 = vrot.slane %v5768_v38, 1 }
 0x127   : > { %697 = vst [vmem:[#allocation2 + $0x151] sm:$0xff] %v664_v61  ;;  %v667_v25 = vmax.f32 %v571_v50, 0.0  ;;  %v566_v35 = vadd.f32 %v5537_v23, %v565_v7  ;;  %4440 = vmatmul.mubr.f32.gmra.mxu1 %v5775_v39  ;;  %4522 = vmatprep.mubr.f32.mxu0 %v5778_v17  ;;  %v882_v18 = vrot.slane %v5778_v17, 1  ;;  %v883_v15 = vrot.slane %v5780_v52, 1 }
 0x128   : > { %4523 = vmatmul.mubr.f32.gmra.mxu0 %v5780_v52  ;;  %v5789_v34 = vld [vmem:[#allocation2 + $0x148] sm:$0x3]  ;;  %v4373_v36 = vpop.f32.mrf.mxu0 }
 0x129   : > { %700 = vst [vmem:[#allocation2 + $0x171] sm:$0xff] %v667_v25  ;;  %v666_v58 = vmax.f32 %v566_v35, 0.0  ;;  %v5792_v61 = vsel %vm821_vm0, %v882_v18, %v883_v15  ;;  %v5795_v7 = vsel %vm821_vm0, %v883_v15, %v885_v51  ;;  %v581_v24 = vadd.f32 %v4373_v36, %v5537_v23 }
 0x12a   : > { %7183 = vst [vmem:[#allocation18_spill] sm:$0xff] %v5792_v61  ;;  %7184 = vst [vmem:[#allocation19_spill] sm:$0xff] %v5795_v7  ;;  %4442 = vmatprep.mubr.f32.mxu1 %v5792_v61  ;;  %v5798_v50 = vld [vmem:[#allocation2 + $0x138] sm:$0xff]  ;;  %v5800_v39 = vld [vmem:[#allocation2 + $0x140] sm:$0xff]  ;;  %v575_v19 = vpop.f32.mrf.mxu0  ;;  %v890_v51 = vrot.slane %v5789_v34, 1 }
 0x12b   : > { %699 = vst [vmem:[#allocation2 + $0x169] sm:$0xff] %v666_v58  ;;  %4443 = vmatmul.mubr.f32.gmra.mxu1 %v5795_v7  ;;  %4525 = vmatprep.mubr.f32.mxu0 %v5798_v50  ;;  %v887_v25 = vrot.slane %v5798_v50, 1  ;;  %v888_v35 = vrot.slane %v5800_v39, 1  ;;  %v576_v18 = vadd.f32 %v5537_v23, %v575_v19  ;;  %v669_v61 = vmax.f32 %v581_v24, 0.0 }
 0x12c   : > { %4526 = vmatmul.mubr.f32.gmra.mxu0 %v5800_v39  ;;  %v5810_v15 = vld [vmem:[#allocation2 + $0x160] sm:$0x3] }
 0x12d   : > { %v5813_v36 = vsel %vm821_vm0, %v887_v25, %v888_v35  ;;  %v5816_v58 = vsel %vm821_vm0, %v888_v35, %v890_v51  ;;  %v668_v7 = vmax.f32 %v576_v18, 0.0  ;;  %702 = vst [vmem:[#allocation2 + $0x189] sm:$0xff] %v669_v61  ;;  %v895_v24 = vrot.slane %v5810_v15, 1 }
 0x12e   : > { %7185 = vst [vmem:[#allocation20_spill] sm:$0xff] %v5813_v36  ;;  %7186 = vst [vmem:[#allocation21_spill] sm:$0xff] %v5816_v58  ;;  %4445 = vmatprep.mubr.f32.mxu1 %v5813_v36  ;;  %v5819_v1 = vld [vmem:[#allocation2 + $0x150] sm:$0xff]  ;;  %v5821_v0 = vld [vmem:[#allocation2 + $0x158] sm:$0xff]  ;;  %v7187_v35 = vmov 0.0  }
 0x12f   : > { %4446 = vmatmul.mubr.f32.gmra.mxu1 %v5816_v58  ;;  %4528 = vmatprep.mubr.f32.mxu0 %v5819_v1  ;;  %v892_v23 = vrot.slane %v5819_v1, 1  ;;  %v893_v19 = vrot.slane %v5821_v0, 1  ;;  %701 = vst [vmem:[#allocation2 + $0x181] sm:$0xff] %v668_v7  ;;  %v1402_v51 = vrot.slane %v7187_v35, 2 }
 0x130   : > { %4529 = vmatmul.mubr.f32.gmra.mxu0 %v5821_v0  ;;  %v5829_v25 = vld [vmem:[#allocation2 + $0x178] sm:$0x3] }
 0x131   : > { %v5833_v18 = vsel %vm821_vm0, %v892_v23, %v893_v19  ;;  %v5836_v61 = vsel %vm821_vm0, %v893_v19, %v895_v24  ;;  %v900_v23 = vrot.slane %v5829_v25, 1 }
 0x132   : > { %7188 = vst [vmem:[#allocation22_spill] sm:$0xff] %v5833_v18  ;;  %7189 = vst [vmem:[#allocation23_spill] sm:$0xff] %v5836_v61  ;;  %4448 = vmatprep.mubr.f32.mxu1 %v5833_v18  ;;  %v5839_v58 = vld [vmem:[#allocation2 + $0x168] sm:$0xff]  ;;  %v5841_v36 = vld [vmem:[#allocation2 + $0x170] sm:$0xff]  ;;  %v1408_v18 = vrot.slane %v5550_v48, 2 }
 0x133   : > { %4449 = vmatmul.mubr.f32.gmra.mxu1 %v5836_v61  ;;  %4531 = vmatprep.mubr.f32.mxu0 %v5839_v58  ;;  %v897_v7 = vrot.slane %v5839_v58, 1  ;;  %v898_v35 = vrot.slane %v5841_v36, 1  ;;  %v1407_v61 = vrot.slane %v5548_v47, 2 }
 0x134   : > { %4532 = vmatmul.mubr.f32.gmra.mxu0 %v5841_v36 }
 0x135   : > { %4646 = vmatprep.mubr.f32.mxu0 %v5548_v47  ;;  %v5852_v19 = vsel %vm821_vm0, %v897_v7, %v898_v35  ;;  %v5855_v24 = vsel %vm821_vm0, %v898_v35, %v900_v23  ;;  %v1406_v7 = vsel %vm1401_vm1, %v1402_v51, %v1405_v42  ;;  %v3742_v35 = vld [vmem:[%s7107_s4 + $0x270] sm:$0xff]  ;;  %v4488_v47 = vpop.f32.mrf.mxu0  ;;  %v4408_v23 = vpop.f32.mrf.mxu1 }
 0x136   : > { %7190 = vst [vmem:[#allocation24_spill] sm:$0xff] %v5852_v19  ;;  %7191 = vst [vmem:[#allocation25_spill] sm:$0xff] %v5855_v24  ;;  %4451 = vmatprep.mubr.f32.mxu1 %v5852_v19  ;;  %v1413_v19 = vrot.slane %v5570_v63, 2  ;;  %v5876_v42 = vadd.f32 %v4488_v47, %v4408_v23  ;;  %v3737_v47 = vld [vmem:[%s7107_s4 + $0x248] sm:$0xff] }
 0x137   : > { %4452 = vmatmul.mubr.f32.gmra.mxu1 %v5855_v24  ;;  %v5872_v24 = vsel %vm1401_vm1, %v1407_v61, %v1408_v18  ;;  %v1417_v61 = vrot.slane %v5589_v12, 2 }
 0x138   : > { %4647 = vmatmul.mubr.f32.vlgmr.msra.gmra.mxu0 %v5550_v48  ;;  %4566 = vmatprep.mubr.f32.mxu1 %v1402_v51  ;;  %v1412_v48 = vrot.slane %v5568_v62, 2  ;;  %v3741_v51 = vld [vmem:[%s7107_s4 + $0x268] sm:$0xff] }
 0x139   : > { %4649 = vmatprep.mubr.f32.mxu0 %v5568_v62  ;;  %4775 = vmatpush3.msra.mxu0 %v5531_v22  ;;  %v1410_v22 = vrot.slane %v5545_v43, 2 }
 0x13a   : > { %4776 = vmatprep.subr.mxu0 %v3758_v49  ;;  %v5894_v43 = vsel %vm1401_vm1, %v1412_v48, %v1413_v19  ;;  %v1427_v48 = vrot.slane %v5631_v45, 2 }
 0x13b   : > { %4567 = vmatmul.mubr.f32.vlgmr.msra.gmra.mxu1 %v1406_v7  ;;  %4777 = vmatpush3.msra.mxu0 %v3758_v49  ;;  %v5887_v62 = vsel %vm1401_vm1, %v1408_v18, %v1410_v22  ;;  %v1415_v18 = vrot.slane %v5558_v56, 2  ;;  %v3739_v49 = vld [vmem:[%s7107_s4 + $0x258] sm:$0xff]  ;;  %v1425_v22 = vrot.slane %v5600_v20, 2 }
 0x13c   : > { %4695 = vmatpush3.msra.mxu1 %v5525_v21  ;;  %4569 = vmatprep.mubr.f32.mxu1 %v5872_v24  ;;  %v3740_v21 = vld [vmem:[%s7107_s4 + $0x260] sm:$0xff] }
 0x13d   : > { %4650 = vmatmul.mubr.f32.gmra.mxu0 %v5570_v63  ;;  %4696 = vmatprep.subr.mxu1 %v3742_v35  ;;  %v1418_v63 = vrot.slane %v5591_v13, 2  ;;  %v5906_v7 = vsel %vm1401_vm1, %v1413_v19, %v1415_v18  ;;  %v1420_v19 = vrot.slane %v5579_v6, 2  ;;  %v3734_v18 = vld [vmem:[%s7107_s4 + $0x230] sm:$0xff] }
 0x13e   : > { %4652 = vmatprep.mubr.f32.mxu0 %v5589_v12  ;;  %4697 = vmatpush3.msra.mxu1 %v3742_v35  ;;  %v3738_v12 = vld [vmem:[%s7107_s4 + $0x250] sm:$0xff]  ;;  %v1422_v35 = vrot.slane %v5610_v29, 2 }
 0x13f   : > { %4570 = vmatmul.mubr.f32.gmra.mxu1 %v5887_v62  ;;  %4698 = vmatprep.subr.mxu1 %v3741_v51  ;;  %v5913_v56 = vsel %vm1401_vm1, %v1417_v61, %v1418_v63  ;;  %v5925_v23 = vsel %vm1401_vm1, %v1418_v63, %v1420_v19  ;;  %v1432_v61 = vrot.slane %v5652_v3, 2  ;;  %v1430_v63 = vrot.slane %v5621_v37, 2 }
 0x140   : > { %4572 = vmatprep.mubr.f32.mxu1 %v5894_v43  ;;  %4699 = vmatpush3.msra.mxu1 %v3741_v51  ;;  %v3735_v51 = vld [vmem:[%s7107_s4 + $0x238] sm:$0xff] }
 0x141   : > { %4653 = vmatmul.mubr.f32.gmra.mxu0 %v5591_v13  ;;  %4700 = vmatprep.subr.mxu1 %v3740_v21  ;;  %v1423_v13 = vrot.slane %v5612_v30, 2 }
 0x142   : > { %4655 = vmatprep.mubr.f32.mxu0 %v5610_v29  ;;  %4701 = vmatpush3.msra.mxu1 %v3740_v21  ;;  %v3736_v29 = vld [vmem:[%s7107_s4 + $0x240] sm:$0xff] }
 0x143   : > { %4573 = vmatmul.mubr.f32.gmra.mxu1 %v5906_v7  ;;  %4702 = vmatprep.subr.mxu1 %v3739_v49  ;;  %v5932_v6 = vsel %vm1401_vm1, %v1422_v35, %v1423_v13  ;;  %v5944_v21 = vsel %vm1401_vm1, %v1423_v13, %v1425_v22  ;;  %v1435_v35 = vrot.slane %v5642_v57, 2  ;;  %v3755_v13 = vld [vmem:[%s7107_s4 + $0x2d8] sm:$0xff] }
 0x144   : > { %4575 = vmatprep.mubr.f32.mxu1 %v5913_v56  ;;  %4703 = vmatpush3.msra.mxu1 %v3739_v49  ;;  %v3756_v49 = vld [vmem:[%s7107_s4 + $0x2e0] sm:$0xff] }
 0x145   : > { %4656 = vmatmul.mubr.f32.gmra.mxu0 %v5612_v30  ;;  %4704 = vmatprep.subr.mxu1 %v3738_v12  ;;  %v1428_v30 = vrot.slane %v5633_v46, 2 }
 0x146   : > { %4658 = vmatprep.mubr.f32.mxu0 %v5631_v45  ;;  %4705 = vmatpush3.msra.mxu1 %v3738_v12  ;;  %v3757_v45 = vld [vmem:[%s7107_s4 + $0x2e8] sm:$0xff]  ;;  %v1437_v12 = vrot.slane %v5673_v28, 2 }
 0x147   : > { %4576 = vmatmul.mubr.f32.gmra.mxu1 %v5925_v23  ;;  %4706 = vmatprep.subr.mxu1 %v3737_v47  ;;  %v5951_v20 = vsel %vm1401_vm1, %v1427_v48, %v1428_v30  ;;  %v1440_v48 = vrot.slane %v5663_v16, 2  ;;  %v1447_v16 = vrot.slane %v5715_v32, 2 }
 0x148   : > { %4578 = vmatprep.mubr.f32.mxu1 %v5932_v6  ;;  %4707 = vmatpush3.msra.mxu1 %v3737_v47  ;;  %v1442_v47 = vrot.slane %v5694_v54, 2 }
 0x149   : > { %4659 = vmatmul.mubr.f32.gmra.mxu0 %v5633_v46  ;;  %4708 = vmatprep.subr.mxu1 %v3736_v29  ;;  %v1433_v46 = vrot.slane %v5654_v4, 2 }
 0x14a   : > { %4661 = vmatprep.mubr.f32.mxu0 %v5652_v3  ;;  %4709 = vmatpush3.msra.mxu1 %v3736_v29  ;;  %v5966_v3 = vsel %vm1401_vm1, %v1428_v30, %v1430_v63  ;;  %v3754_v29 = vld [vmem:[%s7107_s4 + $0x2d0] sm:$0xff]  ;;  %v1450_v63 = vrot.slane %v5705_v11, 2 }
 0x14b   : > { %4579 = vmatmul.mubr.f32.gmra.mxu1 %v5944_v21  ;;  %4710 = vmatprep.subr.mxu1 %v3735_v51  ;;  %v5970_v37 = vsel %vm1401_vm1, %v1432_v61, %v1433_v46  ;;  %v5982_v19 = vsel %vm1401_vm1, %v1433_v46, %v1435_v35  ;;  %v3752_v61 = vld [vmem:[%s7107_s4 + $0x2c0] sm:$0xff]  ;;  %v1452_v46 = vrot.slane %v5736_v8, 2  ;;  %v1455_v35 = vrot.slane %v5726_v53, 2 }
 0x14c   : > { %4581 = vmatprep.mubr.f32.mxu1 %v5951_v20  ;;  %4711 = vmatpush3.msra.mxu1 %v3735_v51  ;;  %v1445_v51 = vrot.slane %v5684_v40, 2  ;;  %v1462_v53 = vrot.slane %v5778_v17, 2 }
 0x14d   : > { %4662 = vmatmul.mubr.f32.gmra.mxu0 %v5654_v4  ;;  %4778 = vmatprep.subr.mxu0 %v3757_v45  ;;  %v1438_v4 = vrot.slane %v5675_v31, 2 }
 0x14e   : > { %4664 = vmatprep.mubr.f32.mxu0 %v5673_v28  ;;  %4779 = vmatpush3.msra.mxu0 %v3757_v45  ;;  %v3733_v28 = vld [vmem:[%s7107_s4 + $0x228] sm:$0xff]  ;;  %v3732_v45 = vld [vmem:[%s7107_s4 + $0x220] sm:$0xff] }
 0x14f   : > { %4582 = vmatmul.mubr.f32.gmra.mxu1 %v5966_v3  ;;  %4712 = vmatprep.subr.mxu1 %v3734_v18  ;;  %v5989_v57 = vsel %vm1401_vm1, %v1437_v12, %v1438_v4  ;;  %v6001_v30 = vsel %vm1401_vm1, %v1438_v4, %v1440_v48  ;;  %v1457_v12 = vrot.slane %v5757_v5, 2  ;;  %v3750_v4 = vld [vmem:[%s7107_s4 + $0x2b0] sm:$0xff]  ;;  %v1467_v48 = vrot.slane %v5798_v50, 2 }
 0x150   : > { %4584 = vmatprep.mubr.f32.mxu1 %v5970_v37  ;;  %4780 = vmatprep.subr.mxu0 %v3756_v49 }
 0x151   : > { %4665 = vmatmul.mubr.f32.gmra.mxu0 %v5675_v31  ;;  %4713 = vmatpush3.msra.mxu1 %v3734_v18  ;;  %v1443_v31 = vrot.slane %v5696_v55, 2  ;;  %v3751_v18 = vld [vmem:[%s7107_s4 + $0x2b8] sm:$0xff] }
 0x152   : > { %4667 = vmatprep.mubr.f32.mxu0 %v5694_v54  ;;  %4781 = vmatpush3.msra.mxu0 %v3756_v49  ;;  %v3753_v54 = vld [vmem:[%s7107_s4 + $0x2c8] sm:$0xff] }
 0x153   : > { %4585 = vmatmul.mubr.f32.gmra.mxu1 %v5982_v19  ;;  %4782 = vmatprep.subr.mxu0 %v3755_v13  ;;  %v6008_v22 = vsel %vm1401_vm1, %v1442_v47, %v1443_v31  ;;  %v1460_v47 = vrot.slane %v5747_v44, 2 }
 0x154   : > { %4587 = vmatprep.mubr.f32.mxu1 %v5989_v57  ;;  %4783 = vmatpush3.msra.mxu0 %v3755_v13 }
 0x155   : > { %4668 = vmatmul.mubr.f32.gmra.mxu0 %v5696_v55  ;;  %4714 = vmatprep.subr.mxu1 %v3733_v28  ;;  %v1448_v55 = vrot.slane %v5717_v33, 2 }
 0x156   : > { %4670 = vmatprep.mubr.f32.mxu0 %v5715_v32  ;;  %4784 = vmatprep.subr.mxu0 %v3754_v29  ;;  %v6023_v32 = vsel %vm1401_vm1, %v1443_v31, %v1445_v51  ;;  %v3730_v31 = vld [vmem:[%s7107_s4 + $0x210] sm:$0xff]  ;;  %v1472_v51 = vrot.slane %v5819_v1, 2 }
 0x157   : > { %4588 = vmatmul.mubr.f32.gmra.mxu1 %v6001_v30  ;;  %4785 = vmatpush3.msra.mxu0 %v3754_v29  ;;  %v6027_v40 = vsel %vm1401_vm1, %v1447_v16, %v1448_v55  ;;  %v6039_v49 = vsel %vm1401_vm1, %v1448_v55, %v1450_v63  ;;  %v3748_v29 = vld [vmem:[%s7107_s4 + $0x2a0] sm:$0xff]  ;;  %v3747_v16 = vld [vmem:[%s7107_s4 + $0x298] sm:$0xff]  ;;  %v1478_v63 = vrot.slane %v5841_v36, 2 }
 0x158   : > { %4590 = vmatprep.mubr.f32.mxu1 %v6008_v22  ;;  %4715 = vmatpush3.msra.mxu1 %v3733_v28 }
 0x159   : > { %4671 = vmatmul.mubr.f32.gmra.mxu0 %v5717_v33  ;;  %4786 = vmatprep.subr.mxu0 %v3753_v54  ;;  %v1453_v33 = vrot.slane %v5738_v14, 2 }
 0x15a   : > { %4673 = vmatprep.mubr.f32.mxu0 %v5736_v8  ;;  %4787 = vmatpush3.msra.mxu0 %v3753_v54  ;;  %v3731_v8 = vld [vmem:[%s7107_s4 + $0x218] sm:$0xff]  ;;  %v1465_v54 = vrot.slane %v5768_v38, 2 }
 0x15b   : > { %4591 = vmatmul.mubr.f32.gmra.mxu1 %v6023_v32  ;;  %4716 = vmatprep.subr.mxu1 %v3732_v45  ;;  %v6046_v11 = vsel %vm1401_vm1, %v1452_v46, %v1453_v33  ;;  %v6058_v13 = vsel %vm1401_vm1, %v1453_v33, %v1455_v35  ;;  %v3791_v35 = vld [vmem:[%s7107_s4 + $0x3f8] sm:$0xff] }
 0x15c   : > { %4593 = vmatprep.mubr.f32.mxu1 %v6027_v40  ;;  %4788 = vmatprep.subr.mxu0 %v3752_v61 }
 0x15d   : > { %4674 = vmatmul.mubr.f32.gmra.mxu0 %v5738_v14  ;;  %4717 = vmatpush3.msra.mxu1 %v3732_v45  ;;  %v1458_v14 = vrot.slane %v5759_v2, 2  ;;  %v3746_v45 = vld [vmem:[%s7107_s4 + $0x290] sm:$0xff] }
 0x15e   : > { %4676 = vmatprep.mubr.f32.mxu0 %v5757_v5  ;;  %4789 = vmatpush3.msra.mxu0 %v3752_v61  ;;  %v3749_v5 = vld [vmem:[%s7107_s4 + $0x2a8] sm:$0xff]  ;;  %v1470_v61 = vrot.slane %v5789_v34, 2  ;;  %v6124_v34 = vld [vmem:[#allocation2 + $0x180] sm:$0xff] }
 0x15f   : > { %4594 = vmatmul.mubr.f32.gmra.mxu1 %v6039_v49  ;;  %4790 = vmatprep.subr.mxu0 %v3751_v18  ;;  %v6065_v28 = vsel %vm1401_vm1, %v1457_v12, %v1458_v14  ;;  %v3744_v12 = vld [vmem:[%s7107_s4 + $0x280] sm:$0xff] }
 0x160   : > { %4596 = vmatprep.mubr.f32.mxu1 %v6046_v11  ;;  %4791 = vmatpush3.msra.mxu0 %v3751_v18  ;;  %v1475_v18 = vrot.slane %v5810_v15, 2 }
 0x161   : > { %4677 = vmatmul.mubr.f32.gmra.mxu0 %v5759_v2  ;;  %4718 = vmatprep.subr.mxu1 %v3731_v8  ;;  %v1463_v2 = vrot.slane %v5780_v52, 2 }
 0x162   : > { %4679 = vmatprep.mubr.f32.mxu0 %v5778_v17  ;;  %4792 = vmatprep.subr.mxu0 %v3750_v4  ;;  %v6080_v17 = vsel %vm1401_vm1, %v1458_v14, %v1460_v47  ;;  %v6141_v14 = vld [vmem:[#allocation2 + $0x188] sm:$0xff]  ;;  %v3768_v47 = vld [vmem:[%s7107_s4 + $0x340] sm:$0xff] }
 0x163   : > { %4597 = vmatmul.mubr.f32.gmra.mxu1 %v6058_v13  ;;  %4793 = vmatpush3.msra.mxu0 %v3750_v4  ;;  %7192 = vst [vmem:[#allocation26_spill] sm:$0xff] %v6080_v17  ;;  %v6084_v44 = vsel %vm1401_vm1, %v1462_v53, %v1463_v2  ;;  %v6096_v55 = vsel %vm1401_vm1, %v1463_v2, %v1465_v54  ;;  %v3775_v4 = vld [vmem:[%s7107_s4 + $0x378] sm:$0xff]  ;;  %v3770_v53 = vld [vmem:[%s7107_s4 + $0x350] sm:$0xff]  ;;  %v3769_v2 = vld [vmem:[%s7107_s4 + $0x348] sm:$0xff] }
 0x164   : > { %4599 = vmatprep.mubr.f32.mxu1 %v6065_v28  ;;  %4719 = vmatpush3.msra.mxu1 %v3731_v8  ;;  %7193 = vst [vmem:[#allocation27_spill] sm:$0xff] %v6084_v44  ;;  %7194 = vst [vmem:[#allocation28_spill] sm:$0xff] %v6096_v55  ;;  %v3728_v8 = vld [vmem:[%s7107_s4 + $0x200] sm:$0xff] }
 0x165   : > { %4680 = vmatmul.mubr.f32.gmra.mxu0 %v5780_v52  ;;  %4794 = vmatprep.subr.mxu0 %v3749_v5  ;;  %v1468_v52 = vrot.slane %v5800_v39, 2  ;;  %v7203_v54 = vld [vmem:[#allocation5_spill] sm:$0xff] }
 0x166   : > { %4682 = vmatprep.mubr.f32.mxu0 %v5798_v50  ;;  %4795 = vmatpush3.msra.mxu0 %v3749_v5  ;;  %v3729_v50 = vld [vmem:[%s7107_s4 + $0x208] sm:$0xff] }
 0x167   : > { %4600 = vmatmul.mubr.f32.gmra.mxu1 %v6080_v17  ;;  %4720 = vmatprep.subr.mxu1 %v3730_v31  ;;  %v6103_v38 = vsel %vm1401_vm1, %v1467_v48, %v1468_v52  ;;  %v6115_v46 = vsel %vm1401_vm1, %v1468_v52, %v1470_v61  ;;  %v3767_v48 = vld [vmem:[%s7107_s4 + $0x338] sm:$0xff]  ;;  %v3766_v52 = vld [vmem:[%s7107_s4 + $0x330] sm:$0xff] }
 0x168   : > { %4602 = vmatprep.mubr.f32.mxu1 %v6084_v44  ;;  %4796 = vmatprep.subr.mxu0 %v3748_v29  ;;  %7195 = vst [vmem:[#allocation29_spill] sm:$0xff] %v6103_v38  ;;  %7196 = vst [vmem:[#allocation30_spill] sm:$0xff] %v6115_v46  ;;  %v3787_v61 = vld [vmem:[%s7107_s4 + $0x3d8] sm:$0xff] }
 0x169   : > { %4683 = vmatmul.mubr.f32.gmra.mxu0 %v5800_v39  ;;  %4721 = vmatpush3.msra.mxu1 %v3730_v31  ;;  %v1473_v39 = vrot.slane %v5821_v0, 2  ;;  %v7201_v31 = vld [vmem:[#allocation3_spill] sm:$0xff] }
 0x16a   : > { %4685 = vmatprep.mubr.f32.mxu0 %v5819_v1  ;;  %4797 = vmatpush3.msra.mxu0 %v3748_v29  ;;  %v3745_v1 = vld [vmem:[%s7107_s4 + $0x288] sm:$0xff]  ;;  %v7202_v29 = vld [vmem:[#allocation4_spill] sm:$0xff] }
 0x16b   : > { %4603 = vmatmul.mubr.f32.gmra.mxu1 %v6096_v55  ;;  %4798 = vmatprep.subr.mxu0 %v3747_v16  ;;  %v6122_v33 = vsel %vm1401_vm1, %v1472_v51, %v1473_v39  ;;  %v3788_v51 = vld [vmem:[%s7107_s4 + $0x3e0] sm:$0xff] }
 0x16c   : > { %4605 = vmatprep.mubr.f32.mxu1 %v6103_v38  ;;  %4799 = vmatpush3.msra.mxu0 %v3747_v16  ;;  %7197 = vst [vmem:[#allocation31_spill] sm:$0xff] %v6122_v33  ;;  %v7204_v16 = vld [vmem:[#allocation6_spill] sm:$0xff] }
 0x16d   : > { %4686 = vmatmul.mubr.f32.gmra.mxu0 %v5821_v0  ;;  %4722 = vmatprep.subr.mxu1 %v3729_v50  ;;  %v1477_v0 = vrot.slane %v5839_v58, 2 }
 0x16e   : > { %4688 = vmatprep.mubr.f32.mxu0 %v5839_v58  ;;  %4800 = vmatprep.subr.mxu0 %v3746_v45  ;;  %v6138_v58 = vsel %vm1401_vm1, %v1473_v39, %v1475_v18  ;;  %v7205_v39 = vld [vmem:[#allocation7_spill] sm:$0xff] }
 0x16f   : > { %4606 = vmatmul.mubr.f32.gmra.mxu1 %v6115_v46  ;;  %4801 = vmatpush3.msra.mxu0 %v3746_v45  ;;  %7198 = vst [vmem:[#allocation32_spill] sm:$0xff] %v6138_v58  ;;  %v6145_v15 = vsel %vm1401_vm1, %v1477_v0, %v1478_v63  ;;  %v7206_v45 = vld [vmem:[#allocation8_spill] sm:$0xff]  ;;  %v7207_v0 = vld [vmem:[#allocation9_spill] sm:$0xff]  ;;  %v3786_v18 = vld [vmem:[%s7107_s4 + $0x3d0] sm:$0xff] }
 0x170   : > { %4608 = vmatprep.mubr.f32.mxu1 %v6122_v33  ;;  %4723 = vmatpush3.msra.mxu1 %v3729_v50  ;;  %7199 = vst [vmem:[#allocation33_spill] sm:$0xff] %v6145_v15  ;;  %v3789_v50 = vld [vmem:[%s7107_s4 + $0x3e8] sm:$0xff] }
 0x171   : > { %4689 = vmatmul.mubr.f32.gmra.mxu0 %v5841_v36  ;;  %4802 = vmatprep.subr.mxu0 %v3745_v1  ;;  %v1480_v36 = vrot.slane %v5829_v25, 2  ;;  %v3790_v25 = vld [vmem:[%s7107_s4 + $0x3f0] sm:$0xff] }
 0x172   : > { %4691 = vmatprep.mubr.f32.mxu0 %v6124_v34  ;;  %4803 = vmatpush3.msra.mxu0 %v3745_v1  ;;  %v3765_v1 = vld [vmem:[%s7107_s4 + $0x328] sm:$0xff] }
 0x173   : > { %4609 = vmatmul.mubr.f32.gmra.mxu1 %v6138_v58  ;;  %4724 = vmatprep.subr.mxu1 %v3728_v8  ;;  %v6158_v5 = vsel %vm1401_vm1, %v1478_v63, %v1480_v36  ;;  %v7208_v63 = vld [vmem:[#allocation10_spill] sm:$0xff]  ;;  %v7210_v36 = vld [vmem:[#allocation12_spill] sm:$0xff] }
 0x174   : > { %4611 = vmatprep.mubr.f32.mxu1 %v6145_v15  ;;  %4804 = vmatprep.subr.mxu0 %v3744_v12  ;;  %7200 = vst [vmem:[#allocation34_spill] sm:$0xff] %v6158_v5 }
 0x175   : > { %4692 = vmatmul.mubr.f32.gmra.mxu0 %v6141_v14  ;;  %4725 = vmatpush3.msra.mxu1 %v3728_v8  ;;  %v3764_v8 = vld [vmem:[%s7107_s4 + $0x320] sm:$0xff] }
 0x176   : > { %4806 = vmatprep.mubr.f32.mxu0 %v5872_v24  ;;  %4805 = vmatpush3.msra.mxu0 %v3744_v12  ;;  %v3774_v24 = vld [vmem:[%s7107_s4 + $0x370] sm:$0xff] }
 0x177   : > { %4612 = vmatmul.mubr.f32.gmra.mxu1 %v6158_v5  ;;  %4854 = vmatprep.subr.mxu1 %v3775_v4  ;;  %v7209_v12 = vld [vmem:[#allocation11_spill] sm:$0xff] }
 0x178   : > { %4726 = vmatprep.mubr.f32.mxu1 %v5562_v59  ;;  %4934 = vmatprep.subr.mxu0 %v3791_v35  ;;  %v3773_v59 = vld [vmem:[%s7107_s4 + $0x368] sm:$0xff] }
 0x179   : > { %4807 = vmatmul.mubr.f32.vlgmr.msra.gmra.mxu0 %v5887_v62  ;;  %v3772_v62 = vld [vmem:[%s7107_s4 + $0x360] sm:$0xff] }
 0x17a   : > { %4809 = vmatprep.mubr.f32.mxu0 %v5894_v43  ;;  %4935 = vmatpush3.msra.mxu0 %v3791_v35  ;;  %v3784_v35 = vld [vmem:[%s7107_s4 + $0x3c0] sm:$0xff] }
 0x17b   : > { %4727 = vmatmul.mubr.f32.vlgmr.msra.gmra.mxu1 %v5565_v60  ;;  %4936 = vmatprep.subr.mxu0 %v3790_v25  ;;  %v3771_v60 = vld [vmem:[%s7107_s4 + $0x358] sm:$0xff] }
 0x17c   : > { %4855 = vmatpush3.msra.mxu1 %v3775_v4  ;;  %4729 = vmatprep.mubr.f32.mxu1 %v5583_v9  ;;  %v3785_v4 = vld [vmem:[%s7107_s4 + $0x3c8] sm:$0xff] }
 0x17d   : > { %4810 = vmatmul.mubr.f32.gmra.mxu0 %v5906_v7  ;;  %4856 = vmatprep.subr.mxu1 %v3774_v24 }
 0x17e   : > { %4812 = vmatprep.mubr.f32.mxu0 %v5913_v56  ;;  %4857 = vmatpush3.msra.mxu1 %v3774_v24  ;;  %v7212_v24 = vld [vmem:[#allocation14_spill] sm:$0xff] }
 0x17f   : > { %4730 = vmatmul.mubr.f32.gmra.mxu1 %v5586_v10  ;;  %4858 = vmatprep.subr.mxu1 %v3773_v59 }
 0x180   : > { %4732 = vmatprep.mubr.f32.mxu1 %v5604_v26  ;;  %4859 = vmatpush3.msra.mxu1 %v3773_v59  ;;  %v3783_v59 = vld [vmem:[%s7107_s4 + $0x3b8] sm:$0xff] }
 0x181   : > { %4813 = vmatmul.mubr.f32.gmra.mxu0 %v5925_v23  ;;  %4860 = vmatprep.subr.mxu1 %v3772_v62 }
 0x182   : > { %4815 = vmatprep.mubr.f32.mxu0 %v5932_v6  ;;  %4861 = vmatpush3.msra.mxu1 %v3772_v62  ;;  %v3763_v62 = vld [vmem:[%s7107_s4 + $0x318] sm:$0xff] }
 0x183   : > { %4733 = vmatmul.mubr.f32.gmra.mxu1 %v5607_v27  ;;  %4862 = vmatprep.subr.mxu1 %v3771_v60 }
 0x184   : > { %4735 = vmatprep.mubr.f32.mxu1 %v5625_v41  ;;  %4863 = vmatpush3.msra.mxu1 %v3771_v60  ;;  %v7213_v60 = vld [vmem:[#allocation15_spill] sm:$0xff] }
 0x185   : > { %4816 = vmatmul.mubr.f32.gmra.mxu0 %v5944_v21  ;;  %4864 = vmatprep.subr.mxu1 %v3770_v53 }
 0x186   : > { %4818 = vmatprep.mubr.f32.mxu0 %v5951_v20  ;;  %4865 = vmatpush3.msra.mxu1 %v3770_v53  ;;  %v7214_v53 = vld [vmem:[#allocation16_spill] sm:$0xff] }
 0x187   : > { %4736 = vmatmul.mubr.f32.gmra.mxu1 %v7201_v31  ;;  %4866 = vmatprep.subr.mxu1 %v3769_v2 }
 0x188   : > { %4738 = vmatprep.mubr.f32.mxu1 %v7202_v29  ;;  %4867 = vmatpush3.msra.mxu1 %v3769_v2  ;;  %v3782_v2 = vld [vmem:[%s7107_s4 + $0x3b0] sm:$0xff] }
 0x189   : > { %4819 = vmatmul.mubr.f32.gmra.mxu0 %v5966_v3  ;;  %4868 = vmatprep.subr.mxu1 %v3768_v47 }
 0x18a   : > { %4821 = vmatprep.mubr.f32.mxu0 %v5970_v37  ;;  %4869 = vmatpush3.msra.mxu1 %v3768_v47  ;;  %v3762_v47 = vld [vmem:[%s7107_s4 + $0x310] sm:$0xff] }
 0x18b   : > { %4739 = vmatmul.mubr.f32.gmra.mxu1 %v7203_v54  ;;  %4870 = vmatprep.subr.mxu1 %v3767_v48 }
 0x18c   : > { %4741 = vmatprep.mubr.f32.mxu1 %v7204_v16  ;;  %4871 = vmatpush3.msra.mxu1 %v3767_v48  ;;  %v7215_v48 = vld [vmem:[#allocation17_spill] sm:$0xff] }
 0x18d   : > { %4822 = vmatmul.mubr.f32.gmra.mxu0 %v5982_v19  ;;  %4872 = vmatprep.subr.mxu1 %v3766_v52 }
 0x18e   : > { %4824 = vmatprep.mubr.f32.mxu0 %v5989_v57  ;;  %4937 = vmatpush3.msra.mxu0 %v3790_v25  ;;  %v7211_v25 = vld [vmem:[#allocation13_spill] sm:$0xff] }
 0x18f   : > { %4742 = vmatmul.mubr.f32.gmra.mxu1 %v7205_v39  ;;  %4938 = vmatprep.subr.mxu0 %v3789_v50 }
 0x190   : > { %4744 = vmatprep.mubr.f32.mxu1 %v7206_v45  ;;  %4939 = vmatpush3.msra.mxu0 %v3789_v50  ;;  %v3781_v50 = vld [vmem:[%s7107_s4 + $0x3a8] sm:$0xff] }
 0x191   : > { %4825 = vmatmul.mubr.f32.gmra.mxu0 %v6001_v30  ;;  %4940 = vmatprep.subr.mxu0 %v3788_v51 }
 0x192   : > { %4827 = vmatprep.mubr.f32.mxu0 %v6008_v22  ;;  %4873 = vmatpush3.msra.mxu1 %v3766_v52  ;;  %v7216_v52 = vld [vmem:[#allocation18_spill] sm:$0xff] }
 0x193   : > { %4745 = vmatmul.mubr.f32.gmra.mxu1 %v7207_v0  ;;  %4941 = vmatpush3.msra.mxu0 %v3788_v51  ;;  %v3780_v51 = vld [vmem:[%s7107_s4 + $0x3a0] sm:$0xff] }
 0x194   : > { %4747 = vmatprep.mubr.f32.mxu1 %v7208_v63  ;;  %4942 = vmatprep.subr.mxu0 %v3787_v61 }
 0x195   : > { %4828 = vmatmul.mubr.f32.gmra.mxu0 %v6023_v32  ;;  %4874 = vmatprep.subr.mxu1 %v3765_v1 }
 0x196   : > { %4830 = vmatprep.mubr.f32.mxu0 %v6027_v40  ;;  %4943 = vmatpush3.msra.mxu0 %v3787_v61  ;;  %v7217_v61 = vld [vmem:[#allocation19_spill] sm:$0xff] }
 0x197   : > { %4748 = vmatmul.mubr.f32.gmra.mxu1 %v7209_v12  ;;  %4944 = vmatprep.subr.mxu0 %v3786_v18 }
 0x198   : > { %4750 = vmatprep.mubr.f32.mxu1 %v7210_v36  ;;  %4875 = vmatpush3.msra.mxu1 %v3765_v1  ;;  %v7218_v1 = vld [vmem:[#allocation20_spill] sm:$0xff] }
 0x199   : > { %4831 = vmatmul.mubr.f32.gmra.mxu0 %v6039_v49  ;;  %4876 = vmatprep.subr.mxu1 %v3764_v8 }
 0x19a   : > { %4833 = vmatprep.mubr.f32.mxu0 %v6046_v11  ;;  %4945 = vmatpush3.msra.mxu0 %v3786_v18  ;;  %v3779_v18 = vld [vmem:[%s7107_s4 + $0x398] sm:$0xff] }
 0x19b   : > { %4751 = vmatmul.mubr.f32.gmra.mxu1 %v7211_v25  ;;  %4946 = vmatprep.subr.mxu0 %v3785_v4 }
 0x19c   : > { %4753 = vmatprep.mubr.f32.mxu1 %v7212_v24  ;;  %4947 = vmatpush3.msra.mxu0 %v3785_v4  ;;  %v7219_v4 = vld [vmem:[#allocation21_spill] sm:$0xff] }
 0x19d   : > { %4834 = vmatmul.mubr.f32.gmra.mxu0 %v6058_v13  ;;  %4948 = vmatprep.subr.mxu0 %v3784_v35 }
 0x19e   : > { %4836 = vmatprep.mubr.f32.mxu0 %v6065_v28  ;;  %4877 = vmatpush3.msra.mxu1 %v3764_v8  ;;  %v3761_v8 = vld [vmem:[%s7107_s4 + $0x308] sm:$0xff] }
 0x19f   : > { %4754 = vmatmul.mubr.f32.gmra.mxu1 %v7213_v60  ;;  %4949 = vmatpush3.msra.mxu0 %v3784_v35  ;;  %v2346_v35 = vrot.slane %v6124_v34, 2 }
 0x1a0   : > { %4756 = vmatprep.mubr.f32.mxu1 %v7214_v53  ;;  %4950 = vmatprep.subr.mxu0 %v3783_v59 }
 0x1a1   : > { %4837 = vmatmul.mubr.f32.gmra.mxu0 %v6080_v17  ;;  %4878 = vmatprep.subr.mxu1 %v3763_v62  ;;  %v7225_v17 = vld [vmem:[#allocation25_spill] sm:$0xff] }
 0x1a2   : > { %4839 = vmatprep.mubr.f32.mxu0 %v6084_v44  ;;  %4951 = vmatpush3.msra.mxu0 %v3783_v59  ;;  %v2347_v59 = vrot.slane %v6141_v14, 2  ;;  %v3777_v44 = vld [vmem:[%s7107_s4 + $0x388] sm:$0xff] }
 0x1a3   : > { %4757 = vmatmul.mubr.f32.gmra.mxu1 %v7215_v48  ;;  %4952 = vmatprep.subr.mxu0 %v3782_v2 }
 0x1a4   : > { %4759 = vmatprep.mubr.f32.mxu1 %v7216_v52  ;;  %4879 = vmatpush3.msra.mxu1 %v3763_v62  ;;  %v753_v62 = vld [vmem:[#allocation2 + $0x190] sm:$0x3] }
 0x1a5   : > { %4840 = vmatmul.mubr.f32.gmra.mxu0 %v6096_v55  ;;  %4880 = vmatprep.subr.mxu1 %v3762_v47  ;;  %v6306_v55 = vsel %vm1401_vm1, %v2346_v35, %v2347_v59  ;;  %v2068_v35 = vrot.slane %v753_v62, 1 }
 0x1a6   : > { %4842 = vmatprep.mubr.f32.mxu0 %v6103_v38  ;;  %4953 = vmatpush3.msra.mxu0 %v3782_v2  ;;  %v7220_v2 = vld [vmem:[#allocation22_spill] sm:$0xff]  ;;  %v7221_v38 = vld [vmem:[#allocation23_spill] sm:$0xff]  ;;  %7222 = vst [vmem:[#allocation3_spill] sm:$0xff] %v6306_v55 }
 0x1a7   : > { %4760 = vmatmul.mubr.f32.gmra.mxu1 %v7217_v61  ;;  %4954 = vmatprep.subr.mxu0 %v3781_v50 }
 0x1a8   : > { %4762 = vmatprep.mubr.f32.mxu1 %v7218_v1  ;;  %4955 = vmatpush3.msra.mxu0 %v3781_v50  ;;  %v3778_v50 = vld [vmem:[%s7107_s4 + $0x390] sm:$0xff] }
 0x1a9   : > { %4843 = vmatmul.mubr.f32.gmra.mxu0 %v6115_v46  ;;  %4956 = vmatprep.subr.mxu0 %v3780_v51  ;;  %v3760_v46 = vld [vmem:[%s7107_s4 + $0x300] sm:$0xff] }
 0x1aa   : > { %4845 = vmatprep.mubr.f32.mxu0 %v6122_v33  ;;  %4881 = vmatpush3.msra.mxu1 %v3762_v47  ;;  %v2065_v47 = vrot.slane %v6124_v34, 1  ;;  %v2066_v33 = vrot.slane %v6141_v14, 1 }
 0x1ab   : > { %4763 = vmatmul.mubr.f32.gmra.mxu1 %v7219_v4  ;;  %4957 = vmatpush3.msra.mxu0 %v3780_v51  ;;  %v2349_v51 = vrot.slane %v753_v62, 2  ;;  %v5103_v62 = vld [vmem:[#allocation2 + $0x30] sm:$0xff] }
 0x1ac   : > { %4765 = vmatprep.mubr.f32.mxu1 %v7220_v2  ;;  %4958 = vmatprep.subr.mxu0 %v3779_v18 }
 0x1ad   : > { %4846 = vmatmul.mubr.f32.gmra.mxu0 %v6138_v58  ;;  %4882 = vmatprep.subr.mxu1 %v3761_v8  ;;  %v7223_v58 = vld [vmem:[#allocation24_spill] sm:$0xff] }
 0x1ae   : > { %4848 = vmatprep.mubr.f32.mxu0 %v6145_v15  ;;  %4959 = vmatpush3.msra.mxu0 %v3779_v18  ;;  %v6314_v18 = vsel %vm821_vm0, %v2065_v47, %v2066_v33  ;;  %v6318_v15 = vsel %vm1401_vm1, %v2347_v59, %v2349_v51  ;;  %v6331_v59 = vsel %vm821_vm0, %v2066_v33, %v2068_v35  ;;  %v6334_v47 = vpop.f32.mrf.mxu0  ;;  %v5105_v33 = vld [vmem:[#allocation2 + $0x48] sm:$0xff] }
 0x1af   : > { %4766 = vmatmul.mubr.f32.gmra.mxu1 %v7221_v38  ;;  %4960 = vmatprep.subr.mxu0 %v3778_v50  ;;  %7224 = vst [vmem:[#allocation4_spill] sm:$0xff] %v6318_v15  ;;  %v3805_v51 = vld [vmem:[%s7107_s4 + $0x468] sm:$0xff] }
 0x1b0   : > { %4768 = vmatprep.mubr.f32.mxu1 %v7223_v58  ;;  %4883 = vmatpush3.msra.mxu1 %v3761_v8  ;;  %v3776_v8 = vld [vmem:[%s7107_s4 + $0x380] sm:$0xff] }
 0x1b1   : > { %4849 = vmatmul.mubr.f32.gmra.mxu0 %v6158_v5  ;;  %4884 = vmatprep.subr.mxu1 %v3760_v46  ;;  %v5131_v5 = vld [vmem:[#allocation2 + $0x170] sm:$0xff] }
 0x1b2   : > { %4851 = vmatprep.mubr.f32.mxu0 %v6306_v55  ;;  %4961 = vmatpush3.msra.mxu0 %v3778_v50  ;;  %v3807_v50 = vld [vmem:[%s7107_s4 + $0x478] sm:$0xff] }
 0x1b3   : > { %4769 = vmatmul.mubr.f32.gmra.mxu1 %v7225_v17  ;;  %4962 = vmatprep.subr.mxu0 %v3777_v44  ;;  %v5120_v55 = vld [vmem:[#allocation2 + $0xf8] sm:$0xff] }
 0x1b4   : > { %4771 = vmatprep.mubr.f32.mxu1 %v6314_v18  ;;  %4963 = vmatpush3.msra.mxu0 %v3777_v44  ;;  %v5104_v44 = vld [vmem:[#allocation2 + $0x38] sm:$0xff] }
 0x1b5   : > { %4852 = vmatmul.mubr.f32.gmra.mxu0 %v6318_v15  ;;  %4964 = vmatprep.subr.mxu0 %v3776_v8 }
 0x1b6   : > { %4966 = vmatprep.mubr.f32.mxu0 %v5583_v9  ;;  %4885 = vmatpush3.msra.mxu1 %v3760_v46  ;;  %v3806_v9 = vld [vmem:[%s7107_s4 + $0x470] sm:$0xff] }
 0x1b7   : > { %4772 = vmatmul.mubr.f32.gmra.mxu1 %v6331_v59  ;;  %4965 = vmatpush3.msra.mxu0 %v3776_v8  ;;  %v6344_v8 = vpop.f32.mrf.mxu1 }
 0x1b8   : > { %4886 = vmatprep.mubr.f32.mxu1 %v5103_v62  ;;  %5014 = vmatprep.subr.mxu1 %v3807_v50 }
 0x1b9   : > { %4967 = vmatmul.mubr.f32.vlgmr.msra.gmra.mxu0 %v5586_v10 }
 0x1ba   : > { %4969 = vmatprep.mubr.f32.mxu0 %v5604_v26  ;;  %v3804_v26 = vld [vmem:[%s7107_s4 + $0x460] sm:$0xff] }
 0x1bb   : > { %4887 = vmatmul.mubr.f32.vlgmr.msra.gmra.mxu1 %v5104_v44 }
 0x1bc   : > { %5015 = vmatpush3.msra.mxu1 %v3807_v50  ;;  %v4491_v46 = vpop.f32.mrf.mxu0  ;;  %4889 = vmatprep.mubr.f32.mxu1 %v5105_v33  ;;  %v5106_v50 = vld [vmem:[#allocation2 + $0x50] sm:$0xff]  ;;  %v5107_v33 = vld [vmem:[#allocation2 + $0x60] sm:$0xff] }
 0x1bd   : > { %4970 = vmatmul.mubr.f32.gmra.mxu0 %v5607_v27  ;;  %5016 = vmatprep.subr.mxu1 %v3806_v9  ;;  %v3803_v27 = vld [vmem:[%s7107_s4 + $0x458] sm:$0xff] }
 0x1be   : > { %4972 = vmatprep.mubr.f32.mxu0 %v5625_v41  ;;  %v1252_v10 = vpop.f32.mrf.mxu0  ;;  %5017 = vmatpush3.msra.mxu1 %v3806_v9 }
 0x1bf   : > { %v4411_v35 = vpop.f32.mrf.mxu1  ;;  %4890 = vmatmul.mubr.f32.gmra.mxu1 %v5106_v50  ;;  %5018 = vmatprep.subr.mxu1 %v3805_v51 }
 0x1c0   : > { %v6351_v62 = vadd.f32 %v4491_v46, %v4411_v35  ;;  %v4494_v44 = vpop.f32.mrf.mxu0  ;;  %4892 = vmatprep.mubr.f32.mxu1 %v5107_v33  ;;  %5019 = vmatpush3.msra.mxu1 %v3805_v51  ;;  %v3802_v46 = vld [vmem:[%s7107_s4 + $0x450] sm:$0xff]  ;;  %v5108_v51 = vld [vmem:[#allocation2 + $0x68] sm:$0xff] }
 0x1c1   : > { %4973 = vmatmul.mubr.f32.gmra.mxu0 %v7201_v31  ;;  %v1027_v41 = vpop.f32.mrf.mxu1  ;;  %5020 = vmatprep.subr.mxu1 %v3804_v26  ;;  %v5109_v31 = vld [vmem:[#allocation2 + $0x78] sm:$0xff] }
 0x1c2   : > { %v6357_v9 = vadd.f32 %v1252_v10, %v1027_v41  ;;  %4975 = vmatprep.mubr.f32.mxu0 %v7202_v29  ;;  %v1262_v50 = vpop.f32.mrf.mxu0  ;;  %5021 = vmatpush3.msra.mxu1 %v3804_v26  ;;  %v3801_v29 = vld [vmem:[%s7107_s4 + $0x448] sm:$0xff] }
 0x1c3   : > { %v4414_v35 = vpop.f32.mrf.mxu1  ;;  %4893 = vmatmul.mubr.f32.gmra.mxu1 %v5108_v51  ;;  %5022 = vmatprep.subr.mxu1 %v3803_v27 }
 0x1c4   : > { %v6363_v33 = vadd.f32 %v4494_v44, %v4414_v35  ;;  %v4497_v15 = vpop.f32.mrf.mxu0  ;;  %4895 = vmatprep.mubr.f32.mxu1 %v5109_v31  ;;  %5023 = vmatpush3.msra.mxu1 %v3803_v27  ;;  %v3800_v44 = vld [vmem:[%s7107_s4 + $0x440] sm:$0xff] }
 0x1c5   : > { %4976 = vmatmul.mubr.f32.gmra.mxu0 %v7203_v54  ;;  %v1037_v10 = vpop.f32.mrf.mxu1  ;;  %5024 = vmatprep.subr.mxu1 %v3802_v46  ;;  %v5110_v27 = vld [vmem:[#allocation2 + $0x80] sm:$0xff]  ;;  %v5111_v54 = vld [vmem:[#allocation2 + $0x90] sm:$0xff] }
 0x1c6   : > { %v6369_v26 = vadd.f32 %v1262_v50, %v1037_v10  ;;  %4978 = vmatprep.mubr.f32.mxu0 %v7204_v16  ;;  %v1272_v41 = vpop.f32.mrf.mxu0  ;;  %5025 = vmatpush3.msra.mxu1 %v3802_v46  ;;  %v3799_v16 = vld [vmem:[%s7107_s4 + $0x438] sm:$0xff] }
 0x1c7   : > { %v4417_v35 = vpop.f32.mrf.mxu1  ;;  %4896 = vmatmul.mubr.f32.gmra.mxu1 %v5110_v27  ;;  %5026 = vmatprep.subr.mxu1 %v3801_v29 }
 0x1c8   : > { %v6375_v51 = vadd.f32 %v4497_v15, %v4417_v35  ;;  %v4500_v31 = vpop.f32.mrf.mxu0  ;;  %4898 = vmatprep.mubr.f32.mxu1 %v5111_v54  ;;  %5027 = vmatpush3.msra.mxu1 %v3801_v29  ;;  %v3798_v15 = vld [vmem:[%s7107_s4 + $0x430] sm:$0xff]  ;;  %v5112_v29 = vld [vmem:[#allocation2 + $0x98] sm:$0xff] }
 0x1c9   : > { %4979 = vmatmul.mubr.f32.gmra.mxu0 %v7205_v39  ;;  %v1047_v50 = vpop.f32.mrf.mxu1  ;;  %5028 = vmatprep.subr.mxu1 %v3800_v44  ;;  %v5113_v39 = vld [vmem:[#allocation2 + $0xa8] sm:$0xff] }
 0x1ca   : > { %v6381_v46 = vadd.f32 %v1272_v41, %v1047_v50  ;;  %4981 = vmatprep.mubr.f32.mxu0 %v7206_v45  ;;  %v1282_v10 = vpop.f32.mrf.mxu0  ;;  %5029 = vmatpush3.msra.mxu1 %v3800_v44  ;;  %v3797_v45 = vld [vmem:[%s7107_s4 + $0x428] sm:$0xff] }
 0x1cb   : > { %v4420_v35 = vpop.f32.mrf.mxu1  ;;  %4899 = vmatmul.mubr.f32.gmra.mxu1 %v5112_v29  ;;  %5030 = vmatprep.subr.mxu1 %v3799_v16 }
 0x1cc   : > { %v6387_v27 = vadd.f32 %v4500_v31, %v4420_v35  ;;  %v4503_v54 = vpop.f32.mrf.mxu0  ;;  %4901 = vmatprep.mubr.f32.mxu1 %v5113_v39  ;;  %5031 = vmatpush3.msra.mxu1 %v3799_v16  ;;  %v3796_v31 = vld [vmem:[%s7107_s4 + $0x420] sm:$0xff]  ;;  %v5114_v16 = vld [vmem:[#allocation2 + $0xb0] sm:$0xff] }
 0x1cd   : > { %4982 = vmatmul.mubr.f32.gmra.mxu0 %v7207_v0  ;;  %v1057_v41 = vpop.f32.mrf.mxu1  ;;  %5032 = vmatprep.subr.mxu1 %v3798_v15  ;;  %v5115_v0 = vld [vmem:[#allocation2 + $0xc0] sm:$0xff] }
 0x1ce   : > { %v6393_v44 = vadd.f32 %v1282_v10, %v1057_v41  ;;  %4984 = vmatprep.mubr.f32.mxu0 %v7208_v63  ;;  %v1292_v50 = vpop.f32.mrf.mxu0  ;;  %5033 = vmatpush3.msra.mxu1 %v3798_v15  ;;  %v3795_v63 = vld [vmem:[%s7107_s4 + $0x418] sm:$0xff] }
 0x1cf   : > { %v4423_v35 = vpop.f32.mrf.mxu1  ;;  %4902 = vmatmul.mubr.f32.gmra.mxu1 %v5114_v16  ;;  %5034 = vmatprep.subr.mxu1 %v3797_v45 }
 0x1d0   : > { %v6399_v29 = vadd.f32 %v4503_v54, %v4423_v35  ;;  %v4506_v39 = vpop.f32.mrf.mxu0  ;;  %4904 = vmatprep.mubr.f32.mxu1 %v5115_v0  ;;  %5035 = vmatpush3.msra.mxu1 %v3797_v45  ;;  %v3794_v54 = vld [vmem:[%s7107_s4 + $0x410] sm:$0xff]  ;;  %v5116_v45 = vld [vmem:[#allocation2 + $0xc8] sm:$0xff] }
 0x1d1   : > { %4985 = vmatmul.mubr.f32.gmra.mxu0 %v7209_v12  ;;  %v1067_v10 = vpop.f32.mrf.mxu1  ;;  %5036 = vmatprep.subr.mxu1 %v3796_v31  ;;  %v5117_v12 = vld [vmem:[#allocation2 + $0xd8] sm:$0xff] }
 0x1d2   : > { %v6405_v15 = vadd.f32 %v1292_v50, %v1067_v10  ;;  %4987 = vmatprep.mubr.f32.mxu0 %v7210_v36  ;;  %v1302_v41 = vpop.f32.mrf.mxu0  ;;  %5037 = vmatpush3.msra.mxu1 %v3796_v31  ;;  %v3793_v36 = vld [vmem:[%s7107_s4 + $0x408] sm:$0xff] }
 0x1d3   : > { %v4426_v35 = vpop.f32.mrf.mxu1  ;;  %4905 = vmatmul.mubr.f32.gmra.mxu1 %v5116_v45  ;;  %5038 = vmatprep.subr.mxu1 %v3795_v63 }
 0x1d4   : > { %v6411_v16 = vadd.f32 %v4506_v39, %v4426_v35  ;;  %v4509_v0 = vpop.f32.mrf.mxu0  ;;  %4907 = vmatprep.mubr.f32.mxu1 %v5117_v12  ;;  %5039 = vmatpush3.msra.mxu1 %v3795_v63  ;;  %v3792_v39 = vld [vmem:[%s7107_s4 + $0x400] sm:$0xff] }
 0x1d5   : > { %4988 = vmatmul.mubr.f32.gmra.mxu0 %v7211_v25  ;;  %v1077_v50 = vpop.f32.mrf.mxu1  ;;  %5040 = vmatprep.subr.mxu1 %v3794_v54  ;;  %v5118_v63 = vld [vmem:[#allocation2 + $0xe0] sm:$0xff]  ;;  %v5119_v25 = vld [vmem:[#allocation2 + $0xf0] sm:$0xff] }
 0x1d6   : > { %v6417_v31 = vadd.f32 %v1302_v41, %v1077_v50  ;;  %4990 = vmatprep.mubr.f32.mxu0 %v7212_v24  ;;  %v1312_v10 = vpop.f32.mrf.mxu0  ;;  %5041 = vmatpush3.msra.mxu1 %v3794_v54 }
 0x1d7   : > { %v4429_v35 = vpop.f32.mrf.mxu1  ;;  %4908 = vmatmul.mubr.f32.gmra.mxu1 %v5118_v63  ;;  %5042 = vmatprep.subr.mxu1 %v3793_v36 }
 0x1d8   : > { %v6423_v45 = vadd.f32 %v4509_v0, %v4429_v35  ;;  %v4512_v12 = vpop.f32.mrf.mxu0  ;;  %4910 = vmatprep.mubr.f32.mxu1 %v5119_v25  ;;  %5043 = vmatpush3.msra.mxu1 %v3793_v36  ;;  %v5121_v35 = vld [vmem:[#allocation2 + $0x108] sm:$0xff] }
 0x1d9   : > { %4991 = vmatmul.mubr.f32.gmra.mxu0 %v7213_v60  ;;  %v1087_v41 = vpop.f32.mrf.mxu1  ;;  %5044 = vmatprep.subr.mxu1 %v3792_v39 }
 0x1da   : > { %v6426_v24 = vadd.f32 %v1312_v10, %v1087_v41  ;;  %4993 = vmatprep.mubr.f32.mxu0 %v7214_v53  ;;  %v1322_v54 = vpop.f32.mrf.mxu0  ;;  %5045 = vmatpush3.msra.mxu1 %v3792_v39  ;;  %v5122_v53 = vld [vmem:[#allocation2 + $0x110] sm:$0xff] }
 0x1db   : > { %v4432_v50 = vpop.f32.mrf.mxu1  ;;  %4911 = vmatmul.mubr.f32.gmra.mxu1 %v5120_v55  ;;  %v5123_v55 = vld [vmem:[#allocation2 + $0x120] sm:$0xff] }
 0x1dc   : > { %v6429_v63 = vadd.f32 %v4512_v12, %v4432_v50  ;;  %v4515_v0 = vpop.f32.mrf.mxu0  ;;  %4913 = vmatprep.mubr.f32.mxu1 %v5121_v35  ;;  %v5124_v35 = vld [vmem:[#allocation2 + $0x128] sm:$0xff] }
 0x1dd   : > { %4994 = vmatmul.mubr.f32.gmra.mxu0 %v7215_v48  ;;  %v1097_v36 = vpop.f32.mrf.mxu1 }
 0x1de   : > { %v6432_v60 = vadd.f32 %v1322_v54, %v1097_v36  ;;  %4996 = vmatprep.mubr.f32.mxu0 %v7216_v52  ;;  %v1332_v10 = vpop.f32.mrf.mxu0 }
 0x1df   : > { %v4435_v25 = vpop.f32.mrf.mxu1  ;;  %4914 = vmatmul.mubr.f32.gmra.mxu1 %v5122_v53  ;;  %v5125_v53 = vld [vmem:[#allocation2 + $0x138] sm:$0xff] }
 0x1e0   : > { %v6435_v39 = vadd.f32 %v4515_v0, %v4435_v25  ;;  %v4518_v41 = vpop.f32.mrf.mxu0  ;;  %4916 = vmatprep.mubr.f32.mxu1 %v5123_v55  ;;  %v5126_v55 = vld [vmem:[#allocation2 + $0x140] sm:$0xff] }
 0x1e1   : > { %4997 = vmatmul.mubr.f32.gmra.mxu0 %v7217_v61  ;;  %v1107_v12 = vpop.f32.mrf.mxu1 }
 0x1e2   : > { %v6438_v50 = vadd.f32 %v1332_v10, %v1107_v12  ;;  %4999 = vmatprep.mubr.f32.mxu0 %v7218_v1  ;;  %v1342_v48 = vpop.f32.mrf.mxu0 }
 0x1e3   : > { %v4438_v54 = vpop.f32.mrf.mxu1  ;;  %4917 = vmatmul.mubr.f32.gmra.mxu1 %v5124_v35  ;;  %v5127_v35 = vld [vmem:[#allocation2 + $0x150] sm:$0xff] }
 0x1e4   : > { %v6441_v52 = vadd.f32 %v4518_v41, %v4438_v54  ;;  %v4521_v36 = vpop.f32.mrf.mxu0  ;;  %4919 = vmatprep.mubr.f32.mxu1 %v5125_v53  ;;  %v5128_v53 = vld [vmem:[#allocation2 + $0x158] sm:$0xff] }
 0x1e5   : > { %5000 = vmatmul.mubr.f32.gmra.mxu0 %v7219_v4  ;;  %v1117_v0 = vpop.f32.mrf.mxu1 }
 0x1e6   : > { %v6444_v25 = vadd.f32 %v1342_v48, %v1117_v0  ;;  %5002 = vmatprep.mubr.f32.mxu0 %v7220_v2  ;;  %v1352_v61 = vpop.f32.mrf.mxu0  ;;  %v6453_v2 = vld [vmem:[#allocation2] sm:$0xff] }
 0x1e7   : > { %v4441_v10 = vpop.f32.mrf.mxu1  ;;  %4920 = vmatmul.mubr.f32.gmra.mxu1 %v5126_v55  ;;  %v2904_v0 = vrot.slane %v6453_v2, 1 }
 0x1e8   : > { %v6447_v1 = vadd.f32 %v4521_v36, %v4441_v10  ;;  %v4524_v12 = vpop.f32.mrf.mxu0  ;;  %4922 = vmatprep.mubr.f32.mxu1 %v5127_v35  ;;  %v6456_v36 = vld [vmem:[#allocation2 + $0x1a8] sm:$0x3] }
 0x1e9   : > { %5003 = vmatmul.mubr.f32.gmra.mxu0 %v7221_v38  ;;  %v1127_v41 = vpop.f32.mrf.mxu1  ;;  %v5130_v35 = vld [vmem:[#allocation2 + $0x168] sm:$0xff] }
 0x1ea   : > { %v6450_v54 = vadd.f32 %v1352_v61, %v1127_v41  ;;  %5005 = vmatprep.mubr.f32.mxu0 %v7223_v58  ;;  %v1362_v4 = vpop.f32.mrf.mxu0  ;;  %v2907_v41 = vrot.slane %v6456_v36, 1 }
 0x1eb   : > { %v4444_v48 = vpop.f32.mrf.mxu1  ;;  %4923 = vmatmul.mubr.f32.gmra.mxu1 %v5128_v53 }
 0x1ec   : > { %7226 = vst [vmem:[#allocation5_spill] sm:$0xff] %v6450_v54  ;;  %v6458_v10 = vadd.f32 %v4524_v12, %v4444_v48  ;;  %v4527_v55 = vpop.f32.mrf.mxu0  ;;  %4925 = vmatprep.mubr.f32.mxu1 %v5130_v35 }
 0x1ed   : > { %5006 = vmatmul.mubr.f32.gmra.mxu0 %v7225_v17  ;;  %v1137_v38 = vpop.f32.mrf.mxu1 }
 0x1ee   : > { %v6461_v61 = vadd.f32 %v1362_v4, %v1137_v38  ;;  %5008 = vmatprep.mubr.f32.mxu0 %v6314_v18  ;;  %v1372_v58 = vpop.f32.mrf.mxu0  ;;  %v2908_v18 = vsel %vm821_vm0, %v2904_v0, %v2907_v41 }
 0x1ef   : > { %v4447_v53 = vpop.f32.mrf.mxu1  ;;  %4926 = vmatmul.mubr.f32.gmra.mxu1 %v5131_v5 }
 0x1f0   : > { %v6465_v54 = vadd.f32 %v4527_v55, %v4447_v53  ;;  %v4530_v12 = vpop.f32.mrf.mxu0  ;;  %4928 = vmatprep.mubr.f32.mxu1 %v6124_v34 }
 0x1f1   : > { %5009 = vmatmul.mubr.f32.gmra.mxu0 %v6331_v59  ;;  %v1147_v48 = vpop.f32.mrf.mxu1 }
 0x1f2   : > { %v6469_v17 = vadd.f32 %v1372_v58, %v1147_v48  ;;  %v1382_v4 = vpop.f32.mrf.mxu0  ;;  %5011 = vmatprep.mubr.f32.mxu0 %v2904_v0 }
 0x1f3   : > { %v4450_v35 = vpop.f32.mrf.mxu1  ;;  %4929 = vmatmul.mubr.f32.gmra.mxu1 %v6141_v14 }
 0x1f4   : > { %v6473_v38 = vadd.f32 %v4530_v12, %v4450_v35  ;;  %v4533_v5 = vpop.f32.mrf.mxu0  ;;  %4931 = vmatprep.mubr.f32.mxu1 %v6453_v2 }
 0x1f5   : > { %v1157_v55 = vpop.f32.mrf.mxu1  ;;  %5012 = vmatmul.mubr.f32.gmra.mxu0 %v2908_v18 }
 0x1f6   : > { %v6476_v34 = vadd.f32 %v1382_v4, %v1157_v55  ;;  %v1392_v59 = vpop.f32.mrf.mxu0  ;;  %v1243_v4 = vadd.f32 %v6334_v47, %v6344_v8 }
 0x1f7   : > { %v4453_v53 = vpop.f32.mrf.mxu1  ;;  %4932 = vmatmul.mubr.f32.gmra.mxu1 %v6453_v2 }
 0x1f8   : > { %v6479_v58 = vadd.f32 %v4533_v5, %v4453_v53  ;;  %v4648_v48 = vpop.f32.mrf.mxu0  ;;  %5046 = vmatprep.mubr.f32.mxu1 %v5894_v43 }
 0x1f9   : > { %v1167_v0 = vpop.f32.mrf.mxu1 }
 0x1fa   : > { %7227 = vst [vmem:[#allocation6_spill] sm:$0xff] %v6479_v58  ;;  %v6482_v14 = vadd.f32 %v1392_v59, %v1167_v0  ;;  %v1871_v41 = vpop.f32.mrf.mxu0 }
 0x1fb   : > { %v4568_v12 = vpop.f32.mrf.mxu1  ;;  %5047 = vmatmul.mubr.f32.vlgmr.msra.gmra.mxu1 %v5906_v7 }
 0x1fc   : > { %v1757_v18 = vadd.f32 %v4568_v12, %v5876_v42  ;;  %5049 = vmatprep.mubr.f32.mxu1 %v5913_v56 }
 0x1fd   : > { %v4651_v35 = vpop.f32.mrf.mxu0  ;;  %v1597_v5 = vpop.f32.mrf.mxu1 }
 0x1fe   : > { %v1756_v55 = vadd.f32 %v1597_v5, %v1243_v4  ;;  %v6489_v53 = vadd.f32 %v4648_v48, %v1757_v18 }
 0x1ff   : > { %v1881_v43 = vpop.f32.mrf.mxu0  ;;  %v4571_v58 = vpop.f32.mrf.mxu1  ;;  %5050 = vmatmul.mubr.f32.gmra.mxu1 %v5925_v23 }
 0x200   : > { %v1759_v59 = vadd.f32 %v4571_v58, %v6351_v62  ;;  %5052 = vmatprep.mubr.f32.mxu1 %v5932_v6  ;;  %v6494_v7 = vadd.f32 %v1871_v41, %v1756_v55 }
 0x201   : > { %v4654_v47 = vpop.f32.mrf.mxu0  ;;  %v1607_v8 = vpop.f32.mrf.mxu1 }
 0x202   : > { %v1758_v42 = vadd.f32 %v1607_v8, %v6357_v9  ;;  %v6497_v56 = vadd.f32 %v4651_v35, %v1759_v59 }
 0x203   : > { %v1891_v0 = vpop.f32.mrf.mxu0  ;;  %v4574_v12 = vpop.f32.mrf.mxu1  ;;  %5053 = vmatmul.mubr.f32.gmra.mxu1 %v5944_v21 }
 0x204   : > { %v1761_v48 = vadd.f32 %v4574_v12, %v6363_v33  ;;  %5055 = vmatprep.mubr.f32.mxu1 %v5951_v20  ;;  %v6502_v23 = vadd.f32 %v1881_v43, %v1758_v42 }
 0x205   : > { %v4657_v62 = vpop.f32.mrf.mxu0  ;;  %v1617_v6 = vpop.f32.mrf.mxu1 }
 0x206   : > { %v1760_v58 = vadd.f32 %v1617_v6, %v6369_v26  ;;  %v6505_v41 = vadd.f32 %v4654_v47, %v1761_v48 }
 0x207   : > { %v1901_v4 = vpop.f32.mrf.mxu0  ;;  %v4577_v9 = vpop.f32.mrf.mxu1  ;;  %5056 = vmatmul.mubr.f32.gmra.mxu1 %v5966_v3 }
 0x208   : > { %v1763_v18 = vadd.f32 %v4577_v9, %v6375_v51  ;;  %5058 = vmatprep.mubr.f32.mxu1 %v5970_v37  ;;  %v6510_v21 = vadd.f32 %v1891_v0, %v1760_v58 }
 0x209   : > { %v4660_v33 = vpop.f32.mrf.mxu0  ;;  %v1627_v20 = vpop.f32.mrf.mxu1 }
 0x20a   : > { %v1762_v35 = vadd.f32 %v1627_v20, %v6381_v46  ;;  %v6513_v5 = vadd.f32 %v4657_v62, %v1763_v18 }
 0x20b   : > { %v1911_v55 = vpop.f32.mrf.mxu0  ;;  %v4580_v26 = vpop.f32.mrf.mxu1  ;;  %5059 = vmatmul.mubr.f32.gmra.mxu1 %v5982_v19 }
 0x20c   : > { %v1765_v43 = vadd.f32 %v4580_v26, %v6387_v27  ;;  %5061 = vmatprep.mubr.f32.mxu1 %v5989_v57  ;;  %v6518_v3 = vadd.f32 %v1901_v4, %v1762_v35 }
 0x20d   : > { %v4663_v51 = vpop.f32.mrf.mxu0  ;;  %v1637_v37 = vpop.f32.mrf.mxu1 }
 0x20e   : > { %v1764_v59 = vadd.f32 %v1637_v37, %v6393_v44  ;;  %v6521_v47 = vadd.f32 %v4660_v33, %v1765_v43 }
 0x20f   : > { %v1921_v8 = vpop.f32.mrf.mxu0  ;;  %v4583_v46 = vpop.f32.mrf.mxu1  ;;  %5062 = vmatmul.mubr.f32.gmra.mxu1 %v6001_v30 }
 0x210   : > { %v1767_v42 = vadd.f32 %v4583_v46, %v6399_v29  ;;  %5064 = vmatprep.mubr.f32.mxu1 %v6008_v22  ;;  %v6526_v19 = vadd.f32 %v1911_v55, %v1764_v59  ;;  %v7229_v59 = vld [vmem:[#allocation27_spill] sm:$0xff] }
 0x211   : > { %v4666_v27 = vpop.f32.mrf.mxu0  ;;  %v1647_v57 = vpop.f32.mrf.mxu1 }
 0x212   : > { %v1766_v0 = vadd.f32 %v1647_v57, %v6405_v15  ;;  %v6529_v12 = vadd.f32 %v4663_v51, %v1767_v42  ;;  %v7228_v51 = vld [vmem:[#allocation26_spill] sm:$0xff] }
 0x213   : > { %v1931_v48 = vpop.f32.mrf.mxu0  ;;  %v4586_v44 = vpop.f32.mrf.mxu1  ;;  %5065 = vmatmul.mubr.f32.gmra.mxu1 %v6023_v32 }
 0x214   : > { %v1769_v62 = vadd.f32 %v4586_v44, %v6411_v16  ;;  %5067 = vmatprep.mubr.f32.mxu1 %v6027_v40  ;;  %v6534_v30 = vadd.f32 %v1921_v8, %v1766_v0  ;;  %v7231_v0 = vld [vmem:[#allocation29_spill] sm:$0xff] }
 0x215   : > { %v4669_v29 = vpop.f32.mrf.mxu0  ;;  %v1657_v22 = vpop.f32.mrf.mxu1 }
 0x216   : > { %v1768_v6 = vadd.f32 %v1657_v22, %v6417_v31  ;;  %v6537_v58 = vadd.f32 %v4666_v27, %v1769_v62  ;;  %v7230_v27 = vld [vmem:[#allocation28_spill] sm:$0xff] }
 0x217   : > { %v1941_v4 = vpop.f32.mrf.mxu0  ;;  %v4589_v15 = vpop.f32.mrf.mxu1  ;;  %5068 = vmatmul.mubr.f32.gmra.mxu1 %v6039_v49 }
 0x218   : > { %v1771_v9 = vadd.f32 %v4589_v15, %v6423_v45  ;;  %5070 = vmatprep.mubr.f32.mxu1 %v6046_v11  ;;  %v6542_v32 = vadd.f32 %v1931_v48, %v1768_v6  ;;  %v7232_v6 = vld [vmem:[#allocation30_spill] sm:$0xff]  ;;  %v7233_v15 = vld [vmem:[#allocation31_spill] sm:$0xff] }
 0x219   : > { %v4672_v16 = vpop.f32.mrf.mxu0  ;;  %v1667_v40 = vpop.f32.mrf.mxu1 }
 0x21a   : > { %v1770_v18 = vadd.f32 %v1667_v40, %v6426_v24  ;;  %v6545_v33 = vadd.f32 %v4669_v29, %v1771_v9  ;;  %v7234_v40 = vld [vmem:[#allocation5_spill] sm:$0xff] }
 0x21b   : > { %v1951_v20 = vpop.f32.mrf.mxu0  ;;  %v4592_v31 = vpop.f32.mrf.mxu1  ;;  %5071 = vmatmul.mubr.f32.gmra.mxu1 %v6058_v13 }
 0x21c   : > { %v1773_v35 = vadd.f32 %v4592_v31, %v6429_v63  ;;  %5073 = vmatprep.mubr.f32.mxu1 %v6065_v28  ;;  %v6550_v49 = vadd.f32 %v1941_v4, %v1770_v18 }
 0x21d   : > { %v4675_v45 = vpop.f32.mrf.mxu0  ;;  %v1677_v11 = vpop.f32.mrf.mxu1 }
 0x21e   : > { %v1772_v55 = vadd.f32 %v1677_v11, %v6432_v60  ;;  %v6553_v26 = vadd.f32 %v4672_v16, %v1773_v35  ;;  %v7235_v35 = vld [vmem:[#allocation32_spill] sm:$0xff]  ;;  %v7236_v11 = vld [vmem:[#allocation33_spill] sm:$0xff] }
 0x21f   : > { %v1961_v43 = vpop.f32.mrf.mxu0  ;;  %v4595_v24 = vpop.f32.mrf.mxu1  ;;  %5074 = vmatmul.mubr.f32.gmra.mxu1 %v7228_v51 }
 0x220   : > { %v1775_v37 = vadd.f32 %v4595_v24, %v6435_v39  ;;  %5076 = vmatprep.mubr.f32.mxu1 %v7229_v59  ;;  %v6558_v13 = vadd.f32 %v1951_v20, %v1772_v55 }
 0x221   : > { %v4678_v63 = vpop.f32.mrf.mxu0  ;;  %v1687_v28 = vpop.f32.mrf.mxu1 }
 0x222   : > { %v1774_v8 = vadd.f32 %v1687_v28, %v6438_v50  ;;  %v6561_v46 = vadd.f32 %v4675_v45, %v1775_v37  ;;  %v7237_v28 = vld [vmem:[#allocation34_spill] sm:$0xff] }
 0x223   : > { %v1971_v42 = vpop.f32.mrf.mxu0  ;;  %v4598_v60 = vpop.f32.mrf.mxu1  ;;  %5077 = vmatmul.mubr.f32.gmra.mxu1 %v7230_v27 }
 0x224   : > { %v1777_v57 = vadd.f32 %v4598_v60, %v6441_v52  ;;  %5079 = vmatprep.mubr.f32.mxu1 %v7231_v0  ;;  %v6566_v48 = vadd.f32 %v1961_v43, %v1774_v8 }
 0x225   : > { %v4681_v39 = vpop.f32.mrf.mxu0  ;;  %v1697_v44 = vpop.f32.mrf.mxu1 }
 0x226   : > { %v1776_v62 = vadd.f32 %v1697_v44, %v6444_v25  ;;  %v6569_v29 = vadd.f32 %v4678_v63, %v1777_v57  ;;  %v7239_v44 = vld [vmem:[#allocation4_spill] sm:$0xff] }
 0x227   : > { %v1981_v22 = vpop.f32.mrf.mxu0  ;;  %v4601_v50 = vpop.f32.mrf.mxu1  ;;  %5080 = vmatmul.mubr.f32.gmra.mxu1 %v7232_v6 }
 0x228   : > { %v1779_v4 = vadd.f32 %v4601_v50, %v6447_v1  ;;  %5082 = vmatprep.mubr.f32.mxu1 %v7233_v15  ;;  %v6574_v9 = vadd.f32 %v1971_v42, %v1776_v62  ;;  %v3185_v1 = vrot.slane %v6453_v2, 2  ;;  %v7238_v42 = vld [vmem:[#allocation3_spill] sm:$0xff] }
 0x229   : > { %v4684_v52 = vpop.f32.mrf.mxu0  ;;  %v1707_v16 = vpop.f32.mrf.mxu1 }
 0x22a   : > { %v1778_v18 = vadd.f32 %v1707_v16, %v7234_v40  ;;  %v6577_v20 = vadd.f32 %v4681_v39, %v1779_v4 }
 0x22b   : > { %v1991_v31 = vpop.f32.mrf.mxu0  ;;  %v4604_v25 = vpop.f32.mrf.mxu1  ;;  %5083 = vmatmul.mubr.f32.gmra.mxu1 %v7235_v35 }
 0x22c   : > { %v1781_v45 = vadd.f32 %v4604_v25, %v6458_v10  ;;  %5085 = vmatprep.mubr.f32.mxu1 %v7236_v11  ;;  %v6582_v55 = vadd.f32 %v1981_v22, %v1778_v18  ;;  %v3188_v10 = vrot.slane %v6456_v36, 2 }
 0x22d   : > { %v4687_v43 = vpop.f32.mrf.mxu0  ;;  %v1717_v24 = vpop.f32.mrf.mxu1 }
 0x22e   : > { %v1780_v51 = vadd.f32 %v1717_v24, %v6461_v61  ;;  %v6586_v37 = vadd.f32 %v4684_v52, %v1781_v45  ;;  %v7240_v52 = vld [vmem:[#allocation6_spill] sm:$0xff] }
 0x22f   : > { %v2001_v59 = vpop.f32.mrf.mxu0  ;;  %v4607_v63 = vpop.f32.mrf.mxu1  ;;  %5086 = vmatmul.mubr.f32.gmra.mxu1 %v7237_v28 }
 0x230   : > { %v1783_v8 = vadd.f32 %v4607_v63, %v6465_v54  ;;  %5088 = vmatprep.mubr.f32.mxu1 %v7238_v42  ;;  %v6592_v60 = vadd.f32 %v1991_v31, %v1780_v51  ;;  %v3189_v54 = vsel %vm1401_vm1, %v3185_v1, %v3188_v10 }
 0x231   : > { %v4690_v27 = vpop.f32.mrf.mxu0  ;;  %v1727_v2 = vpop.f32.mrf.mxu1 }
 0x232   : > { %v1782_v57 = vadd.f32 %v1727_v2, %v6469_v17  ;;  %v6595_v0 = vadd.f32 %v4687_v43, %v1783_v8 }
 0x233   : > { %v2011_v61 = vpop.f32.mrf.mxu0  ;;  %v4610_v39 = vpop.f32.mrf.mxu1  ;;  %5089 = vmatmul.mubr.f32.gmra.mxu1 %v7239_v44 }
 0x234   : > { %v1785_v62 = vadd.f32 %v4610_v39, %v6473_v38  ;;  %5091 = vmatprep.mubr.f32.mxu1 %v3185_v1  ;;  %v6600_v22 = vadd.f32 %v2001_v59, %v1782_v57 }
 0x235   : > { %v4693_v36 = vpop.f32.mrf.mxu0  ;;  %v1737_v50 = vpop.f32.mrf.mxu1 }
 0x236   : > { %v1784_v6 = vadd.f32 %v1737_v50, %v6476_v34  ;;  %v6603_v4 = vadd.f32 %v4690_v27, %v1785_v62 }
 0x237   : > { %v2021_v17 = vpop.f32.mrf.mxu0  ;;  %v4613_v15 = vpop.f32.mrf.mxu1  ;;  %5092 = vmatmul.mubr.f32.gmra.mxu1 %v3189_v54 }
 0x238   : > { %v1787_v16 = vadd.f32 %v4613_v15, %v7240_v52  ;;  %v6606_v40 = vadd.f32 %v2011_v61, %v1784_v6 }
 0x239   : > { %v6608_v18 = vpop.f32.mrf.mxu0  ;;  %v1747_v38 = vpop.f32.mrf.mxu1 }
 0x23a   : > { %v1786_v31 = vadd.f32 %v1747_v38, %v6482_v14  ;;  %v6611_v25 = vadd.f32 %v4693_v36, %v1787_v16 }
 0x23b   : > { %v6613_v35 = vpop.f32.mrf.mxu0  ;;  %v4728_v45 = vpop.f32.mrf.mxu1 }
 0x23c   : > { %v6616_v34 = vadd.f32 %v4728_v45, %v6489_v53  ;;  %v6618_v11 = vadd.f32 %v2021_v17, %v1786_v31 }
 0x23d   : > { %v6620_v1 = vpop.f32.mrf.mxu0  ;;  %v2155_v43 = vpop.f32.mrf.mxu1 }
 0x23e   : > { %v6623_v24 = vadd.f32 %v2155_v43, %v6494_v7 }
 0x23f   : > { %v6625_v51 = vpop.f32.mrf.mxu0  ;;  %v4731_v59 = vpop.f32.mrf.mxu1 }
 0x240   : > { %v6628_v14 = vadd.f32 %v4731_v59, %v6497_v56 }
 0x241   : > { %v6630_v63 = vpop.f32.mrf.mxu0  ;;  %v2165_v28 = vpop.f32.mrf.mxu1 }
 0x242   : > { %v6633_v53 = vadd.f32 %v2165_v28, %v6502_v23 }
 0x243   : > { %v6635_v8 = vpop.f32.mrf.mxu0  ;;  %v4734_v42 = vpop.f32.mrf.mxu1 }
 0x244   : > { %v6638_v10 = vadd.f32 %v4734_v42, %v6505_v41 }
 0x245   : > { %v6640_v7 = vpop.f32.mrf.mxu0  ;;  %v2175_v27 = vpop.f32.mrf.mxu1 }
 0x246   : > { %v6643_v2 = vadd.f32 %v2175_v27, %v6510_v21 }
 0x247   : > { %v6645_v56 = vpop.f32.mrf.mxu0  ;;  %v4737_v57 = vpop.f32.mrf.mxu1 }
 0x248   : > { %v6648_v61 = vadd.f32 %v4737_v57, %v6513_v5 }
 0x249   : > { %v6650_v23 = vpop.f32.mrf.mxu0  ;;  %v2185_v39 = vpop.f32.mrf.mxu1 }
 0x24a   : > { %v6653_v44 = vadd.f32 %v2185_v39, %v6518_v3 }
 0x24b   : > { %v6655_v41 = vpop.f32.mrf.mxu0  ;;  %v4740_v62 = vpop.f32.mrf.mxu1 }
 0x24c   : > { %v6658_v54 = vadd.f32 %v4740_v62, %v6521_v47 }
 0x24d   : > { %v6660_v21 = vpop.f32.mrf.mxu0  ;;  %v2195_v36 = vpop.f32.mrf.mxu1 }
 0x24e   : > { %v6663_v50 = vadd.f32 %v2195_v36, %v6526_v19 }
 0x24f   : > { %v6665_v5 = vpop.f32.mrf.mxu0  ;;  %v4743_v6 = vpop.f32.mrf.mxu1 }
 0x250   : > { %v6668_v17 = vadd.f32 %v4743_v6, %v6529_v12 }
 0x251   : > { %v6670_v3 = vpop.f32.mrf.mxu0  ;;  %v2205_v15 = vpop.f32.mrf.mxu1 }
 0x252   : > { %v6673_v52 = vadd.f32 %v2205_v15, %v6534_v30 }
 0x253   : > { %v6675_v47 = vpop.f32.mrf.mxu0  ;;  %v4746_v16 = vpop.f32.mrf.mxu1 }
 0x254   : > { %v6678_v38 = vadd.f32 %v4746_v16, %v6537_v58 }
 0x255   : > { %v6680_v19 = vpop.f32.mrf.mxu0  ;;  %v2215_v31 = vpop.f32.mrf.mxu1 }
 0x256   : > { %7241 = vst [vmem:[#allocation7_spill] sm:$0xff] %v6680_v19  ;;  %v6683_v45 = vadd.f32 %v2215_v31, %v6542_v32 }
 0x257   : > { %v6685_v12 = vpop.f32.mrf.mxu0  ;;  %v4749_v43 = vpop.f32.mrf.mxu1 }
 0x258   : > { %7242 = vst [vmem:[#allocation8_spill] sm:$0xff] %v6685_v12  ;;  %v6688_v59 = vadd.f32 %v4749_v43, %v6545_v33 }
 0x259   : > { %v6690_v30 = vpop.f32.mrf.mxu0  ;;  %v2225_v28 = vpop.f32.mrf.mxu1 }
 0x25a   : > { %7243 = vst [vmem:[#allocation9_spill] sm:$0xff] %v6690_v30  ;;  %v6693_v42 = vadd.f32 %v2225_v28, %v6550_v49 }
 0x25b   : > { %v6695_v58 = vpop.f32.mrf.mxu0  ;;  %v4752_v27 = vpop.f32.mrf.mxu1 }
 0x25c   : > { %7244 = vst [vmem:[#allocation10_spill] sm:$0xff] %v6693_v42  ;;  %7245 = vst [vmem:[#allocation11_spill] sm:$0xff] %v6695_v58  ;;  %v6698_v57 = vadd.f32 %v4752_v27, %v6553_v26 }
 0x25d   : > { %v6700_v32 = vpop.f32.mrf.mxu0  ;;  %v2235_v39 = vpop.f32.mrf.mxu1 }
 0x25e   : > { %7246 = vst [vmem:[#allocation12_spill] sm:$0xff] %v6698_v57  ;;  %7247 = vst [vmem:[#allocation13_spill] sm:$0xff] %v6700_v32  ;;  %v6703_v62 = vadd.f32 %v2235_v39, %v6558_v13 }
 0x25f   : > { %v6705_v33 = vpop.f32.mrf.mxu0  ;;  %v4755_v36 = vpop.f32.mrf.mxu1 }
 0x260   : > { %7248 = vst [vmem:[#allocation14_spill] sm:$0xff] %v6703_v62  ;;  %7249 = vst [vmem:[#allocation15_spill] sm:$0xff] %v6705_v33  ;;  %v6708_v6 = vadd.f32 %v4755_v36, %v6561_v46 }
 0x261   : > { %v6710_v49 = vpop.f32.mrf.mxu0  ;;  %v2245_v15 = vpop.f32.mrf.mxu1 }
 0x262   : > { %7250 = vst [vmem:[#allocation16_spill] sm:$0xff] %v6708_v6  ;;  %7251 = vst [vmem:[#allocation17_spill] sm:$0xff] %v6710_v49  ;;  %v6713_v16 = vadd.f32 %v2245_v15, %v6566_v48 }
 0x263   : > { %v6715_v26 = vpop.f32.mrf.mxu0  ;;  %v4758_v31 = vpop.f32.mrf.mxu1 }
 0x264   : > { %7252 = vst [vmem:[#allocation18_spill] sm:$0xff] %v6713_v16  ;;  %7253 = vst [vmem:[#allocation19_spill] sm:$0xff] %v6715_v26  ;;  %v6718_v43 = vadd.f32 %v4758_v31, %v6569_v29 }
 0x265   : > { %v6720_v13 = vpop.f32.mrf.mxu0  ;;  %v2255_v28 = vpop.f32.mrf.mxu1 }
 0x266   : > { %7254 = vst [vmem:[#allocation20_spill] sm:$0xff] %v6718_v43  ;;  %7255 = vst [vmem:[#allocation21_spill] sm:$0xff] %v6720_v13  ;;  %v6723_v27 = vadd.f32 %v2255_v28, %v6574_v9 }
 0x267   : > { %v6725_v46 = vpop.f32.mrf.mxu0  ;;  %v4761_v39 = vpop.f32.mrf.mxu1 }
 0x268   : > { %7256 = vst [vmem:[#allocation22_spill] sm:$0xff] %v6723_v27  ;;  %7257 = vst [vmem:[#allocation23_spill] sm:$0xff] %v6725_v46  ;;  %v6728_v36 = vadd.f32 %v4761_v39, %v6577_v20 }
 0x269   : > { %v6730_v48 = vpop.f32.mrf.mxu0  ;;  %v2265_v15 = vpop.f32.mrf.mxu1 }
 0x26a   : > { %7258 = vst [vmem:[#allocation24_spill] sm:$0xff] %v6728_v36  ;;  %7259 = vst [vmem:[#allocation25_spill] sm:$0xff] %v6730_v48  ;;  %v6733_v26 = vadd.f32 %v2265_v15, %v6582_v55 }
 0x26b   : > { %v6735_v29 = vpop.f32.mrf.mxu0  ;;  %v4764_v31 = vpop.f32.mrf.mxu1 }
 0x26c   : > { %7260 = vst [vmem:[#allocation26_spill] sm:$0xff] %v6733_v26  ;;  %7261 = vst [vmem:[#allocation27_spill] sm:$0xff] %v6735_v29  ;;  %v6738_v13 = vadd.f32 %v4764_v31, %v6586_v37 }
 0x26d   : > { %v6740_v9 = vpop.f32.mrf.mxu0  ;;  %v2275_v28 = vpop.f32.mrf.mxu1 }
 0x26e   : > { %7262 = vst [vmem:[#allocation28_spill] sm:$0xff] %v6738_v13  ;;  %7263 = vst [vmem:[#allocation29_spill] sm:$0xff] %v6740_v9  ;;  %v6743_v46 = vadd.f32 %v2275_v28, %v6592_v60 }
 0x26f   : > { %v6745_v20 = vpop.f32.mrf.mxu0  ;;  %v4767_v39 = vpop.f32.mrf.mxu1 }
 0x270   : > { %7264 = vst [vmem:[#allocation30_spill] sm:$0xff] %v6743_v46  ;;  %7265 = vst [vmem:[#allocation31_spill] sm:$0xff] %v6745_v20  ;;  %v6748_v48 = vadd.f32 %v4767_v39, %v6595_v0 }
 0x271   : > { %v6750_v55 = vpop.f32.mrf.mxu0  ;;  %v2285_v15 = vpop.f32.mrf.mxu1 }
 0x272   : > { %7266 = vst [vmem:[#allocation5_spill] sm:$0xff] %v6748_v48  ;;  %7267 = vst [vmem:[#allocation32_spill] sm:$0xff] %v6750_v55  ;;  %v6753_v29 = vadd.f32 %v2285_v15, %v6600_v22 }
 0x273   : > { %v6755_v37 = vpop.f32.mrf.mxu0  ;;  %v4770_v31 = vpop.f32.mrf.mxu1 }
 0x274   : > { %7268 = vst [vmem:[#allocation33_spill] sm:$0xff] %v6753_v29  ;;  %7269 = vst [vmem:[#allocation34_spill] sm:$0xff] %v6755_v37  ;;  %v6758_v9 = vadd.f32 %v4770_v31, %v6603_v4 }
 0x275   : > { %v6760_v60 = vpop.f32.mrf.mxu0  ;;  %v2295_v28 = vpop.f32.mrf.mxu1 }
 0x276   : > { %7270 = vst [vmem:[#allocation3_spill] sm:$0xff] %v6758_v9  ;;  %7271 = vst [vmem:[#allocation4_spill] sm:$0xff] %v6760_v60  ;;  %v6763_v20 = vadd.f32 %v2295_v28, %v6606_v40 }
 0x277   : > { %v6765_v0 = vpop.f32.mrf.mxu0  ;;  %v4773_v39 = vpop.f32.mrf.mxu1 }
 0x278   : > { %7272 = vst [vmem:[#allocation6_spill] sm:$0xff] %v6763_v20  ;;  %7273 = vst [vmem:[#allocation35_spill] sm:$0xff] %v6765_v0  ;;  %v6768_v55 = vadd.f32 %v4773_v39, %v6611_v25 }
 0x279   : > { %v2305_v22 = vpop.f32.mrf.mxu1  ;;  %v4968_v37 = vpop.f32.mrf.mxu0 }
 0x27a   : > { %7274 = vst [vmem:[#allocation36_spill] sm:$0xff] %v6768_v55  ;;  %v6771_v15 = vadd.f32 %v2305_v22, %v6618_v11 }
 0x27b   : > { %v4888_v29 = vpop.f32.mrf.mxu1  ;;  %v2994_v31 = vpop.f32.mrf.mxu0 }
 0x27c   : > { %7275 = vst [vmem:[#allocation37_spill] sm:$0xff] %v6771_v15 }
 0x27d   : > { %v2710_v4 = vpop.f32.mrf.mxu1  ;;  %v6773_v48 = vpop.f32.mrf.mxu0 }
 0x27f   : > { %v4891_v9 = vpop.f32.mrf.mxu1  ;;  %v6777_v0 = vpop.f32.mrf.mxu0 }
 0x281   : > { %v2720_v60 = vpop.f32.mrf.mxu1  ;;  %v6783_v39 = vpop.f32.mrf.mxu0 }
 0x283   : > { %v4894_v40 = vpop.f32.mrf.mxu1  ;;  %v6789_v15 = vpop.f32.mrf.mxu0 }
 0x285   : > { %v6775_v28 = vpop.f32.mrf.mxu1  ;;  %v6795_v13 = vpop.f32.mrf.mxu0 }
 0x287   : > { %v6779_v20 = vpop.f32.mrf.mxu1  ;;  %v6801_v27 = vpop.f32.mrf.mxu0 }
 0x289   : > { %v6781_v25 = vpop.f32.mrf.mxu1  ;;  %v6807_v33 = vpop.f32.mrf.mxu0 }
 0x28b   : > { %v6785_v11 = vpop.f32.mrf.mxu1  ;;  %v6813_v6 = vpop.f32.mrf.mxu0 }
 0x28d   : > { %v6787_v22 = vpop.f32.mrf.mxu1  ;;  %v6819_v30 = vpop.f32.mrf.mxu0 }
 0x28f   : > { %v6791_v55 = vpop.f32.mrf.mxu1 }
 0x291   : > { %v6793_v46 = vpop.f32.mrf.mxu1 }
 0x293   : > { %v6797_v26 = vpop.f32.mrf.mxu1 }
 0x295   : > { %v6799_v36 = vpop.f32.mrf.mxu1 }
 0x297   : > { %v6803_v49 = vpop.f32.mrf.mxu1 }
 0x298   : > { %7276 = vst [vmem:[#allocation38_spill] sm:$0xff] %v6803_v49  ;;  %v6825_v49 = vpop.f32.mrf.mxu0 }
 0x299   : > { %v6805_v43 = vpop.f32.mrf.mxu1  ;;  %7284 = vst [vmem:[#allocation46_spill] sm:$0xff] %v6825_v49 }
 0x29a   : > { %7277 = vst [vmem:[#allocation39_spill] sm:$0xff] %v6805_v43 }
 0x29b   : > { %v6809_v16 = vpop.f32.mrf.mxu1 }
 0x29c   : > { %7278 = vst [vmem:[#allocation40_spill] sm:$0xff] %v6809_v16  ;;  %v6831_v16 = vpop.f32.mrf.mxu0 }
 0x29d   : > { %v6811_v32 = vpop.f32.mrf.mxu1  ;;  %7287 = vst [vmem:[#allocation49_spill] sm:$0xff] %v6831_v16 }
 0x29e   : > { %7279 = vst [vmem:[#allocation41_spill] sm:$0xff] %v6811_v32 }
 0x29f   : > { %v6815_v58 = vpop.f32.mrf.mxu1 }
 0x2a0   : > { %7280 = vst [vmem:[#allocation42_spill] sm:$0xff] %v6815_v58  ;;  %v6837_v58 = vpop.f32.mrf.mxu0 }
 0x2a1   : > { %v6817_v62 = vpop.f32.mrf.mxu1  ;;  %7290 = vst [vmem:[#allocation52_spill] sm:$0xff] %v6837_v58 }
 0x2a2   : > { %7281 = vst [vmem:[#allocation43_spill] sm:$0xff] %v6817_v62 }
 0x2a3   : > { %v6821_v57 = vpop.f32.mrf.mxu1 }
 0x2a4   : > { %7282 = vst [vmem:[#allocation44_spill] sm:$0xff] %v6821_v57 }
 0x2a5   : > { %v6823_v12 = vpop.f32.mrf.mxu1 }
 0x2a6   : > { %7283 = vst [vmem:[#allocation45_spill] sm:$0xff] %v6823_v12  ;;  %v6843_v12 = vpop.f32.mrf.mxu0 }
 0x2a7   : > { %v6827_v43 = vpop.f32.mrf.mxu1  ;;  %7293 = vst [vmem:[#allocation55_spill] sm:$0xff] %v6843_v12 }
 0x2a8   : > { %7285 = vst [vmem:[#allocation47_spill] sm:$0xff] %v6827_v43 }
 0x2a9   : > { %v6829_v42 = vpop.f32.mrf.mxu1 }
 0x2aa   : > { %7286 = vst [vmem:[#allocation48_spill] sm:$0xff] %v6829_v42  ;;  %v2596_v42 = vadd.f32 %v6608_v18, %v6616_v34  ;;  %v2597_v18 = vadd.f32 %v6625_v51, %v6633_v53  ;;  %v2600_v34 = vadd.f32 %v6630_v63, %v6638_v10 }
 0x2ab   : > { %v6833_v32 = vpop.f32.mrf.mxu1 }
 0x2ac   : > { %7288 = vst [vmem:[#allocation50_spill] sm:$0xff] %v6833_v32  ;;  %v2870_v16 = vadd.f32 %v4888_v29, %v2596_v42  ;;  %v6853_v32 = vpop.f32.mrf.mxu0  ;;  %v2871_v51 = vadd.f32 %v2720_v60, %v2597_v18  ;;  %v2874_v42 = vadd.f32 %v4894_v40, %v2600_v34 }
 0x2ad   : > { %v6835_v19 = vpop.f32.mrf.mxu1 }
 0x2ae   : > { %7289 = vst [vmem:[#allocation51_spill] sm:$0xff] %v6835_v19  ;;  %v2595_v19 = vadd.f32 %v6613_v35, %v6623_v24  ;;  %v3154_v35 = vadd.f32 %v4968_v37, %v2870_v16  ;;  %v6871_v24 = vpop.f32.mrf.mxu0  ;;  %v3506_v16 = vld [vmem:[%s6867_s22 + $0x8] sm:$0xff] }
 0x2af   : > { %v6839_v62 = vpop.f32.mrf.mxu1 }
 0x2b0   : > { %7291 = vst [vmem:[#allocation53_spill] sm:$0xff] %v6839_v62  ;;  %v2869_v62 = vadd.f32 %v2710_v4, %v2595_v19  ;;  %v2602_v4 = vadd.f32 %v6640_v7, %v6648_v61  ;;  %v6886_v60 = vpop.f32.mrf.mxu0  ;;  %v2601_v7 = vadd.f32 %v6645_v56, %v6653_v44  ;;  %v3508_v61 = vld [vmem:[%s6867_s22 + $0x18] sm:$0xff] }
 0x2b1   : > { %v6841_v57 = vpop.f32.mrf.mxu1 }
 0x2b2   : > { %7292 = vst [vmem:[#allocation54_spill] sm:$0xff] %v6841_v57  ;;  %v2598_v57 = vadd.f32 %v6620_v1, %v6628_v14  ;;  %v6876_v14 = vld [vmem:[%s7108_s5] ss:$0 sm:$0xff]  ;;  %v3153_v19 = vadd.f32 %v2994_v31, %v2869_v62  ;;  %v2876_v18 = vadd.f32 %v6779_v20, %v2602_v4 }
 0x2b3   : > { %v6845_v49 = vpop.f32.mrf.mxu1 }
 0x2b4   : > { %7294 = vst [vmem:[#allocation56_spill] sm:$0xff] %v6845_v49  ;;  %v2872_v49 = vadd.f32 %v4891_v9, %v2598_v57  ;;  %v2599_v57 = vadd.f32 %v6635_v8, %v6643_v2  ;;  %v3505_v8 = vld [vmem:[%s6867_s22] sm:$0xff] }
 0x2b5   : > { %v6849_v43 = vpop.f32.mrf.mxu1 }
 0x2b6   : > { %v3156_v9 = vadd.f32 %v6773_v48, %v2872_v49  ;;  %v2873_v37 = vadd.f32 %v6775_v28, %v2599_v57  ;;  %v3155_v48 = vadd.f32 %v6777_v0, %v2871_v51  ;;  %v3158_v28 = vadd.f32 %v6783_v39, %v2874_v42  ;;  %v6906_v51 = vpop.f32.mrf.mxu0 }
 0x2b7   : > { %v6855_v58 = vpop.f32.mrf.mxu1  ;;  %v2604_v0 = vadd.f32 %v6650_v23, %v6658_v54  ;;  %v2875_v39 = vadd.f32 %v6781_v25, %v2601_v7  ;;  %v2603_v23 = vadd.f32 %v6655_v41, %v6663_v50  ;;  %v3510_v54 = vld [vmem:[%s6867_s22 + $0x28] sm:$0xff] }
 0x2b8   : > { %v3157_v44 = vadd.f32 %v6789_v15, %v2873_v37  ;;  %v3509_v37 = vld [vmem:[%s6867_s22 + $0x20] sm:$0xff] }
 0x2b9   : > { %v6859_v12 = vpop.f32.mrf.mxu1  ;;  %v2878_v57 = vadd.f32 %v6785_v11, %v2604_v0  ;;  %v6923_v11 = vpop.f32.mrf.mxu0 }
 0x2bb   : > { %v5048_v1 = vpop.f32.mrf.mxu1  ;;  %v6938_v7 = vpop.f32.mrf.mxu0 }
 0x2bc   : > { %v3435_v53 = vadd.f32 %v5048_v1, %v3154_v35 }
 0x2bd   : > { %v3275_v63 = vpop.f32.mrf.mxu1 }
 0x2be   : > { %v3474_v10 = vadd.f32 %v6876_v14, %v3435_v53  ;;  %v3434_v29 = vadd.f32 %v3275_v63, %v3153_v19  ;;  %v3507_v53 = vld [vmem:[%s6867_s22 + $0x10] sm:$0xff] }
 0x2bf   : > { %v5051_v2 = vpop.f32.mrf.mxu1 }
 0x2c0   : > { %v3538_v62 = vadd.f32 %v3506_v16, %v3474_v10  ;;  %v3473_v31 = vadd.f32 %v6876_v14, %v3434_v29  ;;  %v3437_v49 = vadd.f32 %v5051_v2, %v3156_v9  ;;  %v3160_v10 = vadd.f32 %v6795_v13, %v2876_v18 }
 0x2c1   : > { %v3285_v40 = vpop.f32.mrf.mxu1  ;;  %v2877_v29 = vadd.f32 %v6787_v22, %v2603_v23  ;;  %v2606_v9 = vadd.f32 %v6660_v21, %v6668_v17  ;;  %v3159_v2 = vadd.f32 %v6801_v27, %v2875_v39  ;;  %v2605_v13 = vadd.f32 %v6665_v5, %v6673_v52  ;;  %v3512_v22 = vld [vmem:[%s6867_s22 + $0x38] sm:$0xff] }
 0x2c2   : > { %3570 = vst [vmem:[%s6892_s27 + $0x8] sm:$0xff] %v3538_v62  ;;  %v3537_v35 = vadd.f32 %v3505_v8, %v3473_v31  ;;  %v3476_v34 = vadd.f32 %v6876_v14, %v3437_v49  ;;  %v3436_v1 = vadd.f32 %v3285_v40, %v3155_v48  ;;  %v3162_v21 = vadd.f32 %v6807_v33, %v2878_v57  ;;  %v7297_v57 = vld [vmem:[#allocation10_spill] sm:$0xff] }
 0x2c3   : > { %v5054_v56 = vpop.f32.mrf.mxu1  ;;  %v2880_v17 = vadd.f32 %v6791_v55, %v2606_v9  ;;  %v2608_v27 = vadd.f32 %v6670_v3, %v6678_v38  ;;  %v3161_v52 = vadd.f32 %v6813_v6, %v2877_v29  ;;  %v2879_v33 = vadd.f32 %v6793_v46, %v2605_v13  ;;  %v3514_v38 = vld [vmem:[%s6867_s22 + $0x48] sm:$0xff]  ;;  %v7301_v9 = vld [vmem:[#allocation12_spill] sm:$0xff] }
 0x2c4   : > { %3569 = vst [vmem:[%s6892_s27] sm:$0xff] %v3537_v35  ;;  %v3540_v20 = vadd.f32 %v3508_v61, %v3476_v34  ;;  %v3475_v19 = vadd.f32 %v6876_v14, %v3436_v1  ;;  %v3439_v42 = vadd.f32 %v5054_v56, %v3158_v28  ;;  %v3511_v61 = vld [vmem:[%s6867_s22 + $0x30] sm:$0xff]  ;;  %v2607_v3 = vadd.f32 %v6675_v47, %v6683_v45 }
 0x2c5   : > { %v3295_v16 = vpop.f32.mrf.mxu1  ;;  %v2882_v18 = vadd.f32 %v6797_v26, %v2608_v27  ;;  %v3164_v1 = vadd.f32 %v6819_v30, %v2880_v17  ;;  %v6955_v26 = vpop.f32.mrf.mxu0  ;;  %v7298_v30 = vld [vmem:[#allocation8_spill] sm:$0xff]  ;;  %v7306_v27 = vld [vmem:[#allocation14_spill] sm:$0xff] }
 0x2c6   : > { %3572 = vst [vmem:[%s6892_s27 + $0x18] sm:$0xff] %v3540_v20  ;;  %v3539_v63 = vadd.f32 %v3507_v53, %v3475_v19  ;;  %v3478_v15 = vadd.f32 %v6876_v14, %v3439_v42  ;;  %v3438_v25 = vadd.f32 %v3295_v16, %v3157_v44  ;;  %v2881_v0 = vadd.f32 %v6799_v36, %v2607_v3  ;;  %v7295_v53 = vld [vmem:[#allocation7_spill] sm:$0xff]  ;;  %v3513_v44 = vld [vmem:[%s6867_s22 + $0x40] sm:$0xff]  ;;  %v7296_v19 = vld [vmem:[#allocation46_spill] sm:$0xff] }
 0x2c7   : > { %v5057_v41 = vpop.f32.mrf.mxu1  ;;  %v2610_v56 = vadd.f32 %v7295_v53, %v6688_v59  ;;  %v3163_v42 = vadd.f32 %v7296_v19, %v2879_v33  ;;  %v2609_v23 = vadd.f32 %v7298_v30, %v7297_v57  ;;  %v3516_v36 = vld [vmem:[%s6867_s22 + $0x58] sm:$0xff]  ;;  %v7299_v16 = vld [vmem:[#allocation49_spill] sm:$0xff] }
 0x2c8   : > { %3571 = vst [vmem:[%s6892_s27 + $0x10] sm:$0xff] %v3539_v63  ;;  %v3542_v50 = vadd.f32 %v3510_v54, %v3478_v15  ;;  %v3477_v4 = vadd.f32 %v6876_v14, %v3438_v25  ;;  %v3441_v8 = vadd.f32 %v5057_v41, %v3160_v10  ;;  %v3166_v59 = vadd.f32 %v7299_v16, %v2882_v18  ;;  %v7300_v63 = vld [vmem:[#allocation38_spill] sm:$0xff]  ;;  %v7308_v18 = vld [vmem:[#allocation55_spill] sm:$0xff] }
 0x2c9   : > { %v3305_v62 = vpop.f32.mrf.mxu1  ;;  %v2884_v15 = vadd.f32 %v7300_v63, %v2610_v56  ;;  %v7315_v63 = vld [vmem:[#allocation20_spill] sm:$0xff] }
 0x2ca   : > { %3574 = vst [vmem:[%s6892_s27 + $0x28] sm:$0xff] %v3542_v50  ;;  %v3541_v31 = vadd.f32 %v3509_v37, %v3477_v4  ;;  %v3480_v49 = vadd.f32 %v6876_v14, %v3441_v8  ;;  %v3440_v48 = vadd.f32 %v3305_v62, %v3159_v2  ;;  %v7302_v37 = vld [vmem:[#allocation9_spill] sm:$0xff]  ;;  %v6970_v50 = vpop.f32.mrf.mxu0  ;;  %v3515_v4 = vld [vmem:[%s6867_s22 + $0x50] sm:$0xff]  ;;  %v7303_v2 = vld [vmem:[#allocation52_spill] sm:$0xff] }
 0x2cb   : > { %v5060_v5 = vpop.f32.mrf.mxu1  ;;  %v2612_v41 = vadd.f32 %v7302_v37, %v7301_v9  ;;  %v3165_v13 = vadd.f32 %v7303_v2, %v2881_v0  ;;  %v3168_v3 = vadd.f32 %v7308_v18, %v2884_v15  ;;  %v3517_v0 = vld [vmem:[%s6867_s22 + $0x60] sm:$0xff]  ;;  %v7317_v37 = vld [vmem:[#allocation43_spill] sm:$0xff]  ;;  %v7318_v2 = vld [vmem:[#allocation44_spill] sm:$0xff] }
 0x2cc   : > { %3573 = vst [vmem:[%s6892_s27 + $0x20] sm:$0xff] %v3541_v31  ;;  %v3544_v55 = vadd.f32 %v3512_v22, %v3480_v49  ;;  %v3479_v40 = vadd.f32 %v6876_v14, %v3440_v48  ;;  %v3443_v28 = vadd.f32 %v5060_v5, %v3162_v21  ;;  %v7304_v22 = vld [vmem:[#allocation39_spill] sm:$0xff]  ;;  %v7305_v49 = vld [vmem:[#allocation40_spill] sm:$0xff]  ;;  %v7316_v15 = vld [vmem:[#allocation17_spill] sm:$0xff] }
 0x2cd   : > { %v3315_v35 = vpop.f32.mrf.mxu1  ;;  %v2883_v62 = vadd.f32 %v7304_v22, %v2609_v23  ;;  %v2886_v48 = vadd.f32 %v7305_v49, %v2612_v41  ;;  %v7314_v23 = vld [vmem:[#allocation42_spill] sm:$0xff] }
 0x2ce   : > { %3576 = vst [vmem:[%s6892_s27 + $0x38] sm:$0xff] %v3544_v55  ;;  %v3543_v34 = vadd.f32 %v3511_v61, %v3479_v40  ;;  %v3482_v6 = vadd.f32 %v6876_v14, %v3443_v28  ;;  %v3442_v46 = vadd.f32 %v3315_v35, %v3161_v52  ;;  %v7307_v61 = vld [vmem:[#allocation11_spill] sm:$0xff]  ;;  %v3518_v52 = vld [vmem:[%s6867_s22 + $0x68] sm:$0xff] }
 0x2cf   : > { %v5063_v47 = vpop.f32.mrf.mxu1  ;;  %v2611_v5 = vadd.f32 %v7307_v61, %v7306_v27  ;;  %v3170_v30 = vadd.f32 %v6871_v24, %v2886_v48  ;;  %v7319_v22 = vld [vmem:[#allocation22_spill] sm:$0xff]  ;;  %v7321_v61 = vld [vmem:[#allocation45_spill] sm:$0xff] }
 0x2d0   : > { %3575 = vst [vmem:[%s6892_s27 + $0x30] sm:$0xff] %v3543_v34  ;;  %v3546_v45 = vadd.f32 %v3514_v38, %v3482_v6  ;;  %v3481_v39 = vadd.f32 %v6876_v14, %v3442_v46  ;;  %v3445_v20 = vadd.f32 %v5063_v47, %v3164_v1  ;;  %v7309_v38 = vld [vmem:[#allocation41_spill] sm:$0xff]  ;;  %v7310_v34 = vld [vmem:[#allocation16_spill] sm:$0xff]  ;;  %v6987_v1 = vpop.f32.mrf.mxu0 }
 0x2d1   : > { %v3325_v54 = vpop.f32.mrf.mxu1  ;;  %v2885_v35 = vadd.f32 %v7309_v38, %v2611_v5  ;;  %v7311_v6 = vld [vmem:[#allocation13_spill] sm:$0xff] }
 0x2d2   : > { %3578 = vst [vmem:[%s6892_s27 + $0x48] sm:$0xff] %v3546_v45  ;;  %v3545_v25 = vadd.f32 %v3513_v44, %v3481_v39  ;;  %v3484_v10 = vadd.f32 %v6876_v14, %v3445_v20  ;;  %v3444_v29 = vadd.f32 %v3325_v54, %v3163_v42  ;;  %v2614_v46 = vadd.f32 %v7311_v6, %v7310_v34  ;;  %v7312_v39 = vld [vmem:[#allocation18_spill] sm:$0xff]  ;;  %v7313_v20 = vld [vmem:[#allocation15_spill] sm:$0xff]  ;;  %v3520_v42 = vld [vmem:[%s6867_s22 + $0x78] sm:$0xff] }
 0x2d3   : > { %v5066_v8 = vpop.f32.mrf.mxu1  ;;  %v3167_v45 = vadd.f32 %v6853_v32, %v2883_v62  ;;  %v2613_v19 = vadd.f32 %v7313_v20, %v7312_v39  ;;  %v2616_v32 = vadd.f32 %v7316_v15, %v7315_v63  ;;  %v3169_v9 = vadd.f32 %v6886_v60, %v2885_v35  ;;  %v7320_v62 = vld [vmem:[#allocation19_spill] sm:$0xff]  ;;  %v7324_v6 = vld [vmem:[#allocation26_spill] sm:$0xff] }
 0x2d4   : > { %3577 = vst [vmem:[%s6892_s27 + $0x40] sm:$0xff] %v3545_v25  ;;  %v3548_v21 = vadd.f32 %v3516_v36, %v3484_v10  ;;  %v3483_v17 = vadd.f32 %v6876_v14, %v3444_v29  ;;  %v3447_v31 = vadd.f32 %v5066_v8, %v3166_v59  ;;  %v2888_v36 = vadd.f32 %v7314_v23, %v2614_v46  ;;  %v7002_v25 = vpop.f32.mrf.mxu0  ;;  %v3519_v10 = vld [vmem:[%s6867_s22 + $0x70] sm:$0xff]  ;;  %v7330_v15 = vld [vmem:[#allocation50_spill] sm:$0xff] }
 0x2d5   : > { %v3335_v33 = vpop.f32.mrf.mxu1  ;;  %v2887_v24 = vadd.f32 %v7317_v37, %v2613_v19  ;;  %v7325_v46 = vld [vmem:[#allocation23_spill] sm:$0xff]  ;;  %v7327_v19 = vld [vmem:[#allocation28_spill] sm:$0xff]  ;;  %v3526_v37 = vld [vmem:[%s6867_s22 + $0xa8] sm:$0xff] }
 0x2d6   : > { %3580 = vst [vmem:[%s6892_s27 + $0x58] sm:$0xff] %v3548_v21  ;;  %v3547_v55 = vadd.f32 %v3515_v4, %v3483_v17  ;;  %v3486_v40 = vadd.f32 %v6876_v14, %v3447_v31  ;;  %v3446_v28 = vadd.f32 %v3335_v33, %v3165_v13  ;;  %v2890_v13 = vadd.f32 %v7318_v2, %v2616_v32  ;;  %v3522_v17 = vld [vmem:[%s6867_s22 + $0x88] sm:$0xff]  ;;  %v7323_v33 = vld [vmem:[#allocation21_spill] sm:$0xff]  ;;  %v7333_v2 = vld [vmem:[#allocation51_spill] sm:$0xff] }
 0x2d7   : > { %v5069_v53 = vpop.f32.mrf.mxu1  ;;  %v2615_v21 = vadd.f32 %v7320_v62, %v7319_v22  ;;  %v3172_v27 = vadd.f32 %v6906_v51, %v2888_v36  ;;  %v3171_v34 = vadd.f32 %v6923_v11, %v2887_v24  ;;  %v2617_v51 = vadd.f32 %v7325_v46, %v7324_v6  ;;  %v7334_v62 = vld [vmem:[#allocation5_spill] sm:$0xff]  ;;  %v7339_v46 = vld [vmem:[#allocation3_spill] sm:$0xff] }
 0x2d8   : > { %3579 = vst [vmem:[%s6892_s27 + $0x50] sm:$0xff] %v3547_v55  ;;  %v3550_v56 = vadd.f32 %v3518_v52, %v3486_v40  ;;  %v3485_v44 = vadd.f32 %v6876_v14, %v3446_v28  ;;  %v3449_v47 = vadd.f32 %v5069_v53, %v3168_v3  ;;  %v7322_v52 = vld [vmem:[#allocation24_spill] sm:$0xff]  ;;  %v3114_v40 = vpop.f32.mrf.mxu0  ;;  %v3521_v28 = vld [vmem:[%s6867_s22 + $0x80] sm:$0xff] }
 0x2d9   : > { %v3345_v57 = vpop.f32.mrf.mxu1  ;;  %v2889_v5 = vadd.f32 %v7321_v61, %v2615_v21  ;;  %v2618_v55 = vadd.f32 %v7323_v33, %v7322_v52  ;;  %v7335_v21 = vld [vmem:[#allocation29_spill] sm:$0xff]  ;;  %v7337_v52 = vld [vmem:[#allocation31_spill] sm:$0xff]  ;;  %v3528_v33 = vld [vmem:[%s6867_s22 + $0xb8] sm:$0xff] }
 0x2da   : > { %3582 = vst [vmem:[%s6892_s27 + $0x68] sm:$0xff] %v3550_v56  ;;  %v3549_v54 = vadd.f32 %v3517_v0, %v3485_v44  ;;  %v3488_v16 = vadd.f32 %v6876_v14, %v3449_v47  ;;  %v3448_v59 = vadd.f32 %v3345_v57, %v3167_v45  ;;  %v3524_v0 = vld [vmem:[%s6867_s22 + $0x98] sm:$0xff]  ;;  %v3174_v56 = vadd.f32 %v6938_v7, %v2890_v13  ;;  %v7326_v44 = vld [vmem:[#allocation47_spill] sm:$0xff]  ;;  %v5007_v57 = vpop.f32.mrf.mxu0 }
 0x2db   : > { %v5072_v29 = vpop.f32.mrf.mxu1  ;;  %v2892_v47 = vadd.f32 %v7326_v44, %v2618_v55  ;;  %v3173_v36 = vadd.f32 %v6955_v26, %v2889_v5  ;;  %v7336_v5 = vld [vmem:[#allocation33_spill] sm:$0xff]  ;;  %v7341_v44 = vld [vmem:[#allocation54_spill] sm:$0xff] }
 0x2dc   : > { %3581 = vst [vmem:[%s6892_s27 + $0x60] sm:$0xff] %v3549_v54  ;;  %v3552_v41 = vadd.f32 %v3520_v42, %v3488_v16  ;;  %v3487_v4 = vadd.f32 %v6876_v14, %v3448_v59  ;;  %v3451_v8 = vadd.f32 %v5072_v29, %v3170_v30  ;;  %v7328_v42 = vld [vmem:[#allocation25_spill] sm:$0xff]  ;;  %v3523_v30 = vld [vmem:[%s6867_s22 + $0x90] sm:$0xff]  ;;  %v7329_v54 = vld [vmem:[#allocation48_spill] sm:$0xff]  ;;  %v3124_v22 = vpop.f32.mrf.mxu0 }
 0x2dd   : > { %v3355_v31 = vpop.f32.mrf.mxu1  ;;  %v2620_v11 = vadd.f32 %v7328_v42, %v7327_v19  ;;  %v2891_v16 = vadd.f32 %v7329_v54, %v2617_v51  ;;  %v7332_v29 = vld [vmem:[#allocation27_spill] sm:$0xff]  ;;  %v7343_v42 = vld [vmem:[#allocation6_spill] sm:$0xff] }
 0x2de   : > { %3584 = vst [vmem:[%s6892_s27 + $0x78] sm:$0xff] %v3552_v41  ;;  %v3551_v49 = vadd.f32 %v3519_v10, %v3487_v4  ;;  %v3490_v60 = vadd.f32 %v6876_v14, %v3451_v8  ;;  %v3450_v48 = vadd.f32 %v3355_v31, %v3169_v9  ;;  %v7331_v10 = vld [vmem:[#allocation30_spill] sm:$0xff]  ;;  %v3176_v8 = vadd.f32 %v6970_v50, %v2892_v47  ;;  %v3525_v31 = vld [vmem:[%s6867_s22 + $0xa0] sm:$0xff]  ;;  %v5010_v6 = vpop.f32.mrf.mxu0 }
 0x2df   : > { %v5075_v18 = vpop.f32.mrf.mxu1  ;;  %v2894_v32 = vadd.f32 %v7330_v15, %v2620_v11  ;;  %v2619_v9 = vadd.f32 %v7332_v29, %v7331_v10  ;;  %v3175_v61 = vadd.f32 %v6987_v1, %v2891_v16  ;;  %v2621_v50 = vadd.f32 %v7337_v52, %v7336_v5  ;;  %v7340_v1 = vld [vmem:[#allocation32_spill] sm:$0xff]  ;;  %v7344_v11 = vld [vmem:[#allocation34_spill] sm:$0xff]  ;;  %v3529_v29 = vld [vmem:[%s6867_s22 + $0xc0] sm:$0xff] }
 0x2e0   : > { %3583 = vst [vmem:[%s6892_s27 + $0x70] sm:$0xff] %v3551_v49  ;;  %v3554_v3 = vadd.f32 %v3522_v17, %v3490_v60  ;;  %v3489_v38 = vadd.f32 %v6876_v14, %v3450_v48  ;;  %v3453_v35 = vadd.f32 %v5075_v18, %v3172_v27  ;;  %v2622_v17 = vadd.f32 %v7335_v21, %v7334_v62  ;;  %v7338_v18 = vld [vmem:[#allocation53_spill] sm:$0xff]  ;;  %v7345_v15 = vld [vmem:[#allocation36_spill] sm:$0xff] }
 0x2e1   : > { %v3365_v53 = vpop.f32.mrf.mxu1  ;;  %v2893_v13 = vadd.f32 %v7333_v2, %v2619_v9  ;;  %v2624_v51 = vadd.f32 %v7340_v1, %v7339_v46  ;;  %v2895_v47 = vadd.f32 %v7341_v44, %v2621_v50  ;;  %v3534_v50 = vld [vmem:[%s6867_s22 + $0xe8] sm:$0xff]  ;;  %v3536_v1 = vld [vmem:[%s6867_s22 + $0xf8] sm:$0xff]  ;;  %v3535_v44 = vld [vmem:[%s6867_s22 + $0xf0] sm:$0xff] }
 0x2e2   : > { %3586 = vst [vmem:[%s6892_s27 + $0x88] sm:$0xff] %v3554_v3  ;;  %v3553_v45 = vadd.f32 %v3521_v28, %v3489_v38  ;;  %v3492_v39 = vadd.f32 %v6876_v14, %v3453_v35  ;;  %v3452_v20 = vadd.f32 %v3365_v53, %v3171_v34  ;;  %v3178_v28 = vadd.f32 %v7002_v25, %v2894_v32  ;;  %v7346_v32 = vld [vmem:[#allocation4_spill] sm:$0xff] }
 0x2e3   : > { %v5078_v23 = vpop.f32.mrf.mxu1  ;;  %v2896_v3 = vadd.f32 %v7338_v18, %v2622_v17  ;;  %v2626_v10 = vadd.f32 %v7346_v32, %v7345_v15 }
 0x2e4   : > { %3585 = vst [vmem:[%s6892_s27 + $0x80] sm:$0xff] %v3553_v45  ;;  %v3556_v7 = vadd.f32 %v3524_v0, %v3492_v39  ;;  %v3491_v59 = vadd.f32 %v6876_v14, %v3452_v20  ;;  %v3455_v63 = vadd.f32 %v5078_v23, %v3174_v56  ;;  %v3527_v0 = vld [vmem:[%s6867_s22 + $0xb0] sm:$0xff]  ;;  %v3177_v56 = vadd.f32 %v3114_v40, %v2893_v13  ;;  %v7342_v20 = vld [vmem:[#allocation56_spill] sm:$0xff]  ;;  %v3530_v23 = vld [vmem:[%s6867_s22 + $0xc8] sm:$0xff] }
 0x2e5   : > { %v3375_v24 = vpop.f32.mrf.mxu1  ;;  %v2898_v19 = vadd.f32 %v7342_v20, %v2624_v51  ;;  %v3532_v13 = vld [vmem:[%s6867_s22 + $0xd8] sm:$0xff]  ;;  %v2900_v21 = vadd.f32 %v6855_v58, %v2626_v10 }
 0x2e6   : > { %3588 = vst [vmem:[%s6892_s27 + $0x98] sm:$0xff] %v3556_v7  ;;  %v3555_v41 = vadd.f32 %v3523_v30, %v3491_v59  ;;  %v3494_v26 = vadd.f32 %v6876_v14, %v3455_v63  ;;  %v3454_v4 = vadd.f32 %v3375_v24, %v3173_v36  ;;  %v2623_v30 = vadd.f32 %v7344_v11, %v7343_v42  ;;  %v3134_v59 = vpop.f32.mrf.mxu0 }
 0x2e7   : > { %v5081_v49 = vpop.f32.mrf.mxu1  ;;  %v3180_v7 = vadd.f32 %v5007_v57, %v2896_v3 }
 0x2e8   : > { %3587 = vst [vmem:[%s6892_s27 + $0x90] sm:$0xff] %v3555_v41  ;;  %v3558_v60 = vadd.f32 %v3526_v37, %v3494_v26  ;;  %v3493_v48 = vadd.f32 %v6876_v14, %v3454_v4  ;;  %v3457_v27 = vadd.f32 %v5081_v49, %v3176_v8  ;;  %v2897_v63 = vadd.f32 %v6849_v43, %v2623_v30  ;;  %v7347_v4 = vld [vmem:[#allocation37_spill] sm:$0xff]  ;;  %v7348_v8 = vld [vmem:[#allocation35_spill] sm:$0xff]  ;;  %v5013_v2 = vpop.f32.mrf.mxu0 }
 0x2e9   : > { %v3385_v55 = vpop.f32.mrf.mxu1  ;;  %v3179_v26 = vadd.f32 %v3124_v22, %v2895_v47  ;;  %v2625_v57 = vadd.f32 %v7348_v8, %v7347_v4  ;;  %v3182_v43 = vadd.f32 %v5010_v6, %v2898_v19 }
 0x2ea   : > { %3590 = vst [vmem:[%s6892_s27 + $0xa8] sm:$0xff] %v3558_v60  ;;  %v3557_v38 = vadd.f32 %v3525_v31, %v3493_v48  ;;  %v3496_v35 = vadd.f32 %v6876_v14, %v3457_v27  ;;  %v3456_v34 = vadd.f32 %v3385_v55, %v3175_v61  ;;  %v3531_v60 = vld [vmem:[%s6867_s22 + $0xd0] sm:$0xff]  ;;  %v3181_v22 = vadd.f32 %v3134_v59, %v2897_v63  ;;  %v3144_v58 = vpop.f32.mrf.mxu0 }
 0x2eb   : > { %v5084_v53 = vpop.f32.mrf.mxu1  ;;  %v2899_v27 = vadd.f32 %v6859_v12, %v2625_v57  ;;  %v3184_v55 = vadd.f32 %v5013_v2, %v2900_v21  ;;  %v3533_v12 = vld [vmem:[%s6867_s22 + $0xe0] sm:$0xff] }
 0x2ec   : > { %3589 = vst [vmem:[%s6892_s27 + $0xa0] sm:$0xff] %v3557_v38  ;;  %v3560_v25 = vadd.f32 %v3528_v33, %v3496_v35  ;;  %v3495_v45 = vadd.f32 %v6876_v14, %v3456_v34  ;;  %v3459_v39 = vadd.f32 %v5084_v53, %v3178_v28 }
 0x2ed   : > { %v3395_v36 = vpop.f32.mrf.mxu1  ;;  %v3183_v35 = vadd.f32 %v3144_v58, %v2899_v27 }
 0x2ee   : > { %3592 = vst [vmem:[%s6892_s27 + $0xb8] sm:$0xff] %v3560_v25  ;;  %v3559_v54 = vadd.f32 %v3527_v0, %v3495_v45  ;;  %v3498_v40 = vadd.f32 %v6876_v14, %v3459_v39  ;;  %v3458_v16 = vadd.f32 %v3395_v36, %v3177_v56 }
 0x2ef   : > { %v5087_v9 = vpop.f32.mrf.mxu1 }
 0x2f0   : > { %3591 = vst [vmem:[%s6892_s27 + $0xb0] sm:$0xff] %v3559_v54  ;;  %v3562_v37 = vadd.f32 %v3530_v23, %v3498_v40  ;;  %v3497_v24 = vadd.f32 %v6876_v14, %v3458_v16  ;;  %v3461_v41 = vadd.f32 %v5087_v9, %v3180_v7 }
 0x2f1   : > { %v3405_v62 = vpop.f32.mrf.mxu1 }
 0x2f2   : > { %3594 = vst [vmem:[%s6892_s27 + $0xc8] sm:$0xff] %v3562_v37  ;;  %v3561_v17 = vadd.f32 %v3529_v29, %v3497_v24  ;;  %v3500_v31 = vadd.f32 %v6876_v14, %v3461_v41  ;;  %v3460_v49 = vadd.f32 %v3405_v62, %v3179_v26 }
 0x2f3   : > { %v5090_v48 = vpop.f32.mrf.mxu1 }
 0x2f4   : > { %3593 = vst [vmem:[%s6892_s27 + $0xc0] sm:$0xff] %v3561_v17  ;;  %v3564_v61 = vadd.f32 %v3532_v13, %v3500_v31  ;;  %v3499_v5 = vadd.f32 %v6876_v14, %v3460_v49  ;;  %v3463_v52 = vadd.f32 %v5090_v48, %v3182_v43 }
 0x2f5   : > { %v3415_v33 = vpop.f32.mrf.mxu1 }
 0x2f6   : > { %3596 = vst [vmem:[%s6892_s27 + $0xd8] sm:$0xff] %v3564_v61  ;;  %v3563_v28 = vadd.f32 %v3531_v60, %v3499_v5  ;;  %v3502_v18 = vadd.f32 %v6876_v14, %v3463_v52  ;;  %v3462_v3 = vadd.f32 %v3415_v33, %v3181_v22 }
 0x2f7   : > { %v5093_v38 = vpop.f32.mrf.mxu1 }
 0x2f8   : > { %3595 = vst [vmem:[%s6892_s27 + $0xd0] sm:$0xff] %v3563_v28  ;;  %v3566_v34 = vadd.f32 %v3534_v50, %v3502_v18  ;;  %v3501_v6 = vadd.f32 %v6876_v14, %v3462_v3  ;;  %v3465_v46 = vadd.f32 %v5093_v38, %v3184_v55 }
 0x2f9   : > { %v3425_v51 = vpop.f32.mrf.mxu1 }
 0x2fa   : > { %3598 = vst [vmem:[%s6892_s27 + $0xe8] sm:$0xff] %v3566_v34  ;;  %v3565_v0 = vadd.f32 %v3533_v12, %v3501_v6  ;;  %v3504_v53 = vadd.f32 %v6876_v14, %v3465_v46  ;;  %v3464_v56 = vadd.f32 %v3425_v51, %v3183_v35 }
 0x2fc   : > { %3597 = vst [vmem:[%s6892_s27 + $0xe0] sm:$0xff] %v3565_v0  ;;  %v3568_v47 = vadd.f32 %v3536_v1, %v3504_v53  ;;  %v3503_v25 = vadd.f32 %v6876_v14, %v3464_v56 }
 0x2fe   : > { %3600 = vst [vmem:[%s6892_s27 + $0xf8] sm:$0xff] %v3568_v47  ;;  %v3567_v45 = vadd.f32 %v3535_v44, %v3503_v25 }
 0x300   : > { %3599 = vst [vmem:[%s6892_s27 + $0xf0] sm:$0xff] %v3567_v45 }
 0x301 PF: > { %s16_s21 = sadd.s32 1, %s5138_s21  }
 0x302   : > { %p13_p4 = scmp.ge.s32.totalorder %s16_s21, 4  }
 0x304   :  { %15 = sbr.rel (!%p13_p4) target bundleno = 1 (0x1), region = 86 }

</bundles_post_ra>
